<compile_context>
chip_gen: v5e
topology: v5e:2x2
jax: 0.10.0
libtpu: 0.0.40
codegen_flags: <defaults>
</compile_context>

<pallas_src>
import functools

import jax
import jax.numpy as jnp
from jax.experimental import pallas as pl
from jax.experimental.pallas import tpu as pltpu


def _lane_repeat(x, up):
    """(R, C) -> (R, C*up) with out[:, c*up + j] = x[:, c].

    Lane-dimension element repeat, routed through the XLU as
    transpose -> sublane repeat -> transpose so that every internal reshape
    keeps the minor dimension unchanged (robust Mosaic relayouts).
    """
    xt = x.T                          # (C, R)       2-D f32 transpose
    xt = jnp.repeat(xt, up, axis=0)   # (C*up, R)    sublane repeat (minor dim unchanged)
    return xt.T                       # (R, C*up)


def _tile_expand_kernel(disp_ref, dx_ref, dy_ref, out_ref, *,
                        upscale, dispupsize, center):
    """Fused TileExpand + PixelShuffle for one (batch, row-tile) block.

    Block shapes:
      disp_ref / dx_ref / dy_ref : (1, TH, W)
      out_ref                    : (1, TH, up, W*up)
    where out[0, t, iy, w*up + jx] = d[t, w]*dispupsize
                                     + (jx - center)*dx[t, w]
                                     + (iy - center)*dy[t, w]
    """
    up = upscale

    d = disp_ref[0].astype(jnp.float32)    # (TH, W)
    gx = dx_ref[0].astype(jnp.float32)
    gy = dy_ref[0].astype(jnp.float32)

    # Nearest-upsample along W (jx interleave) for the three inputs.
    d_up = _lane_repeat(d, up)              # (TH, W*up)
    gx_up = _lane_repeat(gx, up)
    gy_up = _lane_repeat(gy, up)

    wup = d_up.shape[-1]
    # coef_x = (jx - center) along lanes; coef_y = (iy - center) along the
    # dedicated `up` output axis.  (% up is a cheap AND for power-of-2 upscale.)
    jx = jax.lax.broadcasted_iota(jnp.int32, (1, wup), 1) % up
    coef_x = jx.astype(jnp.float32) - center               # (1, W*up)
    iy = jax.lax.broadcasted_iota(jnp.int32, (up, 1), 0)
    coef_y = iy.astype(jnp.float32) - center                # (up, 1)

    base = d_up * dispupsize + coef_x * gx_up               # (TH, W*up)

    # iy expansion is pure broadcasting: (TH, 1, W*up) + (1, up, 1)*(TH, 1, W*up).
    out = base[:, None, :] + coef_y * gy_up[:, None, :]     # (TH, up, W*up)
    out_ref[0] = out.astype(out_ref.dtype)


def _pick_row_tile(n_batch, h, w, up, *, target_bytes=512 * 1024, min_steps=4):
    """Low-res rows per grid step.

    Multiple of 8 (f32 sublane tiling) unless it equals the full extent H.
    Sized so the fused output block stays ~target_bytes, and shrunk (down to 8)
    so the fully-"parallel" grid has enough steps for multi-core sharding and
    DMA/compute overlap.
    """
    if h <= 8:
        return h
    row_bytes = up * up * w * 4            # f32 output bytes per low-res row
    th = min(h, max(8, target_bytes // row_bytes))
    th = max(8, th - th % 8)
    while th > 8 and n_batch * pl.cdiv(h, th) < min_steps:
        half = th // 2
        th = max(8, half - half % 8)
    return th


def tile_expand(disp, dx, dy, *, upscale=4, tile_size=4, squeeze_dim=None):
    """Pallas implementation of TileExpand(upscale, tile_size).forward."""
    N, C, H, W = disp.shape
    assert C == 1, "TileExpand expects a single-channel disparity map"
    up = upscale
    dispupsize = float(upscale) / float(tile_size)
    center = (upscale - 1) / 2.0

    TH = _pick_row_tile(N, H, W, up)
    grid = (N, pl.cdiv(H, TH))

    # Drop the singleton channel dim (free reshape) so blocks are sublane-dense.
    disp3 = disp.reshape(N, H, W)
    dx3 = dx.reshape(N, H, W)
    dy3 = dy.reshape(N, H, W)

    kernel = functools.partial(
        _tile_expand_kernel,
        upscale=up,
        dispupsize=dispupsize,
        center=center,
    )

    in_spec = pl.BlockSpec((1, TH, W), lambda n, h: (n, h, 0))
    out_spec = pl.BlockSpec((1, TH, up, W * up), lambda n, h: (n, h, 0, 0))

    # (N, H, up, W*up) is a contiguous view of the PixelShuffle result
    # (N, 1, H*up, W*up): the trailing reshape below is metadata-only, so the
    # kernel's writes are the only HBM pass over the expanded tensor.
    out4 = pl.pallas_call(
        kernel,
        out_shape=jax.ShapeDtypeStruct((N, H, up, W * up), disp.dtype),
        grid=grid,
        in_specs=[in_spec, in_spec, in_spec],
        out_specs=out_spec,
        compiler_params=pltpu.CompilerParams(
            dimension_semantics=("parallel", "parallel"),
        ),
    )(disp3, dx3, dy3)

    y = out4.reshape(N, 1, H * up, W * up)

    if squeeze_dim:  # matches the PyTorch truthiness check
        y = jnp.squeeze(y, axis=squeeze_dim)
    return y


def _tile_expand_ref(disp, dx, dy, *, upscale=4, tile_size=4):
    """Pure-JAX reference mirroring the PyTorch forward (for validation)."""
    N, _, H, W = disp.shape
    center = (upscale - 1) / 2.0
    idx = jnp.arange(upscale, dtype=jnp.float32) - center
    coef_y, coef_x = jnp.meshgrid(idx, idx, indexing='ij')
    coef_x = coef_x.reshape(1, -1, 1, 1)
    coef_y = coef_y.reshape(1, -1, 1, 1)
    du = disp * (upscale / tile_size) + coef_x * dx + coef_y * dy
    du = du.reshape(N, upscale, upscale, H, W)
    du = du.transpose(0, 3, 1, 4, 2)                 # (N, H, iy, W, jx)
    return du.reshape(N, 1, H * upscale, W * upscale)


if __name__ == "__main__":
    key = jax.random.PRNGKey(0)
    k1, k2, k3 = jax.random.split(key, 3)

    upscale, tile_size = 4, 4

    # Case 1: aligned shapes (lane-dense everywhere), f32 and bf16.
    N, H, W = 2, 32, 128
    disp = jax.random.uniform(k1, (N, 1, H, W), jnp.float32) * 32.0
    dx = jax.random.normal(k2, (N, 1, H, W), jnp.float32)
    dy = jax.random.normal(k3, (N, 1, H, W), jnp.float32)

    out = tile_expand(disp, dx, dy, upscale=upscale, tile_size=tile_size)
    out = jax.block_until_ready(out)
    ref = _tile_expand_ref(disp, dx, dy, upscale=upscale, tile_size=tile_size)
    assert out.shape == (N, 1, H * upscale, W * upscale), out.shape
    assert jnp.allclose(out, ref, atol=1e-5, rtol=1e-5), "mismatch vs reference"

    out_bf16 = tile_expand(disp.astype(jnp.bfloat16), dx.astype(jnp.bfloat16),
                           dy.astype(jnp.bfloat16),
                           upscale=upscale, tile_size=tile_size)
    out_bf16 = jax.block_until_ready(out_bf16)
    assert out_bf16.dtype == jnp.bfloat16
    assert jnp.allclose(out_bf16.astype(jnp.float32), ref, atol=0.5, rtol=0.05)

    # Case 2: ragged rows (H not a multiple of the row tile), batch of 1,
    # squeeze_dim passthrough (exercises cdiv-grid boundary blocks).
    N2, H2, W2 = 1, 20, 64
    d2 = jax.random.uniform(k1, (N2, 1, H2, W2), jnp.float32) * 32.0
    gx2 = jax.random.normal(k2, (N2, 1, H2, W2), jnp.float32)
    gy2 = jax.random.normal(k3, (N2, 1, H2, W2), jnp.float32)
    out2 = tile_expand(d2, gx2, gy2, upscale=upscale, tile_size=tile_size,
                       squeeze_dim=1)
    out2 = jax.block_until_ready(out2)
    ref2 = jnp.squeeze(
        _tile_expand_ref(d2, gx2, gy2, upscale=upscale, tile_size=tile_size),
        axis=1)
    assert out2.shape == (N2, H2 * upscale, W2 * upscale), out2.shape
    assert jnp.allclose(out2, ref2, atol=1e-5, rtol=1e-5), "mismatch (ragged)"

    print("KERNEL_OK")
</pallas_src>

<mosaic_0001>
module attributes {stable_mosaic.version = 11 : i64} {
  func.func @_tile_expand_kernel(%arg0: i32, %arg1: i32, %arg2: memref<1x16x128xf32, #tpu.memory_space<vmem>>, %arg3: memref<1x16x128xf32, #tpu.memory_space<vmem>>, %arg4: memref<1x16x128xf32, #tpu.memory_space<vmem>>, %arg5: memref<1x16x4x512xf32, #tpu.memory_space<vmem>>) attributes {dimension_semantics = [#tpu.dimension_semantics<parallel>, #tpu.dimension_semantics<parallel>], iteration_bounds = array<i64: 2, 2>, scalar_prefetch = 0 : i64, scratch_operands = 0 : i64, tpu.core_type = #tpu.core_type<tc>, window_params = [{transform_indices = @transform_0, window_bounds = array<i64: 1, 16, 128>}, {transform_indices = @transform_1, window_bounds = array<i64: 1, 16, 128>}, {transform_indices = @transform_2, window_bounds = array<i64: 1, 16, 128>}, {transform_indices = @transform_3, window_bounds = array<i64: 1, 16, 4, 512>}]} {
    %c0 = arith.constant 0 : index
    %c0_0 = arith.constant 0 : index
    %c0_1 = arith.constant 0 : index
    %0 = vector.load %arg2[%c0, %c0_0, %c0_1] : memref<1x16x128xf32, #tpu.memory_space<vmem>>, vector<1x16x128xf32>
    %1 = vector.shape_cast %0 : vector<1x16x128xf32> to vector<16x128xf32>
    %c0_2 = arith.constant 0 : index
    %c0_3 = arith.constant 0 : index
    %c0_4 = arith.constant 0 : index
    %2 = vector.load %arg3[%c0_2, %c0_3, %c0_4] : memref<1x16x128xf32, #tpu.memory_space<vmem>>, vector<1x16x128xf32>
    %3 = vector.shape_cast %2 : vector<1x16x128xf32> to vector<16x128xf32>
    %c0_5 = arith.constant 0 : index
    %c0_6 = arith.constant 0 : index
    %c0_7 = arith.constant 0 : index
    %4 = vector.load %arg4[%c0_5, %c0_6, %c0_7] : memref<1x16x128xf32, #tpu.memory_space<vmem>>, vector<1x16x128xf32>
    %5 = vector.shape_cast %4 : vector<1x16x128xf32> to vector<16x128xf32>
    %6 = tpu.transpose %1, [1, 0] : vector<16x128xf32> -> vector<128x16xf32>
    %7 = vector.shape_cast %6 : vector<128x16xf32> to vector<128x1x16xf32>
    %8 = vector.broadcast %7 : vector<128x1x16xf32> to vector<128x4x16xf32>
    %9 = vector.shape_cast %8 : vector<128x4x16xf32> to vector<512x16xf32>
    %10 = tpu.transpose %9, [1, 0] : vector<512x16xf32> -> vector<16x512xf32>
    %11 = tpu.transpose %3, [1, 0] : vector<16x128xf32> -> vector<128x16xf32>
    %12 = vector.shape_cast %11 : vector<128x16xf32> to vector<128x1x16xf32>
    %13 = vector.broadcast %12 : vector<128x1x16xf32> to vector<128x4x16xf32>
    %14 = vector.shape_cast %13 : vector<128x4x16xf32> to vector<512x16xf32>
    %15 = tpu.transpose %14, [1, 0] : vector<512x16xf32> -> vector<16x512xf32>
    %16 = tpu.transpose %5, [1, 0] : vector<16x128xf32> -> vector<128x16xf32>
    %17 = vector.shape_cast %16 : vector<128x16xf32> to vector<128x1x16xf32>
    %18 = vector.broadcast %17 : vector<128x1x16xf32> to vector<128x4x16xf32>
    %19 = vector.shape_cast %18 : vector<128x4x16xf32> to vector<512x16xf32>
    %20 = tpu.transpose %19, [1, 0] : vector<512x16xf32> -> vector<16x512xf32>
    %21 = tpu.iota {dimensions = array<i32: 1>} : vector<1x512xi32>
    %c4_i32 = arith.constant 4 : i32
    %c0_i32 = arith.constant 0 : i32
    %22 = arith.cmpi eq, %c4_i32, %c0_i32 : i32
    %c1_i32 = arith.constant 1 : i32
    %23 = arith.select %22, %c1_i32, %c4_i32 : i32
    %24 = vector.broadcast %23 : i32 to vector<1x512xi32>
    %25 = arith.remsi %21, %24 : vector<1x512xi32>
    %c0_i32_8 = arith.constant 0 : i32
    %26 = vector.broadcast %c0_i32_8 : i32 to vector<1x512xi32>
    %27 = arith.cmpi ne, %25, %26 : vector<1x512xi32>
    %c0_i32_9 = arith.constant 0 : i32
    %28 = vector.broadcast %c0_i32_9 : i32 to vector<1x512xi32>
    %29 = arith.cmpi slt, %25, %28 : vector<1x512xi32>
    %c0_i32_10 = arith.constant 0 : i32
    %30 = arith.cmpi slt, %23, %c0_i32_10 : i32
    %31 = vector.broadcast %30 : i1 to vector<1x512xi1>
    %32 = vector.broadcast %31 : vector<1x512xi1> to vector<1x512xi1>
    %33 = arith.xori %29, %32 : vector<1x512xi1>
    %34 = arith.andi %33, %27 : vector<1x512xi1>
    %35 = vector.broadcast %23 : i32 to vector<1x512xi32>
    %36 = arith.addi %25, %35 : vector<1x512xi32>
    %37 = arith.select %34, %36, %25 : vector<1x512xi1>, vector<1x512xi32>
    %38 = arith.sitofp %37 : vector<1x512xi32> to vector<1x512xf32>
    %cst = arith.constant 1.500000e+00 : f32
    %39 = vector.broadcast %cst : f32 to vector<1x512xf32>
    %40 = arith.subf %38, %39 : vector<1x512xf32>
    %41 = tpu.iota {dimensions = array<i32: 0>} : vector<4x1xi32>
    %42 = arith.sitofp %41 : vector<4x1xi32> to vector<4x1xf32>
    %cst_11 = arith.constant 1.500000e+00 : f32
    %43 = vector.broadcast %cst_11 : f32 to vector<4x1xf32>
    %44 = arith.subf %42, %43 : vector<4x1xf32>
    %cst_12 = arith.constant 1.000000e+00 : f32
    %45 = vector.broadcast %cst_12 : f32 to vector<16x512xf32>
    %46 = arith.mulf %10, %45 : vector<16x512xf32>
    %47 = vector.broadcast %40 : vector<1x512xf32> to vector<16x512xf32>
    %48 = arith.mulf %47, %15 : vector<16x512xf32>
    %49 = arith.addf %46, %48 : vector<16x512xf32>
    %50 = vector.shape_cast %49 : vector<16x512xf32> to vector<16x1x512xf32>
    %51 = vector.shape_cast %20 : vector<16x512xf32> to vector<16x1x512xf32>
    %52 = vector.shape_cast %44 : vector<4x1xf32> to vector<1x4x1xf32>
    %53 = vector.broadcast %52 : vector<1x4x1xf32> to vector<16x4x512xf32>
    %54 = vector.broadcast %51 : vector<16x1x512xf32> to vector<16x4x512xf32>
    %55 = arith.mulf %53, %54 : vector<16x4x512xf32>
    %56 = vector.broadcast %50 : vector<16x1x512xf32> to vector<16x4x512xf32>
    %57 = arith.addf %56, %55 : vector<16x4x512xf32>
    %c0_13 = arith.constant 0 : index
    %c0_14 = arith.constant 0 : index
    %c0_15 = arith.constant 0 : index
    %c0_16 = arith.constant 0 : index
    %58 = vector.load %arg5[%c0_13, %c0_14, %c0_15, %c0_16] : memref<1x16x4x512xf32, #tpu.memory_space<vmem>>, vector<1x16x4x512xf32>
    %59 = vector.shape_cast %58 : vector<1x16x4x512xf32> to vector<16x4x512xf32>
    %60 = vector.shape_cast %57 : vector<16x4x512xf32> to vector<1x16x4x512xf32>
    tpu.vector_store %arg5[%c0_13, %c0_14, %c0_15, %c0_16], %60 {strides = array<i32>} : memref<1x16x4x512xf32, #tpu.memory_space<vmem>>, vector<1x16x4x512xf32>,
    return
  }
  func.func @transform_0(%arg0: i32, %arg1: i32) -> (i32, i32, i32) {
    %c0_i32 = arith.constant 0 : i32
    %c0_i32_0 = arith.constant 0 : i32
    return %arg0, %arg1, %c0_i32 : i32, i32, i32
  }
  func.func @transform_1(%arg0: i32, %arg1: i32) -> (i32, i32, i32) {
    %c0_i32 = arith.constant 0 : i32
    %c0_i32_0 = arith.constant 0 : i32
    return %arg0, %arg1, %c0_i32 : i32, i32, i32
  }
  func.func @transform_2(%arg0: i32, %arg1: i32) -> (i32, i32, i32) {
    %c0_i32 = arith.constant 0 : i32
    %c0_i32_0 = arith.constant 0 : i32
    return %arg0, %arg1, %c0_i32 : i32, i32, i32
  }
  func.func @transform_3(%arg0: i32, %arg1: i32) -> (i32, i32, i32, i32) {
    %c0_i32 = arith.constant 0 : i32
    %c0_i32_0 = arith.constant 0 : i32
    %c0_i32_1 = arith.constant 0 : i32
    return %arg0, %arg1, %c0_i32, %c0_i32_0 : i32, i32, i32, i32
  }
}

</mosaic_0001>

<bundles_post_ra>
// kernel: tpu_custom_call.1
= control target key start
LH: loop header
LB: loop body
LE: loop exit
PB: predicated region body
PF: predicated region fallthrough
CT: control target
= control target key end

     0   :  { %s4973_s0 = inlined_call_operand.hbm [shape: f32[2,32,128], index: 0, kind: input, shape index: {}]   ;;  %s4974_s1 = inlined_call_operand.hbm [shape: f32[2,32,128], index: 1, kind: input, shape index: {}]   ;;  %s4975_s2 = inlined_call_operand.hbm [shape: f32[2,32,128], index: 2, kind: input, shape index: {}]   ;;  %s4976_s3 = inlined_call_operand.hbm [shape: f32[2,32,4,512], index: 3, kind: output, shape index: {}]  }
   0x1   :  { %4995 = sst [smem:[#allocation25_spill]] %s4974_s1 }
   0x2   :  { %8 = vsyncpa [#allocation3], 0 }
   0x3   :  { %10 = vsyncpa [#allocation3 + $0x1], 0 }
   0x4   :  { %11 = vsyncpa [#allocation6], 0 }
   0x5   :  { %13 = vsyncpa [#allocation6 + $0x1], 0 }
   0x6   :  { %14 = vsyncpa [#allocation4], 0 }
   0x7   :  { %16 = vsyncpa [#allocation4 + $0x1], 0  ;;  %s3674_s12 = smov 0   ;;  %s3676_s13 = smov 0  }
   0x8   :  { %s3678_s14 = smov 0   ;;  %s3680_s15 = smov 0  }
   0x9   :  { %s3682_s16 = smov 0   ;;  %s3684_s17 = smov 0  }
   0xa   :  { %s3686_s18 = smov 0   ;;  %s3688_s19 = smov 0  }
   0xb LB: > { %4996 = sst [smem:[#allocation12_spill]] %s3620_s12  ;;  %s3715_s20 = sadd.s32 4294967295, %s3648_s19   ;;  %s3648_s19 = sphi %s3688_s19, %s22_s19   ;;  %s3644_s18 = sphi %s3686_s18, %s5086_s18   ;;  %s3640_s17 = sphi %s3684_s17, %s5085_s17   ;;  %s3636_s16 = sphi %s3682_s16, %s5084_s16   ;;  %s3632_s15 = sphi %s3680_s15, %s5083_s15   ;;  %s3628_s14 = sphi %s3678_s14, %s5082_s14   ;;  %s3624_s13 = sphi %s3676_s13, %s5088_s13   ;;  %s3620_s12 = sphi %s3674_s12, %s5087_s12  }
   0xc   : > { %4997 = sst [smem:[#allocation13_spill]] %s3628_s14  ;;  %s3330_s21 = sadd.s32 4294967294, %s3648_s19  }
   0xd   : > { %4998 = sst [smem:[#allocation14_spill]] %s3640_s17  ;;  %s31_s22 = sadd.s32 1, %s3640_s17 }
   0xe   : > { %4999 = sst [smem:[#allocation15_spill]] %s3644_s18  ;;  %s34_s23 = sadd.s32 1, %s3644_s18 }
   0xf   : > { %p32_p0 = scmp.ge.s32.totalorder %s31_s22, 2  ;;  %s43_s24 = sadd.s32 1, %s3628_s14 }
  0x10   : > { %p50_p1 = scmp.ne.s32.totalorder %s3628_s14, %s3624_s13  ;;  %p51_p2 = scmp.eq.s32.totalorder %s3648_s19, 0 }
  0x11   : > { %s5090_s22 = smov (%p32_p0, %s31_s22), 0  ;;  %s5092_s23 = smov (!%p32_p0, %s34_s23), %s3644_s18 }
  0x12   : > { %5000 = sst [smem:[#allocation16_spill]] %s5090_s22  ;;  %s39_s25 = ssub.s32 %s3640_s17, %s5090_s22 }
  0x13   : > { %p3729_p3 = por %p51_p2, %p50_p1  ;;  %p36_p4 = scmp.ge.s32.totalorder %s5092_s23, 2 }
  0x14   : > { %p56_p5 = scmp.ne.s32.totalorder %s3624_s13, %s3620_s12  ;;  %p57_p6 = scmp.eq.s32.totalorder %s3715_s20, 0 }
  0x15   : > { %p138_p7 = scmp.eq.s32.totalorder %s3715_s20, 3  ;;  %s5094_s23 = smov (%p36_p4, %s5092_s23), 0 }
  0x16   : > { %5002 = sst [smem:[#allocation17_spill]] %s5094_s23  ;;  %p3739_p8 = por %p57_p6, %p56_p5 }
  0x17   : > { %p3743_p9 = por %p138_p7, %p50_p1  ;;  %s38_s29 = ssub.s32 %s3644_s18, %s5094_s23 }
  0x18   : > { %p144_p10 = scmp.eq.s32.totalorder %s3330_s21, 3  ;;  %s40_s30 = sor.u32 %s39_s25, %s38_s29 }
  0x19   : > { %p41_p11 = scmp.eq.s32.totalorder %s40_s30, 0  ;;  %p3385_p13 = scmp.lt.s32.totalorder %s3648_s19, 4 }
  0x1a   : > { %p3749_p12 = por %p144_p10, %p56_p5  ;;  %s164_s5 = sand.u32 1, %s3628_s14  }
  0x1b   : > { %s3756_s6 = scalar_select %p41_p11, %s3628_s14, %s43_s24  }
  0x1c   : > { %s5005_s4 = scalar_select %p3749_p12, 1, 0 }
  0x1d   : > { %5007 = sst [smem:[#allocation19_spill]] %s3756_s6  ;;  %s3758_s7 = sshll.u32 %s164_s5, 4 }
  0x1e   : > { %5006 = sst [smem:[#allocation18_spill]] %s5005_s4  ;;  %s3334_s8 = sshll.u32 %s3640_s17, 1 }
  0x1f   : > { %s3335_s9 = sshll.u32 %s3644_s18, 2  ;;  %p3764_p0 = pnand %p3385_p13, %p3729_p3 }
  0x20   : > { %s173_s11 = sadd.s32 %s3335_s9, %s3334_s8  ;;  %s188_s25 = sand.u32 1, %s3648_s19  }
  0x21   : > { %s3336_s21 = sshll.u32 %s173_s11, 3  ;;  %s5009_s1 = sld [smem:[#allocation25_spill]] }
  0x22   : > { %s192_s23 = scalar_lea.vmem [#allocation5], %s3758_s7  ;;  %p3345_p1 = scmp.ge.s32.totalorder %s3648_s19, 1 }
  0x23   : > { %s202_s22 = sshll.u32 %s192_s23, 4  ;;  %s189_s26 = scalar_lea.sflag [#allocation6], %s188_s25  ;;  %s203_s22 = int_to_ptr.vmem [resolvable:$true] %s202_s22 }
  0x24   : > { %s3650_s18 = smov 128   ;;  %s3651_s17 = smov 8  }
  0x25   : > { %p234_p2 = scmp.lt.s32.totalorder %s3648_s19, 5  ;;  %s175_s23 = scalar_lea.hbm %s4973_s0, %s3336_s21 }
  0x26   : > { %s168_s29 = scalar_lea.vmem [#allocation2], %s3758_s7  ;;  %s165_s25 = scalar_lea.sflag [#allocation3], %s164_s5 }
  0x27   : > { %s199_s24 = scalar_lea.hbm %s5009_s1, %s3336_s21  ;;  %p3777_p3 = pnand %p3345_p1, %p234_p2 }
  0x28   : > { %s200_s6 = sshll.u32 %s199_s24, 4  ;;  %s178_s30 = sshll.u32 %s168_s29, 4  ;;  %s201_s6 = int_to_ptr.hbm [resolvable:$true] %s200_s6  ;;  %s179_s30 = int_to_ptr.vmem [resolvable:$true] %s178_s30 }
  0x29   : > { %3377 = dma.hbm_to_vmem [thread:$0]  (!%p3764_p0), %s201_s6, 256, %s203_s22, %s189_s26, %s3650_s18, %s3650_s18, %s3651_s17  }
  0x2a   : > { %s176_s24 = sshll.u32 %s175_s23, 4  ;;  %s223_s6 = scalar_lea.hbm %s4975_s2, %s3336_s21  ;;  %s177_s24 = int_to_ptr.hbm [resolvable:$true] %s176_s24 }
  0x2b   : > { %3374 = dma.hbm_to_vmem [thread:$0]  (!%p3764_p0), %s177_s24, 256, %s179_s30, %s165_s25, %s3650_s18, %s3650_s18, %s3651_s17  }
  0x2c   : > { %s216_s14 = scalar_lea.vmem [#allocation7], %s3758_s7  ;;  %s224_s12 = sshll.u32 %s223_s6, 4  ;;  %s225_s12 = int_to_ptr.hbm [resolvable:$true] %s224_s12 }
  0x2d   : > { %s226_s4 = sshll.u32 %s216_s14, 4  ;;  %238 = sbr.rel (%p3777_p3) target bundleno = 1182 (0x49e), region = 32  ;;  %s227_s4 = int_to_ptr.vmem [resolvable:$true] %s226_s4 }
  0x2e   : > { %3380 = dma.hbm_to_vmem [thread:$0]  (!%p3764_p0), %s225_s12, 256, %s227_s4, %s189_s26, %s3650_s18, %s3650_s18, %s3651_s17  }
  0x32   : > { %s3796_s9 = sand.u32 1, %s3624_s13  }
  0x33   : > { %s3799_s5 = sshll.u32 %s3796_s9, 4  ;;  %s241_s1 = scalar_lea.sflag [#allocation3], %s3796_s9 }
  0x34   : > { %s244_s7 = scalar_lea.vmem [#allocation2], %s3799_s5 }
  0x35   : > { %3607 = dma.done.wait (%p3739_p8), %s241_s1, 256  }
  0x36   : > { %3609 = vsyncadd (%p3739_p8), %s241_s1, 4294967040  ;;  %s250_s12 = sand.u32 1, %s3715_s20   ;;  %s254_s17 = scalar_lea.vmem [#allocation5], %s3799_s5 }
  0x37   : > { %s251_s14 = scalar_lea.sflag [#allocation6], %s250_s12 }
  0x38   : > { %3611 = dma.done.wait (%p3739_p8), %s251_s14, 512  }
  0x39   : > { %3613 = vsyncadd (%p3739_p8), %s251_s14, 4294966784  ;;  %v302_v0 = vld [vmem:[%s244_s7] sm:$0xff]  ;;  %v303_v2 = vld [vmem:[%s244_s7 + $0x8] sm:$0xff]  ;;  %s264_s18 = scalar_lea.vmem [#allocation7], %s3799_s5  ;;  %vm2440_vm0 = vcmask 1040384   ;;  %vm2442_vm1 = vcmask 1042434  }
  0x3a   : > { %v304_v1 = vld [vmem:[%s254_s17] sm:$0xff]  ;;  %308 = vxpose.xlu0.b32.start [1/2] (short) %v302_v0, 128  ;;  %v305_v3 = vld [vmem:[%s254_s17 + $0x8] sm:$0xff]  ;;  %vm2446_vm2 = vcmask 1041409   ;;  %vm2448_vm3 = vcmask 1043459   ;;  %vm2454_vm4 = vcmask 1044484   ;;  %vm2460_vm5 = vcmask 1045509  }
  0x3b   : > { %987 = vxpose.xlu2.b32.start [1/2] (short) %v304_v1, 128  ;;  %vm2466_vm6 = vcmask 1046534   ;;  %vm2472_vm7 = vcmask 1046528   ;;  %vm4984_vm8 = vcmask 1041408   ;;  %vm2450_vm9 = vcmask 1042433   ;;  %s3349_s20 = sshll.u32 %s3796_s9, 8  ;;  %s3362_s4 = sshll.u32 %s3632_s15, 6 }
  0x3c   : > { %vm2456_vm10 = vcmask 1043458   ;;  %vm2462_vm11 = vcmask 1044483   ;;  %vm2468_vm12 = vcmask 1045508   ;;  %vm2474_vm13 = vcmask 1046533   ;;  %s4669_s27 = scalar_lea.vmem [#allocation8], %s3349_s20  ;;  %s3358_s10 = sshll.u32 %s3636_s16, 7 }
  0x3d   : > { %vm2479_vm14 = vcmask 1045504   ;;  %vm2484_vm15 = vcmask 1046529   ;;  %s4864_s15 = sadd.s32 %s3362_s4, %s3358_s10  ;;  %s3187_s11 = sshll.u32 %s4669_s27, 4  ;;  %s3188_s11 = int_to_ptr.vmem [resolvable:$true] %s3187_s11 }
  0x3e   : > { %s3359_s16 = sshll.u32 %s4864_s15, 2  ;;  %s3172_s29 = scalar_lea.sflag [#allocation4], %s3796_s9 }
  0x3f   : > { %s3186_s8 = scalar_lea.hbm %s4976_s3, %s3359_s16  ;;  %s3566_s6 = scalar_lea.hbm %s4976_s3, 1024 }
  0x40   : > { %s3189_s23 = sshll.u32 %s3186_s8, 4  ;;  %s3190_s23 = int_to_ptr.hbm [resolvable:$true] %s3189_s23 }
  0x41   : > { %s3560_s30 = sshra.s32 %s3190_s23, 4  ;;  %s3561_s30 = int_to_ptr.hbm [resolvable:$true] %s3560_s30 }
  0x42   : > { %309 = vxpose.xlu0.b32.end [2/2] (short) %v303_v2, 128  ;;  %s3562_s24 = scalar_lea.hbm %s3561_s30, 256  ;;  %p3567_p7 = scmp.lt.s32.totalorder %s3561_s30, %s4976_s3 }
  0x43   : > { %988 = vxpose.xlu2.b32.end [2/2] (short) %v305_v3, 128  ;;  %p3563_p4 = scmp.ne.s32.totalorder %s3561_s30, %s3562_s24  ;;  %p3568_p8 = scmp.lt.s32.totalorder %s3566_s6, %s3562_s24 }
  0x45   : > { %p3564_p5 = pnand %p3563_p4, %p3743_p9  ;;  %p3569_p10 = por %p3568_p8, %p3567_p7 }
  0x47   : > { %p3565_p6 = pneg %p3564_p5 }
  0x49   : > { %p3570_p11 = pnand %p3569_p10, %p3565_p6 }
  0xde   : > { %v324_v4 = vpop.trf.xlu0 }
  0xdf   : > { %v356_v5 = vrot.slane %v324_v4, 1  ;;  %v357_v6 = vrot.slane %v324_v4, 2  ;;  %v358_v7 = vrot.slane %v324_v4, 3  ;;  %v359_v8 = vrot.slane %v324_v4, 4 }
  0xe0   : > { %v360_v9 = vrot.slane %v324_v4, 5  ;;  %v361_v10 = vrot.slane %v324_v4, 6  ;;  %v468_v11 = vperm.slane %v324_v4, 0  ;;  %v362_v12 = vrot.slane %v324_v4, 7 }
  0xe1   : > { %v469_v13 = vperm.slane %v356_v5, 0  ;;  %v470_v14 = vperm.slane %v357_v6, 0  ;;  %v471_v15 = vperm.slane %v358_v7, 0  ;;  %v472_v16 = vperm.slane %v359_v8, 0 }
  0xe2   : > { %596 = vst [vmem:[#allocation1] ss:$2 sm:$0xff] %v468_v11  ;;  %v473_v17 = vperm.slane %v360_v9, 0  ;;  %v474_v18 = vperm.slane %v361_v10, 0  ;;  %v475_v19 = vperm.slane %v362_v12, 0 }
  0xe3   : > { %598 = vst [vmem:[#allocation1 + $0x1] ss:$2 sm:$0xff] %v469_v13 }
  0xe4   : > { %600 = vst [vmem:[#allocation1 + $0x10] ss:$2 sm:$0xff] %v470_v14 }
  0xe5   : > { %602 = vst [vmem:[#allocation1 + $0x11] ss:$2 sm:$0xff] %v471_v15 }
  0xe6   : > { %604 = vst [vmem:[#allocation1 + $0x20] ss:$2 sm:$0xff] %v472_v16  ;;  %v325_v20 = vpop.trf.xlu0 }
  0xe7   : > { %606 = vst [vmem:[#allocation1 + $0x21] ss:$2 sm:$0xff] %v473_v17  ;;  %v363_v21 = vrot.slane %v325_v20, 1  ;;  %v364_v22 = vrot.slane %v325_v20, 2  ;;  %v365_v23 = vrot.slane %v325_v20, 3  ;;  %v366_v24 = vrot.slane %v325_v20, 4 }
  0xe8   : > { %608 = vst [vmem:[#allocation1 + $0x30] ss:$2 sm:$0xff] %v474_v18  ;;  %v367_v25 = vrot.slane %v325_v20, 5  ;;  %v476_v26 = vperm.slane %v325_v20, 0  ;;  %v368_v27 = vrot.slane %v325_v20, 6  ;;  %v369_v31 = vrot.slane %v325_v20, 7 }
  0xe9   : > { %610 = vst [vmem:[#allocation1 + $0x31] ss:$2 sm:$0xff] %v475_v19  ;;  %v477_v28 = vperm.slane %v363_v21, 0  ;;  %v478_v29 = vperm.slane %v364_v22, 0  ;;  %v479_v32 = vperm.slane %v365_v23, 0  ;;  %v480_v33 = vperm.slane %v366_v24, 0 }
  0xea   : > { %v611_v30 = vld.sshfl [vmem:[#allocation1] sm:$0xff pattern:$0x75316420]  ;;  %v481_v35 = vperm.slane %v367_v25, 0  ;;  %v482_v36 = vperm.slane %v368_v27, 0  ;;  %v483_v38 = vperm.slane %v369_v31, 0 }
  0xeb   : > { %615 = vst [vmem:[#allocation1] ss:$2 sm:$0xff] %v476_v26  ;;  %859 = vxpose.xlu1.b32.start [1/16] (narrow) %v611_v30, 16 }
  0xec   : > { %v612_v34 = vld.sshfl [vmem:[#allocation1 + $0x10] sm:$0xff pattern:$0x75316420]  ;;  %616 = vst [vmem:[#allocation1 + $0x1] ss:$2 sm:$0xff] %v477_v28 }
  0xed   : > { %617 = vst [vmem:[#allocation1 + $0x10] ss:$2 sm:$0xff] %v478_v29 }
  0xee   : > { %v613_v37 = vld.sshfl [vmem:[#allocation1 + $0x20] sm:$0xff pattern:$0x75316420]  ;;  %618 = vst [vmem:[#allocation1 + $0x11] ss:$2 sm:$0xff] %v479_v32  ;;  %v326_v39 = vpop.trf.xlu0 }
  0xef   : > { %619 = vst [vmem:[#allocation1 + $0x20] ss:$2 sm:$0xff] %v480_v33  ;;  %v370_v40 = vrot.slane %v326_v39, 1  ;;  %v371_v41 = vrot.slane %v326_v39, 2  ;;  %v372_v42 = vrot.slane %v326_v39, 3  ;;  %v373_v44 = vrot.slane %v326_v39, 4 }
  0xf0   : > { %v3813_v43 = vld.sshfl [vmem:[#allocation1 + $0x30] sm:$0xff pattern:$0x75316420]  ;;  %620 = vst [vmem:[#allocation1 + $0x21] ss:$2 sm:$0xff] %v481_v35  ;;  %v374_v45 = vrot.slane %v326_v39, 5 }
  0xf1   : > { %621 = vst [vmem:[#allocation1 + $0x30] ss:$2 sm:$0xff] %v482_v36  ;;  %v484_v46 = vperm.slane %v326_v39, 0  ;;  %v485_v47 = vperm.slane %v370_v40, 0  ;;  %v375_v48 = vrot.slane %v326_v39, 6  ;;  %v376_v49 = vrot.slane %v326_v39, 7 }
  0xf2   : > { %622 = vst [vmem:[#allocation1 + $0x31] ss:$2 sm:$0xff] %v483_v38  ;;  %v486_v50 = vperm.slane %v371_v41, 0  ;;  %v487_v52 = vperm.slane %v372_v42, 0  ;;  %v488_v53 = vperm.slane %v373_v44, 0  ;;  %v489_v55 = vperm.slane %v374_v45, 0 }
  0xf3   : > { %v3815_v51 = vld.sshfl [vmem:[#allocation1] sm:$0xff pattern:$0x75316420]  ;;  %860 = vxpose.xlu1.b32.cont [2/16] (narrow) %v612_v34, 16  ;;  %v490_v56 = vperm.slane %v375_v48, 0  ;;  %v491_v57 = vperm.slane %v376_v49, 0 }
  0xf4   : > { %627 = vst [vmem:[#allocation1] ss:$2 sm:$0xff] %v484_v46 }
  0xf5   : > { %v3817_v54 = vld.sshfl [vmem:[#allocation1 + $0x10] sm:$0xff pattern:$0x75316420]  ;;  %628 = vst [vmem:[#allocation1 + $0x1] ss:$2 sm:$0xff] %v485_v47 }
  0xf6   : > { %629 = vst [vmem:[#allocation1 + $0x10] ss:$2 sm:$0xff] %v486_v50  ;;  %v327_v58 = vpop.trf.xlu0 }
  0xf7   : > { %v3819_v59 = vld.sshfl [vmem:[#allocation1 + $0x20] sm:$0xff pattern:$0x75316420]  ;;  %630 = vst [vmem:[#allocation1 + $0x11] ss:$2 sm:$0xff] %v487_v52  ;;  %v377_v60 = vrot.slane %v327_v58, 1 }
  0xf8   : > { %631 = vst [vmem:[#allocation1 + $0x20] ss:$2 sm:$0xff] %v488_v53  ;;  %v378_v61 = vrot.slane %v327_v58, 2  ;;  %v379_v62 = vrot.slane %v327_v58, 3  ;;  %v380_v0 = vrot.slane %v327_v58, 4  ;;  %v381_v1 = vrot.slane %v327_v58, 5 }
  0xf9   : > { %v3821_v63 = vld.sshfl [vmem:[#allocation1 + $0x30] sm:$0xff pattern:$0x75316420]  ;;  %632 = vst [vmem:[#allocation1 + $0x21] ss:$2 sm:$0xff] %v489_v55  ;;  %v492_v2 = vperm.slane %v327_v58, 0 }
  0xfa   : > { %633 = vst [vmem:[#allocation1 + $0x30] ss:$2 sm:$0xff] %v490_v56  ;;  %v493_v3 = vperm.slane %v377_v60, 0  ;;  %v382_v4 = vrot.slane %v327_v58, 6  ;;  %v383_v5 = vrot.slane %v327_v58, 7  ;;  %v494_v6 = vperm.slane %v378_v61, 0 }
  0xfb   : > { %634 = vst [vmem:[#allocation1 + $0x31] ss:$2 sm:$0xff] %v491_v57  ;;  %v495_v8 = vperm.slane %v379_v62, 0  ;;  %861 = vxpose.xlu1.b32.cont [3/16] (narrow) %v613_v37, 16  ;;  %v496_v9 = vperm.slane %v380_v0, 0  ;;  %v497_v11 = vperm.slane %v381_v1, 0 }
  0xfc   : > { %v3823_v7 = vld.sshfl [vmem:[#allocation1] sm:$0xff pattern:$0x75316420]  ;;  %v498_v13 = vperm.slane %v382_v4, 0  ;;  %v499_v14 = vperm.slane %v383_v5, 0 }
  0xfd   : > { %639 = vst [vmem:[#allocation1] ss:$2 sm:$0xff] %v492_v2 }
  0xfe   : > { %v3825_v10 = vld.sshfl [vmem:[#allocation1 + $0x10] sm:$0xff pattern:$0x75316420]  ;;  %640 = vst [vmem:[#allocation1 + $0x1] ss:$2 sm:$0xff] %v493_v3  ;;  %v328_v12 = vpop.trf.xlu0 }
  0xff   : > { %641 = vst [vmem:[#allocation1 + $0x10] ss:$2 sm:$0xff] %v494_v6  ;;  %v384_v15 = vrot.slane %v328_v12, 1  ;;  %v385_v17 = vrot.slane %v328_v12, 2  ;;  %v386_v18 = vrot.slane %v328_v12, 3  ;;  %v387_v19 = vrot.slane %v328_v12, 4 }
 0x100   : > { %v3827_v16 = vld.sshfl [vmem:[#allocation1 + $0x20] sm:$0xff pattern:$0x75316420]  ;;  %642 = vst [vmem:[#allocation1 + $0x11] ss:$2 sm:$0xff] %v495_v8  ;;  %v500_v21 = vperm.slane %v328_v12, 0 }
 0x101   : > { %643 = vst [vmem:[#allocation1 + $0x20] ss:$2 sm:$0xff] %v496_v9  ;;  %v388_v22 = vrot.slane %v328_v12, 5  ;;  %v501_v23 = vperm.slane %v384_v15, 0  ;;  %v389_v24 = vrot.slane %v328_v12, 6  ;;  %v390_v25 = vrot.slane %v328_v12, 7 }
 0x102   : > { %v3829_v20 = vld.sshfl [vmem:[#allocation1 + $0x30] sm:$0xff pattern:$0x75316420]  ;;  %644 = vst [vmem:[#allocation1 + $0x21] ss:$2 sm:$0xff] %v497_v11  ;;  %v502_v26 = vperm.slane %v385_v17, 0 }
 0x103   : > { %645 = vst [vmem:[#allocation1 + $0x30] ss:$2 sm:$0xff] %v498_v13  ;;  %862 = vxpose.xlu1.b32.cont [4/16] (narrow) %v3813_v43, 16  ;;  %v503_v28 = vperm.slane %v386_v18, 0  ;;  %v504_v29 = vperm.slane %v387_v19, 0  ;;  %v505_v32 = vperm.slane %v388_v22, 0 }
 0x104   : > { %646 = vst [vmem:[#allocation1 + $0x31] ss:$2 sm:$0xff] %v499_v14  ;;  %v506_v33 = vperm.slane %v389_v24, 0  ;;  %v507_v34 = vperm.slane %v390_v25, 0 }
 0x105   : > { %v3832_v27 = vld.sshfl [vmem:[#allocation1] sm:$0xff pattern:$0x75316420] }
 0x106   : > { %651 = vst [vmem:[#allocation1] ss:$2 sm:$0xff] %v500_v21  ;;  %v329_v30 = vpop.trf.xlu0 }
 0x107   : > { %v3834_v31 = vld.sshfl [vmem:[#allocation1 + $0x10] sm:$0xff pattern:$0x75316420]  ;;  %652 = vst [vmem:[#allocation1 + $0x1] ss:$2 sm:$0xff] %v501_v23  ;;  %v391_v35 = vrot.slane %v329_v30, 1 }
 0x108   : > { %653 = vst [vmem:[#allocation1 + $0x10] ss:$2 sm:$0xff] %v502_v26  ;;  %v392_v37 = vrot.slane %v329_v30, 2  ;;  %v393_v38 = vrot.slane %v329_v30, 3  ;;  %v394_v39 = vrot.slane %v329_v30, 4  ;;  %v508_v41 = vperm.slane %v329_v30, 0 }
 0x109   : > { %v3836_v36 = vld.sshfl [vmem:[#allocation1 + $0x20] sm:$0xff pattern:$0x75316420]  ;;  %654 = vst [vmem:[#allocation1 + $0x11] ss:$2 sm:$0xff] %v503_v28  ;;  %v395_v42 = vrot.slane %v329_v30, 5 }
 0x10a   : > { %655 = vst [vmem:[#allocation1 + $0x20] ss:$2 sm:$0xff] %v504_v29  ;;  %v509_v43 = vperm.slane %v391_v35, 0  ;;  %v396_v44 = vrot.slane %v329_v30, 6  ;;  %v397_v45 = vrot.slane %v329_v30, 7  ;;  %v510_v46 = vperm.slane %v392_v37, 0 }
 0x10b   : > { %v3838_v40 = vld.sshfl [vmem:[#allocation1 + $0x30] sm:$0xff pattern:$0x75316420]  ;;  %656 = vst [vmem:[#allocation1 + $0x21] ss:$2 sm:$0xff] %v505_v32  ;;  %863 = vxpose.xlu1.b32.cont [5/16] (narrow) %v3815_v51, 16 }
 0x10c   : > { %657 = vst [vmem:[#allocation1 + $0x30] ss:$2 sm:$0xff] %v506_v33  ;;  %v511_v48 = vperm.slane %v393_v38, 0  ;;  %v512_v50 = vperm.slane %v394_v39, 0  ;;  %v513_v53 = vperm.slane %v395_v42, 0  ;;  %v514_v55 = vperm.slane %v396_v44, 0 }
 0x10d   : > { %658 = vst [vmem:[#allocation1 + $0x31] ss:$2 sm:$0xff] %v507_v34  ;;  %v515_v56 = vperm.slane %v397_v45, 0 }
 0x10e   : > { %v659_v47 = vld.sshfl [vmem:[#allocation1] sm:$0xff pattern:$0x75316420]  ;;  %v330_v49 = vpop.trf.xlu0 }
 0x10f   : > { %663 = vst [vmem:[#allocation1] ss:$2 sm:$0xff] %v508_v41  ;;  %891 = vxpose.xlu2.b32.start [1/16] (narrow) %v659_v47, 16  ;;  %v398_v57 = vrot.slane %v330_v49, 1  ;;  %v399_v60 = vrot.slane %v330_v49, 2  ;;  %v400_v61 = vrot.slane %v330_v49, 3 }
 0x110   : > { %v660_v52 = vld.sshfl [vmem:[#allocation1 + $0x10] sm:$0xff pattern:$0x75316420]  ;;  %664 = vst [vmem:[#allocation1 + $0x1] ss:$2 sm:$0xff] %v509_v43  ;;  %v401_v62 = vrot.slane %v330_v49, 4 }
 0x111   : > { %665 = vst [vmem:[#allocation1 + $0x10] ss:$2 sm:$0xff] %v510_v46  ;;  %v516_v0 = vperm.slane %v330_v49, 0  ;;  %v402_v1 = vrot.slane %v330_v49, 5  ;;  %v517_v2 = vperm.slane %v398_v57, 0  ;;  %v403_v3 = vrot.slane %v330_v49, 6 }
 0x112   : > { %v661_v58 = vld.sshfl [vmem:[#allocation1 + $0x20] sm:$0xff pattern:$0x75316420]  ;;  %666 = vst [vmem:[#allocation1 + $0x11] ss:$2 sm:$0xff] %v511_v48  ;;  %v404_v4 = vrot.slane %v330_v49, 7 }
 0x113   : > { %667 = vst [vmem:[#allocation1 + $0x20] ss:$2 sm:$0xff] %v512_v50  ;;  %864 = vxpose.xlu1.b32.cont [6/16] (narrow) %v3817_v54, 16  ;;  %v518_v5 = vperm.slane %v399_v60, 0  ;;  %v519_v9 = vperm.slane %v400_v61, 0  ;;  %v520_v11 = vperm.slane %v401_v62, 0 }
 0x114   : > { %v3841_v51 = vld.sshfl [vmem:[#allocation1 + $0x30] sm:$0xff pattern:$0x75316420]  ;;  %668 = vst [vmem:[#allocation1 + $0x21] ss:$2 sm:$0xff] %v513_v53  ;;  %v521_v13 = vperm.slane %v402_v1, 0 }
 0x115   : > { %669 = vst [vmem:[#allocation1 + $0x30] ss:$2 sm:$0xff] %v514_v55  ;;  %v522_v14 = vperm.slane %v403_v3, 0  ;;  %v523_v15 = vperm.slane %v404_v4, 0 }
 0x116   : > { %670 = vst [vmem:[#allocation1 + $0x31] ss:$2 sm:$0xff] %v515_v56  ;;  %v331_v6 = vpop.trf.xlu0 }
 0x117   : > { %v3844_v8 = vld.sshfl [vmem:[#allocation1] sm:$0xff pattern:$0x75316420]  ;;  %892 = vxpose.xlu2.b32.cont [2/16] (narrow) %v660_v52, 16  ;;  %v405_v17 = vrot.slane %v331_v6, 1  ;;  %v406_v18 = vrot.slane %v331_v6, 2 }
 0x118   : > { %675 = vst [vmem:[#allocation1] ss:$2 sm:$0xff] %v516_v0  ;;  %v407_v19 = vrot.slane %v331_v6, 3  ;;  %v408_v21 = vrot.slane %v331_v6, 4  ;;  %v524_v22 = vperm.slane %v331_v6, 0  ;;  %v409_v24 = vrot.slane %v331_v6, 5 }
 0x119   : > { %v3846_v12 = vld.sshfl [vmem:[#allocation1 + $0x10] sm:$0xff pattern:$0x75316420]  ;;  %676 = vst [vmem:[#allocation1 + $0x1] ss:$2 sm:$0xff] %v517_v2  ;;  %v525_v25 = vperm.slane %v405_v17, 0 }
 0x11a   : > { %677 = vst [vmem:[#allocation1 + $0x10] ss:$2 sm:$0xff] %v518_v5  ;;  %v410_v26 = vrot.slane %v331_v6, 6  ;;  %v411_v28 = vrot.slane %v331_v6, 7  ;;  %v526_v29 = vperm.slane %v406_v18, 0  ;;  %v527_v32 = vperm.slane %v407_v19, 0 }
 0x11b   : > { %v3848_v54 = vld.sshfl [vmem:[#allocation1 + $0x20] sm:$0xff pattern:$0x75316420]  ;;  %678 = vst [vmem:[#allocation1 + $0x11] ss:$2 sm:$0xff] %v519_v9  ;;  %865 = vxpose.xlu1.b32.cont [7/16] (narrow) %v3819_v59, 16 }
 0x11c   : > { %679 = vst [vmem:[#allocation1 + $0x20] ss:$2 sm:$0xff] %v520_v11  ;;  %v528_v34 = vperm.slane %v408_v21, 0  ;;  %v529_v37 = vperm.slane %v409_v24, 0  ;;  %v530_v38 = vperm.slane %v410_v26, 0  ;;  %v531_v59 = vperm.slane %v411_v28, 0 }
 0x11d   : > { %v3850_v23 = vld.sshfl [vmem:[#allocation1 + $0x30] sm:$0xff pattern:$0x75316420]  ;;  %680 = vst [vmem:[#allocation1 + $0x21] ss:$2 sm:$0xff] %v521_v13 }
 0x11e   : > { %681 = vst [vmem:[#allocation1 + $0x30] ss:$2 sm:$0xff] %v522_v14  ;;  %v332_v33 = vpop.trf.xlu0 }
 0x11f   : > { %682 = vst [vmem:[#allocation1 + $0x31] ss:$2 sm:$0xff] %v523_v15  ;;  %893 = vxpose.xlu2.b32.cont [3/16] (narrow) %v661_v58, 16  ;;  %v412_v39 = vrot.slane %v332_v33, 1  ;;  %v413_v42 = vrot.slane %v332_v33, 2  ;;  %v414_v43 = vrot.slane %v332_v33, 3 }
 0x120   : > { %v3853_v30 = vld.sshfl [vmem:[#allocation1] sm:$0xff pattern:$0x75316420]  ;;  %v415_v44 = vrot.slane %v332_v33, 4  ;;  %v532_v46 = vperm.slane %v332_v33, 0  ;;  %v416_v47 = vrot.slane %v332_v33, 5 }
 0x121   : > { %687 = vst [vmem:[#allocation1] ss:$2 sm:$0xff] %v524_v22  ;;  %v533_v48 = vperm.slane %v412_v39, 0  ;;  %v417_v49 = vrot.slane %v332_v33, 6  ;;  %v418_v50 = vrot.slane %v332_v33, 7  ;;  %v534_v52 = vperm.slane %v413_v42, 0 }
 0x122   : > { %v3855_v35 = vld.sshfl [vmem:[#allocation1 + $0x10] sm:$0xff pattern:$0x75316420]  ;;  %688 = vst [vmem:[#allocation1 + $0x1] ss:$2 sm:$0xff] %v525_v25  ;;  %v535_v55 = vperm.slane %v414_v43, 0 }
 0x123   : > { %689 = vst [vmem:[#allocation1 + $0x10] ss:$2 sm:$0xff] %v526_v29  ;;  %866 = vxpose.xlu1.b32.cont [8/16] (narrow) %v3821_v63, 16  ;;  %v536_v57 = vperm.slane %v415_v44, 0  ;;  %v537_v58 = vperm.slane %v416_v47, 0  ;;  %v538_v60 = vperm.slane %v417_v49, 0 }
 0x124   : > { %v3857_v41 = vld.sshfl [vmem:[#allocation1 + $0x20] sm:$0xff pattern:$0x75316420]  ;;  %690 = vst [vmem:[#allocation1 + $0x11] ss:$2 sm:$0xff] %v527_v32  ;;  %v539_v61 = vperm.slane %v418_v50, 0 }
 0x125   : > { %691 = vst [vmem:[#allocation1 + $0x20] ss:$2 sm:$0xff] %v528_v34 }
 0x126   : > { %v3860_v45 = vld.sshfl [vmem:[#allocation1 + $0x30] sm:$0xff pattern:$0x75316420]  ;;  %692 = vst [vmem:[#allocation1 + $0x21] ss:$2 sm:$0xff] %v529_v37  ;;  %v333_v56 = vpop.trf.xlu0 }
 0x127   : > { %693 = vst [vmem:[#allocation1 + $0x30] ss:$2 sm:$0xff] %v530_v38  ;;  %894 = vxpose.xlu2.b32.cont [4/16] (narrow) %v3841_v51, 16  ;;  %v419_v62 = vrot.slane %v333_v56, 1  ;;  %v420_v0 = vrot.slane %v333_v56, 2  ;;  %v421_v1 = vrot.slane %v333_v56, 3 }
 0x128   : > { %694 = vst [vmem:[#allocation1 + $0x31] ss:$2 sm:$0xff] %v531_v59  ;;  %v422_v2 = vrot.slane %v333_v56, 4  ;;  %v540_v3 = vperm.slane %v333_v56, 0  ;;  %v423_v5 = vrot.slane %v333_v56, 5  ;;  %v424_v9 = vrot.slane %v333_v56, 6 }
 0x129   : > { %v3863_v53 = vld.sshfl [vmem:[#allocation1] sm:$0xff pattern:$0x75316420]  ;;  %v541_v6 = vperm.slane %v419_v62, 0  ;;  %v425_v11 = vrot.slane %v333_v56, 7  ;;  %v542_v13 = vperm.slane %v420_v0, 0 }
 0x12a   : > { %699 = vst [vmem:[#allocation1] ss:$2 sm:$0xff] %v532_v46  ;;  %v543_v15 = vperm.slane %v421_v1, 0  ;;  %v545_v19 = vperm.slane %v423_v5, 0  ;;  %v546_v21 = vperm.slane %v424_v9, 0 }
 0x12b   : > { %v3865_v63 = vld.sshfl [vmem:[#allocation1 + $0x10] sm:$0xff pattern:$0x75316420]  ;;  %700 = vst [vmem:[#allocation1 + $0x1] ss:$2 sm:$0xff] %v533_v48  ;;  %867 = vxpose.xlu1.b32.cont [9/16] (narrow) %v3823_v7, 16 }
 0x12c   : > { %701 = vst [vmem:[#allocation1 + $0x10] ss:$2 sm:$0xff] %v534_v52  ;;  %v544_v7 = vperm.slane %v422_v2, 0 }
 0x12d   : > { %v3867_v51 = vld.sshfl [vmem:[#allocation1 + $0x20] sm:$0xff pattern:$0x75316420]  ;;  %702 = vst [vmem:[#allocation1 + $0x11] ss:$2 sm:$0xff] %v535_v55 }
 0x12e   : > { %703 = vst [vmem:[#allocation1 + $0x20] ss:$2 sm:$0xff] %v536_v57  ;;  %v334_v17 = vpop.trf.xlu0 }
 0x12f   : > { %v3870_v4 = vld.sshfl [vmem:[#allocation1 + $0x30] sm:$0xff pattern:$0x75316420]  ;;  %704 = vst [vmem:[#allocation1 + $0x21] ss:$2 sm:$0xff] %v537_v58  ;;  %895 = vxpose.xlu2.b32.cont [5/16] (narrow) %v3844_v8, 16 }
 0x130   : > { %705 = vst [vmem:[#allocation1 + $0x30] ss:$2 sm:$0xff] %v538_v60  ;;  %v547_v8 = vperm.slane %v425_v11, 0  ;;  %v426_v22 = vrot.slane %v334_v17, 1  ;;  %v427_v25 = vrot.slane %v334_v17, 2  ;;  %v428_v26 = vrot.slane %v334_v17, 3 }
 0x131   : > { %706 = vst [vmem:[#allocation1 + $0x31] ss:$2 sm:$0xff] %v539_v61  ;;  %v429_v28 = vrot.slane %v334_v17, 4  ;;  %v430_v29 = vrot.slane %v334_v17, 5  ;;  %v548_v33 = vperm.slane %v334_v17, 0  ;;  %v432_v37 = vrot.slane %v334_v17, 7 }
 0x132   : > { %v707_v14 = vld.sshfl [vmem:[#allocation1] sm:$0xff pattern:$0x75316420]  ;;  %v549_v34 = vperm.slane %v426_v22, 0  ;;  %v550_v38 = vperm.slane %v427_v25, 0  ;;  %v551_v39 = vperm.slane %v428_v26, 0 }
 0x133   : > { %923 = vxpose.xlu0.b32.start [1/16] (narrow) %v707_v14, 16  ;;  %711 = vst [vmem:[#allocation1] ss:$2 sm:$0xff] %v540_v3  ;;  %868 = vxpose.xlu1.b32.cont [10/16] (narrow) %v3825_v10, 16  ;;  %v431_v10 = vrot.slane %v334_v17, 6  ;;  %v553_v43 = vperm.slane %v430_v29, 0 }
 0x134   : > { %v708_v18 = vld.sshfl [vmem:[#allocation1 + $0x10] sm:$0xff pattern:$0x75316420]  ;;  %712 = vst [vmem:[#allocation1 + $0x1] ss:$2 sm:$0xff] %v541_v6  ;;  %v555_v47 = vperm.slane %v432_v37, 0 }
 0x135   : > { %713 = vst [vmem:[#allocation1 + $0x10] ss:$2 sm:$0xff] %v542_v13  ;;  %v554_v46 = vperm.slane %v431_v10, 0 }
 0x136   : > { %v709_v24 = vld.sshfl [vmem:[#allocation1 + $0x20] sm:$0xff pattern:$0x75316420]  ;;  %714 = vst [vmem:[#allocation1 + $0x11] ss:$2 sm:$0xff] %v543_v15  ;;  %v335_v42 = vpop.trf.xlu0 }
 0x137   : > { %896 = vxpose.xlu2.b32.cont [6/16] (narrow) %v3846_v12, 16  ;;  %715 = vst [vmem:[#allocation1 + $0x20] ss:$2 sm:$0xff] %v544_v7  ;;  %v552_v12 = vperm.slane %v429_v28, 0  ;;  %v433_v48 = vrot.slane %v335_v42, 1  ;;  %v434_v49 = vrot.slane %v335_v42, 2 }
 0x138   : > { %v3875_v32 = vld.sshfl [vmem:[#allocation1 + $0x30] sm:$0xff pattern:$0x75316420]  ;;  %716 = vst [vmem:[#allocation1 + $0x21] ss:$2 sm:$0xff] %v545_v19  ;;  %v435_v52 = vrot.slane %v335_v42, 3 }
 0x139   : > { %717 = vst [vmem:[#allocation1 + $0x30] ss:$2 sm:$0xff] %v546_v21  ;;  %v436_v55 = vrot.slane %v335_v42, 4  ;;  %v437_v57 = vrot.slane %v335_v42, 5  ;;  %v557_v58 = vperm.slane %v433_v48, 0  ;;  %v438_v60 = vrot.slane %v335_v42, 6 }
 0x13a   : > { %718 = vst [vmem:[#allocation1 + $0x31] ss:$2 sm:$0xff] %v547_v8  ;;  %v439_v61 = vrot.slane %v335_v42, 7  ;;  %v558_v62 = vperm.slane %v434_v49, 0  ;;  %v559_v1 = vperm.slane %v435_v52, 0 }
 0x13b   : > { %924 = vxpose.xlu0.b32.cont [2/16] (narrow) %v708_v18, 16  ;;  %v3877_v59 = vld.sshfl [vmem:[#allocation1] sm:$0xff pattern:$0x75316420]  ;;  %869 = vxpose.xlu1.b32.cont [11/16] (narrow) %v3827_v16, 16  ;;  %v556_v16 = vperm.slane %v335_v42, 0 }
 0x13c   : > { %723 = vst [vmem:[#allocation1] ss:$2 sm:$0xff] %v548_v33  ;;  %v560_v2 = vperm.slane %v436_v55, 0  ;;  %v561_v5 = vperm.slane %v437_v57, 0  ;;  %v562_v6 = vperm.slane %v438_v60, 0  ;;  %v563_v9 = vperm.slane %v439_v61, 0 }
 0x13d   : > { %v3880_v44 = vld.sshfl [vmem:[#allocation1 + $0x10] sm:$0xff pattern:$0x75316420]  ;;  %724 = vst [vmem:[#allocation1 + $0x1] ss:$2 sm:$0xff] %v549_v34 }
 0x13e   : > { %725 = vst [vmem:[#allocation1 + $0x10] ss:$2 sm:$0xff] %v550_v38  ;;  %v336_v0 = vpop.trf.xlu0 }
 0x13f   : > { %897 = vxpose.xlu2.b32.cont [7/16] (narrow) %v3848_v54, 16  ;;  %v3883_v50 = vld.sshfl [vmem:[#allocation1 + $0x20] sm:$0xff pattern:$0x75316420]  ;;  %726 = vst [vmem:[#allocation1 + $0x11] ss:$2 sm:$0xff] %v551_v39 }
 0x140   : > { %727 = vst [vmem:[#allocation1 + $0x20] ss:$2 sm:$0xff] %v552_v12  ;;  %v440_v11 = vrot.slane %v336_v0, 1  ;;  %v441_v14 = vrot.slane %v336_v0, 2  ;;  %v442_v15 = vrot.slane %v336_v0, 3  ;;  %v443_v7 = vrot.slane %v336_v0, 4 }
 0x141   : > { %v3885_v56 = vld.sshfl [vmem:[#allocation1 + $0x30] sm:$0xff pattern:$0x75316420]  ;;  %728 = vst [vmem:[#allocation1 + $0x21] ss:$2 sm:$0xff] %v553_v43  ;;  %v564_v18 = vperm.slane %v336_v0, 0 }
 0x142   : > { %729 = vst [vmem:[#allocation1 + $0x30] ss:$2 sm:$0xff] %v554_v46  ;;  %v445_v21 = vrot.slane %v336_v0, 6  ;;  %v446_v8 = vrot.slane %v336_v0, 7  ;;  %v566_v22 = vperm.slane %v441_v14, 0  ;;  %v567_v25 = vperm.slane %v442_v15, 0 }
 0x143   : > { %925 = vxpose.xlu0.b32.cont [3/16] (narrow) %v709_v24, 16  ;;  %730 = vst [vmem:[#allocation1 + $0x31] ss:$2 sm:$0xff] %v555_v47  ;;  %870 = vxpose.xlu1.b32.cont [12/16] (narrow) %v3829_v20, 16  ;;  %v444_v20 = vrot.slane %v336_v0, 5  ;;  %v568_v26 = vperm.slane %v443_v7, 0 }
 0x144   : > { %v3887_v54 = vld.sshfl [vmem:[#allocation1] sm:$0xff pattern:$0x75316420]  ;;  %v571_v33 = vperm.slane %v446_v8, 0 }
 0x145   : > { %735 = vst [vmem:[#allocation1] ss:$2 sm:$0xff] %v556_v16  ;;  %v569_v28 = vperm.slane %v444_v20, 0 }
 0x146   : > { %v3890_v3 = vld.sshfl [vmem:[#allocation1 + $0x10] sm:$0xff pattern:$0x75316420]  ;;  %736 = vst [vmem:[#allocation1 + $0x1] ss:$2 sm:$0xff] %v557_v58  ;;  %v337_v19 = vpop.trf.xlu0 }
 0x147   : > { %898 = vxpose.xlu2.b32.cont [8/16] (narrow) %v3850_v23, 16  ;;  %737 = vst [vmem:[#allocation1 + $0x10] ss:$2 sm:$0xff] %v558_v62  ;;  %v565_v23 = vperm.slane %v440_v11, 0  ;;  %v447_v34 = vrot.slane %v337_v19, 1  ;;  %v448_v37 = vrot.slane %v337_v19, 2 }
 0x148   : > { %v3893_v13 = vld.sshfl [vmem:[#allocation1 + $0x20] sm:$0xff pattern:$0x75316420]  ;;  %738 = vst [vmem:[#allocation1 + $0x11] ss:$2 sm:$0xff] %v559_v1  ;;  %v450_v38 = vrot.slane %v337_v19, 4 }
 0x149   : > { %739 = vst [vmem:[#allocation1 + $0x20] ss:$2 sm:$0xff] %v560_v2  ;;  %v572_v39 = vperm.slane %v337_v19, 0  ;;  %v573_v12 = vperm.slane %v447_v34, 0  ;;  %v452_v43 = vrot.slane %v337_v19, 6  ;;  %v453_v46 = vrot.slane %v337_v19, 7 }
 0x14a   : > { %v3895_v17 = vld.sshfl [vmem:[#allocation1 + $0x30] sm:$0xff pattern:$0x75316420]  ;;  %740 = vst [vmem:[#allocation1 + $0x21] ss:$2 sm:$0xff] %v561_v5  ;;  %v574_v47 = vperm.slane %v448_v37, 0 }
 0x14b   : > { %926 = vxpose.xlu0.b32.cont [4/16] (narrow) %v3875_v32, 16  ;;  %741 = vst [vmem:[#allocation1 + $0x30] ss:$2 sm:$0xff] %v562_v6  ;;  %871 = vxpose.xlu1.b32.cont [13/16] (narrow) %v3832_v27, 16  ;;  %v570_v32 = vperm.slane %v445_v21, 0  ;;  %v449_v27 = vrot.slane %v337_v19, 3 }
 0x14c   : > { %742 = vst [vmem:[#allocation1 + $0x31] ss:$2 sm:$0xff] %v563_v9  ;;  %v576_v55 = vperm.slane %v450_v38, 0  ;;  %v578_v57 = vperm.slane %v452_v43, 0  ;;  %v579_v58 = vperm.slane %v453_v46, 0 }
 0x14d   : > { %v3899_v24 = vld.sshfl [vmem:[#allocation1] sm:$0xff pattern:$0x75316420]  ;;  %v575_v52 = vperm.slane %v449_v27, 0 }
 0x14e   : > { %747 = vst [vmem:[#allocation1] ss:$2 sm:$0xff] %v564_v18  ;;  %v338_v48 = vpop.trf.xlu0 }
 0x14f   : > { %899 = vxpose.xlu2.b32.cont [9/16] (narrow) %v3853_v30, 16  ;;  %v3902_v29 = vld.sshfl [vmem:[#allocation1 + $0x10] sm:$0xff pattern:$0x75316420]  ;;  %748 = vst [vmem:[#allocation1 + $0x1] ss:$2 sm:$0xff] %v565_v23 }
 0x150   : > { %749 = vst [vmem:[#allocation1 + $0x10] ss:$2 sm:$0xff] %v566_v22  ;;  %v451_v30 = vrot.slane %v337_v19, 5  ;;  %v455_v61 = vrot.slane %v338_v48, 2  ;;  %v456_v62 = vrot.slane %v338_v48, 3  ;;  %v457_v0 = vrot.slane %v338_v48, 4 }
 0x151   : > { %v3904_v10 = vld.sshfl [vmem:[#allocation1 + $0x20] sm:$0xff pattern:$0x75316420]  ;;  %750 = vst [vmem:[#allocation1 + $0x11] ss:$2 sm:$0xff] %v567_v25  ;;  %v580_v1 = vperm.slane %v338_v48, 0 }
 0x152   : > { %751 = vst [vmem:[#allocation1 + $0x20] ss:$2 sm:$0xff] %v568_v26  ;;  %v577_v16 = vperm.slane %v451_v30, 0  ;;  %v458_v2 = vrot.slane %v338_v48, 5  ;;  %v459_v6 = vrot.slane %v338_v48, 6  ;;  %v460_v9 = vrot.slane %v338_v48, 7  ;;  %v1003_v26 = vpop.trf.xlu2 }
 0x153   : > { %927 = vxpose.xlu0.b32.cont [5/16] (narrow) %v3877_v59, 16  ;;  %v3907_v42 = vld.sshfl [vmem:[#allocation1 + $0x30] sm:$0xff pattern:$0x75316420]  ;;  %752 = vst [vmem:[#allocation1 + $0x21] ss:$2 sm:$0xff] %v569_v28 }
 0x154   : > { %753 = vst [vmem:[#allocation1 + $0x30] ss:$2 sm:$0xff] %v570_v32  ;;  %872 = vxpose.xlu1.b32.cont [14/16] (narrow) %v3834_v31, 16  ;;  %v454_v31 = vrot.slane %v338_v48, 1  ;;  %v582_v11 = vperm.slane %v455_v61, 0  ;;  %v584_v7 = vperm.slane %v457_v0, 0 }
 0x155   : > { %754 = vst [vmem:[#allocation1 + $0x31] ss:$2 sm:$0xff] %v571_v33  ;;  %v585_v18 = vperm.slane %v458_v2, 0  ;;  %v587_v23 = vperm.slane %v460_v9, 0  ;;  %v1035_v46 = vrot.slane %v1003_v26, 1  ;;  %v1037_v48 = vrot.slane %v1003_v26, 3 }
 0x156   : > { %v3910_v49 = vld.sshfl [vmem:[#allocation1] sm:$0xff pattern:$0x75316420]  ;;  %v581_v5 = vperm.slane %v454_v31, 0  ;;  %v339_v15 = vpop.trf.xlu0  ;;  %v1040_v31 = vrot.slane %v1003_v26, 6  ;;  %v1041_v61 = vrot.slane %v1003_v26, 7 }
 0x157   : > { %900 = vxpose.xlu2.b32.cont [10/16] (narrow) %v3855_v35, 16  ;;  %759 = vst [vmem:[#allocation1] ss:$2 sm:$0xff] %v572_v39  ;;  %v461_v19 = vrot.slane %v339_v15, 1  ;;  %v462_v21 = vrot.slane %v339_v15, 2  ;;  %v464_v22 = vrot.slane %v339_v15, 4 }
 0x158   : > { %v3913_v59 = vld.sshfl [vmem:[#allocation1 + $0x10] sm:$0xff pattern:$0x75316420]  ;;  %760 = vst [vmem:[#allocation1 + $0x1] ss:$2 sm:$0xff] %v573_v12  ;;  %v588_v25 = vperm.slane %v339_v15, 0 }
 0x159   : > { %761 = vst [vmem:[#allocation1 + $0x10] ss:$2 sm:$0xff] %v574_v47  ;;  %v465_v32 = vrot.slane %v339_v15, 5  ;;  %v589_v33 = vperm.slane %v461_v19, 0  ;;  %v467_v34 = vrot.slane %v339_v15, 7  ;;  %v590_v37 = vperm.slane %v462_v21, 0 }
 0x15a   : > { %v3915_v60 = vld.sshfl [vmem:[#allocation1 + $0x20] sm:$0xff pattern:$0x75316420]  ;;  %762 = vst [vmem:[#allocation1 + $0x11] ss:$2 sm:$0xff] %v575_v52  ;;  %v592_v39 = vperm.slane %v464_v22, 0 }
 0x15b   : > { %928 = vxpose.xlu0.b32.cont [6/16] (narrow) %v3880_v44, 16  ;;  %763 = vst [vmem:[#allocation1 + $0x20] ss:$2 sm:$0xff] %v576_v55  ;;  %v583_v44 = vperm.slane %v456_v62, 0  ;;  %v595_v43 = vperm.slane %v467_v34, 0  ;;  %v1036_v47 = vrot.slane %v1003_v26, 2 }
 0x15c   : > { %v3918_v35 = vld.sshfl [vmem:[#allocation1 + $0x30] sm:$0xff pattern:$0x75316420]  ;;  %764 = vst [vmem:[#allocation1 + $0x21] ss:$2 sm:$0xff] %v577_v16  ;;  %873 = vxpose.xlu1.b32.cont [15/16] (narrow) %v3836_v36, 16 }
 0x15d   : > { %765 = vst [vmem:[#allocation1 + $0x30] ss:$2 sm:$0xff] %v578_v57  ;;  %v586_v36 = vperm.slane %v459_v6, 0  ;;  %v1038_v52 = vrot.slane %v1003_v26, 4  ;;  %v1039_v55 = vrot.slane %v1003_v26, 5  ;;  %v1147_v57 = vperm.slane %v1003_v26, 0 }
 0x15e   : > { %766 = vst [vmem:[#allocation1 + $0x31] ss:$2 sm:$0xff] %v579_v58  ;;  %v1004_v58 = vpop.trf.xlu2  ;;  %v1149_v62 = vperm.slane %v1036_v47, 0  ;;  %v1153_v6 = vperm.slane %v1040_v31, 0  ;;  %v1154_v9 = vperm.slane %v1041_v61, 0 }
 0x15f   : > { %901 = vxpose.xlu2.b32.cont [11/16] (narrow) %v3857_v41, 16  ;;  %v3922_v14 = vld.sshfl [vmem:[#allocation1] sm:$0xff pattern:$0x75316420]  ;;  %v463_v41 = vrot.slane %v339_v15, 3  ;;  %v1152_v2 = vperm.slane %v1039_v55, 0 }
 0x160   : > { %771 = vst [vmem:[#allocation1] ss:$2 sm:$0xff] %v580_v1  ;;  %v1151_v1 = vperm.slane %v1038_v52, 0  ;;  %v1047_v21 = vrot.slane %v1004_v58, 6 }
 0x161   : > { %v3924_v20 = vld.sshfl [vmem:[#allocation1 + $0x10] sm:$0xff pattern:$0x75316420]  ;;  %772 = vst [vmem:[#allocation1 + $0x1] ss:$2 sm:$0xff] %v581_v5  ;;  %v591_v38 = vperm.slane %v463_v41, 0 }
 0x162   : > { %773 = vst [vmem:[#allocation1 + $0x10] ss:$2 sm:$0xff] %v582_v11  ;;  %v1043_v11 = vrot.slane %v1004_v58, 2  ;;  %v1048_v41 = vrot.slane %v1004_v58, 7 }
 0x163   : > { %929 = vxpose.xlu0.b32.cont [7/16] (narrow) %v3883_v50, 16  ;;  %v3927_v8 = vld.sshfl [vmem:[#allocation1 + $0x20] sm:$0xff pattern:$0x75316420]  ;;  %774 = vst [vmem:[#allocation1 + $0x11] ss:$2 sm:$0xff] %v583_v44 }
 0x164   : > { %775 = vst [vmem:[#allocation1 + $0x20] ss:$2 sm:$0xff] %v584_v7  ;;  %874 = vxpose.xlu1.b32.end [16/16] (narrow) %v3838_v40, 16  ;;  %v466_v50 = vrot.slane %v339_v15, 6  ;;  %v593_v40 = vperm.slane %v465_v32, 0  ;;  %v1044_v15 = vrot.slane %v1004_v58, 3 }
 0x165   : > { %v3930_v28 = vld.sshfl [vmem:[#allocation1 + $0x30] sm:$0xff pattern:$0x75316420]  ;;  %776 = vst [vmem:[#allocation1 + $0x21] ss:$2 sm:$0xff] %v585_v18  ;;  %v1045_v7 = vrot.slane %v1004_v58, 4 }
 0x166   : > { %777 = vst [vmem:[#allocation1 + $0x30] ss:$2 sm:$0xff] %v586_v36  ;;  %v594_v12 = vperm.slane %v466_v50, 0  ;;  %v1155_v18 = vperm.slane %v1004_v58, 0  ;;  %v1046_v36 = vrot.slane %v1004_v58, 5  ;;  %v1005_v19 = vpop.trf.xlu2  ;;  %v1162_v50 = vperm.slane %v1048_v41, 0 }
 0x167   : > { %902 = vxpose.xlu2.b32.cont [12/16] (narrow) %v3860_v45, 16  ;;  %778 = vst [vmem:[#allocation1 + $0x31] ss:$2 sm:$0xff] %v587_v23  ;;  %v1159_v26 = vperm.slane %v1045_v7, 0  ;;  %v1049_v34 = vrot.slane %v1005_v19, 1  ;;  %v1055_v47 = vrot.slane %v1005_v19, 7 }
 0x168   : > { %v3933_v27 = vld.sshfl [vmem:[#allocation1] sm:$0xff pattern:$0x75316420] }
 0x169   : > { %783 = vst [vmem:[#allocation1] ss:$2 sm:$0xff] %v588_v25  ;;  %v1158_v25 = vperm.slane %v1044_v15, 0  ;;  %v1170_v61 = vperm.slane %v1055_v47, 0 }
 0x16a   : > { %v3935_v30 = vld.sshfl [vmem:[#allocation1 + $0x10] sm:$0xff pattern:$0x75316420]  ;;  %784 = vst [vmem:[#allocation1 + $0x1] ss:$2 sm:$0xff] %v589_v33  ;;  %v1161_v33 = vperm.slane %v1047_v21, 0 }
 0x16b   : > { %930 = vxpose.xlu0.b32.cont [8/16] (narrow) %v3885_v56, 16  ;;  %785 = vst [vmem:[#allocation1 + $0x10] ss:$2 sm:$0xff] %v590_v37  ;;  %v1148_v56 = vperm.slane %v1035_v46, 0  ;;  %v1054_v46 = vrot.slane %v1005_v19, 6 }
 0x16c   : > { %v3938_v45 = vld.sshfl [vmem:[#allocation1 + $0x20] sm:$0xff pattern:$0x75316420]  ;;  %786 = vst [vmem:[#allocation1 + $0x11] ss:$2 sm:$0xff] %v591_v38  ;;  %955 = vxpose.xlu1.b32.start [1/16] (narrow) %v3910_v49, 16 }
 0x16d   : > { %787 = vst [vmem:[#allocation1 + $0x20] ss:$2 sm:$0xff] %v592_v39  ;;  %v1150_v49 = vperm.slane %v1037_v48, 0  ;;  %v1050_v38 = vrot.slane %v1005_v19, 2  ;;  %v1052_v39 = vrot.slane %v1005_v19, 4  ;;  %v1169_v31 = vperm.slane %v1054_v46, 0 }
 0x16e   : > { %v3941_v16 = vld.sshfl [vmem:[#allocation1 + $0x30] sm:$0xff pattern:$0x75316420]  ;;  %788 = vst [vmem:[#allocation1 + $0x21] ss:$2 sm:$0xff] %v593_v40  ;;  %v1053_v40 = vrot.slane %v1005_v19, 5  ;;  %v1006_v52 = vpop.trf.xlu2 }
 0x16f   : > { %903 = vxpose.xlu2.b32.cont [13/16] (narrow) %v3863_v53, 16  ;;  %789 = vst [vmem:[#allocation1 + $0x30] ss:$2 sm:$0xff] %v594_v12  ;;  %v1042_v53 = vrot.slane %v1004_v58, 1  ;;  %v1165_v48 = vperm.slane %v1050_v38, 0  ;;  %v1062_v15 = vrot.slane %v1006_v52, 7 }
 0x170   : > { %790 = vst [vmem:[#allocation1 + $0x31] ss:$2 sm:$0xff] %v595_v43  ;;  %v1163_v43 = vperm.slane %v1005_v19, 0  ;;  %v1168_v58 = vperm.slane %v1053_v40, 0 }
 0x171   : > { %v3944_v0 = vld.sshfl [vmem:[#allocation1] sm:$0xff pattern:$0x75316420]  ;;  %v1156_v23 = vperm.slane %v1042_v53, 0 }
 0x172   : > { %1275 = vst [vmem:[#allocation1] ss:$2 sm:$0xff] %v1147_v57  ;;  %v1167_v57 = vperm.slane %v1052_v39, 0 }
 0x173   : > { %931 = vxpose.xlu0.b32.cont [9/16] (narrow) %v3887_v54, 16  ;;  %v3947_v5 = vld.sshfl [vmem:[#allocation1 + $0x10] sm:$0xff pattern:$0x75316420]  ;;  %1277 = vst [vmem:[#allocation1 + $0x1] ss:$2 sm:$0xff] %v1148_v56 }
 0x174   : > { %1279 = vst [vmem:[#allocation1 + $0x10] ss:$2 sm:$0xff] %v1149_v62  ;;  %956 = vxpose.xlu1.b32.cont [2/16] (narrow) %v3913_v59, 16  ;;  %v1157_v59 = vperm.slane %v1043_v11, 0  ;;  %v1056_v62 = vrot.slane %v1006_v52, 1  ;;  %v1061_v11 = vrot.slane %v1006_v52, 6 }
 0x175   : > { %v3950_v44 = vld.sshfl [vmem:[#allocation1 + $0x20] sm:$0xff pattern:$0x75316420]  ;;  %1281 = vst [vmem:[#allocation1 + $0x11] ss:$2 sm:$0xff] %v1150_v49  ;;  %v1057_v49 = vrot.slane %v1006_v52, 2 }
 0x176   : > { %1283 = vst [vmem:[#allocation1 + $0x20] ss:$2 sm:$0xff] %v1151_v1  ;;  %v1172_v53 = vperm.slane %v1056_v62, 0  ;;  %v1177_v41 = vperm.slane %v1061_v11, 0 }
 0x177   : > { %904 = vxpose.xlu2.b32.cont [14/16] (narrow) %v3865_v63, 16  ;;  %v3953_v54 = vld.sshfl [vmem:[#allocation1 + $0x30] sm:$0xff pattern:$0x75316420]  ;;  %1285 = vst [vmem:[#allocation1 + $0x21] ss:$2 sm:$0xff] %v1152_v2 }
 0x178   : > { %1287 = vst [vmem:[#allocation1 + $0x30] ss:$2 sm:$0xff] %v1153_v6  ;;  %v1160_v63 = vperm.slane %v1046_v36, 0  ;;  %v1059_v2 = vrot.slane %v1006_v52, 4  ;;  %v1173_v7 = vperm.slane %v1057_v49, 0  ;;  %v1007_v36 = vpop.trf.xlu2 }
 0x179   : > { %1289 = vst [vmem:[#allocation1 + $0x31] ss:$2 sm:$0xff] %v1154_v9  ;;  %v1060_v9 = vrot.slane %v1006_v52, 5  ;;  %v1068_v38 = vrot.slane %v1007_v36, 6  ;;  %v1069_v40 = vrot.slane %v1007_v36, 7 }
 0x17a   : > { %v3955_v22 = vld.sshfl [vmem:[#allocation1] sm:$0xff pattern:$0x75316420] }
 0x17b   : > { %932 = vxpose.xlu0.b32.cont [10/16] (narrow) %v3890_v3, 16  ;;  %1294 = vst [vmem:[#allocation1] ss:$2 sm:$0xff] %v1155_v18  ;;  %v1051_v3 = vrot.slane %v1005_v19, 3  ;;  %v1176_v21 = vperm.slane %v1060_v9, 0 }
 0x17c   : > { %v3958_v32 = vld.sshfl [vmem:[#allocation1 + $0x10] sm:$0xff pattern:$0x75316420]  ;;  %1295 = vst [vmem:[#allocation1 + $0x1] ss:$2 sm:$0xff] %v1156_v23  ;;  %957 = vxpose.xlu1.b32.cont [3/16] (narrow) %v3915_v60, 16 }
 0x17d   : > { %1296 = vst [vmem:[#allocation1 + $0x10] ss:$2 sm:$0xff] %v1157_v59  ;;  %v1164_v60 = vperm.slane %v1049_v34, 0  ;;  %v1175_v23 = vperm.slane %v1059_v2, 0  ;;  %v1063_v59 = vrot.slane %v1007_v36, 1  ;;  %v1179_v34 = vperm.slane %v1007_v36, 0 }
 0x17e   : > { %v3961_v37 = vld.sshfl [vmem:[#allocation1 + $0x20] sm:$0xff pattern:$0x75316420]  ;;  %1297 = vst [vmem:[#allocation1 + $0x11] ss:$2 sm:$0xff] %v1158_v25 }
 0x17f   : > { %905 = vxpose.xlu2.b32.cont [15/16] (narrow) %v3867_v51, 16  ;;  %1298 = vst [vmem:[#allocation1 + $0x20] ss:$2 sm:$0xff] %v1159_v26  ;;  %v1166_v51 = vperm.slane %v1051_v3, 0  ;;  %v1064_v26 = vrot.slane %v1007_v36, 2 }
 0x180   : > { %v3964_v12 = vld.sshfl [vmem:[#allocation1 + $0x30] sm:$0xff pattern:$0x75316420]  ;;  %1299 = vst [vmem:[#allocation1 + $0x21] ss:$2 sm:$0xff] %v1160_v63  ;;  %v1065_v63 = vrot.slane %v1007_v36, 3 }
 0x181   : > { %1300 = vst [vmem:[#allocation1 + $0x30] ss:$2 sm:$0xff] %v1161_v33  ;;  %v1066_v33 = vrot.slane %v1007_v36, 4  ;;  %v1181_v3 = vperm.slane %v1064_v26, 0 }
 0x182   : > { %1301 = vst [vmem:[#allocation1 + $0x31] ss:$2 sm:$0xff] %v1162_v50 }
 0x183   : > { %933 = vxpose.xlu0.b32.cont [11/16] (narrow) %v3893_v13, 16  ;;  %v3967_v55 = vld.sshfl [vmem:[#allocation1] sm:$0xff pattern:$0x75316420]  ;;  %v1058_v13 = vrot.slane %v1006_v52, 3 }
 0x184   : > { %1306 = vst [vmem:[#allocation1] ss:$2 sm:$0xff] %v1163_v43  ;;  %958 = vxpose.xlu1.b32.cont [4/16] (narrow) %v3918_v35, 16  ;;  %v1171_v35 = vperm.slane %v1006_v52, 0  ;;  %v1182_v43 = vperm.slane %v1065_v63, 0  ;;  %v1186_v52 = vperm.slane %v1069_v40, 0 }
 0x185   : > { %v3970_v56 = vld.sshfl [vmem:[#allocation1 + $0x10] sm:$0xff pattern:$0x75316420]  ;;  %1307 = vst [vmem:[#allocation1 + $0x1] ss:$2 sm:$0xff] %v1164_v60  ;;  %v1174_v18 = vperm.slane %v1058_v13, 0 }
 0x186   : > { %1308 = vst [vmem:[#allocation1 + $0x10] ss:$2 sm:$0xff] %v1165_v48  ;;  %v1183_v60 = vperm.slane %v1066_v33, 0 }
 0x187   : > { %906 = vxpose.xlu2.b32.end [16/16] (narrow) %v3870_v4, 16  ;;  %v3973_v1 = vld.sshfl [vmem:[#allocation1 + $0x20] sm:$0xff pattern:$0x75316420]  ;;  %1309 = vst [vmem:[#allocation1 + $0x11] ss:$2 sm:$0xff] %v1166_v51 }
 0x188   : > { %1310 = vst [vmem:[#allocation1 + $0x20] ss:$2 sm:$0xff] %v1167_v57 }
 0x189   : > { %v3975_v6 = vld.sshfl [vmem:[#allocation1 + $0x30] sm:$0xff pattern:$0x75316420]  ;;  %1311 = vst [vmem:[#allocation1 + $0x21] ss:$2 sm:$0xff] %v1168_v58 }
 0x18a   : > { %1312 = vst [vmem:[#allocation1 + $0x30] ss:$2 sm:$0xff] %v1169_v31 }
 0x18b   : > { %934 = vxpose.xlu0.b32.cont [12/16] (narrow) %v3895_v17, 16  ;;  %1313 = vst [vmem:[#allocation1 + $0x31] ss:$2 sm:$0xff] %v1170_v61  ;;  %v1178_v17 = vperm.slane %v1062_v15, 0 }
 0x18c   : > { %v3978_v4 = vld.sshfl [vmem:[#allocation1] sm:$0xff pattern:$0x75316420]  ;;  %959 = vxpose.xlu1.b32.cont [5/16] (narrow) %v3922_v14, 16  ;;  %v1067_v14 = vrot.slane %v1007_v36, 5 }
 0x18d   : > { %1318 = vst [vmem:[#allocation1] ss:$2 sm:$0xff] %v1171_v35 }
 0x18e   : > { %v3981_v19 = vld.sshfl [vmem:[#allocation1 + $0x10] sm:$0xff pattern:$0x75316420]  ;;  %1319 = vst [vmem:[#allocation1 + $0x1] ss:$2 sm:$0xff] %v1172_v53  ;;  %v1184_v46 = vperm.slane %v1067_v14, 0 }
 0x18f   : > { %1538 = vxpose.xlu2.b32.start [1/16] (narrow) %v3955_v22, 16  ;;  %1320 = vst [vmem:[#allocation1 + $0x10] ss:$2 sm:$0xff] %v1173_v7  ;;  %v1180_v22 = vperm.slane %v1063_v59, 0 }
 0x190   : > { %v3984_v25 = vld.sshfl [vmem:[#allocation1 + $0x20] sm:$0xff pattern:$0x75316420]  ;;  %1321 = vst [vmem:[#allocation1 + $0x11] ss:$2 sm:$0xff] %v1174_v18 }
 0x191   : > { %1322 = vst [vmem:[#allocation1 + $0x20] ss:$2 sm:$0xff] %v1175_v23 }
 0x192   : > { %v3986_v50 = vld.sshfl [vmem:[#allocation1 + $0x30] sm:$0xff pattern:$0x75316420]  ;;  %1323 = vst [vmem:[#allocation1 + $0x21] ss:$2 sm:$0xff] %v1176_v21 }
 0x193   : > { %935 = vxpose.xlu0.b32.cont [13/16] (narrow) %v3899_v24, 16  ;;  %1324 = vst [vmem:[#allocation1 + $0x30] ss:$2 sm:$0xff] %v1177_v41  ;;  %v1185_v24 = vperm.slane %v1068_v38, 0 }
 0x194   : > { %1325 = vst [vmem:[#allocation1 + $0x31] ss:$2 sm:$0xff] %v1178_v17  ;;  %960 = vxpose.xlu1.b32.cont [6/16] (narrow) %v3924_v20, 16 }
 0x195   : > { %v3990_v39 = vld.sshfl [vmem:[#allocation1] sm:$0xff pattern:$0x75316420] }
 0x196   : > { %1330 = vst [vmem:[#allocation1] ss:$2 sm:$0xff] %v1179_v34 }
 0x197   : > { %1539 = vxpose.xlu2.b32.cont [2/16] (narrow) %v3958_v32, 16  ;;  %v3993_v47 = vld.sshfl [vmem:[#allocation1 + $0x10] sm:$0xff pattern:$0x75316420]  ;;  %1331 = vst [vmem:[#allocation1 + $0x1] ss:$2 sm:$0xff] %v1180_v22  ;;  %v1008_v32 = vpop.trf.xlu2 }
 0x198   : > { %1332 = vst [vmem:[#allocation1 + $0x10] ss:$2 sm:$0xff] %v1181_v3  ;;  %v1070_v51 = vrot.slane %v1008_v32, 1  ;;  %v1071_v57 = vrot.slane %v1008_v32, 2  ;;  %v1072_v58 = vrot.slane %v1008_v32, 3  ;;  %v1073_v31 = vrot.slane %v1008_v32, 4 }
 0x199   : > { %v3995_v48 = vld.sshfl [vmem:[#allocation1 + $0x20] sm:$0xff pattern:$0x75316420]  ;;  %1333 = vst [vmem:[#allocation1 + $0x11] ss:$2 sm:$0xff] %v1182_v43  ;;  %v1074_v61 = vrot.slane %v1008_v32, 5 }
 0x19a   : > { %1334 = vst [vmem:[#allocation1 + $0x20] ss:$2 sm:$0xff] %v1183_v60  ;;  %v1187_v62 = vperm.slane %v1008_v32, 0  ;;  %v1188_v49 = vperm.slane %v1070_v51, 0  ;;  %v1189_v13 = vperm.slane %v1071_v57, 0  ;;  %v1190_v35 = vperm.slane %v1072_v58, 0 }
 0x19b   : > { %936 = vxpose.xlu0.b32.cont [14/16] (narrow) %v3902_v29, 16  ;;  %v3998_v20 = vld.sshfl [vmem:[#allocation1 + $0x30] sm:$0xff pattern:$0x75316420]  ;;  %1335 = vst [vmem:[#allocation1 + $0x21] ss:$2 sm:$0xff] %v1184_v46 }
 0x19c   : > { %1336 = vst [vmem:[#allocation1 + $0x30] ss:$2 sm:$0xff] %v1185_v24  ;;  %961 = vxpose.xlu1.b32.cont [7/16] (narrow) %v3927_v8, 16  ;;  %v1075_v29 = vrot.slane %v1008_v32, 6  ;;  %v1076_v8 = vrot.slane %v1008_v32, 7  ;;  %v1192_v9 = vperm.slane %v1074_v61, 0 }
 0x19d   : > { %1337 = vst [vmem:[#allocation1 + $0x31] ss:$2 sm:$0xff] %v1186_v52 }
 0x19e   : > { %v1338_v2 = vld.sshfl [vmem:[#allocation1] sm:$0xff pattern:$0x75316420]  ;;  %v1193_v11 = vperm.slane %v1075_v29, 0 }
 0x19f   : > { %1540 = vxpose.xlu2.b32.cont [3/16] (narrow) %v3961_v37, 16  ;;  %v1191_v37 = vperm.slane %v1073_v31, 0  ;;  %1342 = vst [vmem:[#allocation1] ss:$2 sm:$0xff] %v1187_v62 }
 0x1a0   : > { %1343 = vst [vmem:[#allocation1 + $0x1] ss:$2 sm:$0xff] %v1188_v49 }
 0x1a2   : > { %v4005_v53 = vld.sshfl [vmem:[#allocation1 + $0x20] sm:$0xff pattern:$0x75316420] }
 0x1a3   : > { %937 = vxpose.xlu0.b32.cont [15/16] (narrow) %v3904_v10, 16  ;;  %v1339_v10 = vld.sshfl [vmem:[#allocation1 + $0x10] sm:$0xff pattern:$0x75316420]  ;;  %1346 = vst [vmem:[#allocation1 + $0x20] ss:$2 sm:$0xff] %v1191_v37 }
 0x1a4   : > { %962 = vxpose.xlu1.b32.cont [8/16] (narrow) %v3930_v28, 16  ;;  %1344 = vst [vmem:[#allocation1 + $0x10] ss:$2 sm:$0xff] %v1189_v13  ;;  %v1194_v28 = vperm.slane %v1076_v8, 0 }
 0x1a5   : > { %1345 = vst [vmem:[#allocation1 + $0x11] ss:$2 sm:$0xff] %v1190_v35  ;;  %v4008_v15 = vld.sshfl [vmem:[#allocation1 + $0x30] sm:$0xff pattern:$0x75316420] }
 0x1a6   : > { %1347 = vst [vmem:[#allocation1 + $0x21] ss:$2 sm:$0xff] %v1192_v9 }
 0x1a7   : > { %1541 = vxpose.xlu2.b32.cont [4/16] (narrow) %v3964_v12, 16  ;;  %1348 = vst [vmem:[#allocation1 + $0x30] ss:$2 sm:$0xff] %v1193_v11  ;;  %v1009_v12 = vpop.trf.xlu2 }
 0x1a8   : > { %1349 = vst [vmem:[#allocation1 + $0x31] ss:$2 sm:$0xff] %v1194_v28  ;;  %v1077_v7 = vrot.slane %v1009_v12, 1  ;;  %v1078_v18 = vrot.slane %v1009_v12, 2  ;;  %v1079_v36 = vrot.slane %v1009_v12, 3  ;;  %v1080_v23 = vrot.slane %v1009_v12, 4 }
 0x1a9   : > { %v1081_v21 = vrot.slane %v1009_v12, 5  ;;  %v1082_v41 = vrot.slane %v1009_v12, 6  ;;  %v1195_v17 = vperm.slane %v1009_v12, 0 }
 0x1aa   : > { %v1196_v59 = vperm.slane %v1077_v7, 0  ;;  %v1198_v63 = vperm.slane %v1079_v36, 0  ;;  %v1199_v33 = vperm.slane %v1080_v23, 0 }
 0x1ab   : > { %938 = vxpose.xlu0.b32.end [16/16] (narrow) %v3907_v42, 16  ;;  %v4013_v42 = vld.sshfl [vmem:[#allocation1] sm:$0xff pattern:$0x75316420]  ;;  %v1200_v34 = vperm.slane %v1081_v21, 0  ;;  %v1201_v22 = vperm.slane %v1082_v41, 0 }
 0x1ac   : > { %963 = vxpose.xlu1.b32.cont [9/16] (narrow) %v3933_v27, 16  ;;  %v1197_v27 = vperm.slane %v1078_v18, 0  ;;  %v4016_v26 = vld.sshfl [vmem:[#allocation1 + $0x10] sm:$0xff pattern:$0x75316420] }
 0x1ad   : > { %1354 = vst [vmem:[#allocation1] ss:$2 sm:$0xff] %v1195_v17  ;;  %v4018_v14 = vld.sshfl [vmem:[#allocation1 + $0x20] sm:$0xff pattern:$0x75316420] }
 0x1ae   : > { %1355 = vst [vmem:[#allocation1 + $0x1] ss:$2 sm:$0xff] %v1196_v59 }
 0x1af   : > { %1542 = vxpose.xlu2.b32.cont [5/16] (narrow) %v3967_v55, 16  ;;  %v1083_v55 = vrot.slane %v1009_v12, 7  ;;  %1356 = vst [vmem:[#allocation1 + $0x10] ss:$2 sm:$0xff] %v1197_v27  ;;  %v1010_v3 = vpop.trf.xlu2 }
 0x1b0   : > { %1357 = vst [vmem:[#allocation1 + $0x11] ss:$2 sm:$0xff] %v1198_v63  ;;  %v1085_v40 = vrot.slane %v1010_v3, 2  ;;  %v1086_v43 = vrot.slane %v1010_v3, 3  ;;  %v1087_v60 = vrot.slane %v1010_v3, 4  ;;  %v1088_v46 = vrot.slane %v1010_v3, 5 }
 0x1b1   : > { %v1202_v38 = vperm.slane %v1083_v55, 0  ;;  %1358 = vst [vmem:[#allocation1 + $0x20] ss:$2 sm:$0xff] %v1199_v33  ;;  %v1203_v24 = vperm.slane %v1010_v3, 0  ;;  %v1089_v32 = vrot.slane %v1010_v3, 6  ;;  %v1090_v51 = vrot.slane %v1010_v3, 7 }
 0x1b2   : > { %1359 = vst [vmem:[#allocation1 + $0x21] ss:$2 sm:$0xff] %v1200_v34  ;;  %v1205_v57 = vperm.slane %v1085_v40, 0  ;;  %v1206_v31 = vperm.slane %v1086_v43, 0  ;;  %v1207_v61 = vperm.slane %v1087_v60, 0 }
 0x1b3   : > { %1570 = vxpose.xlu0.b32.start [1/16] (narrow) %v1338_v2, 16  ;;  %v1209_v62 = vperm.slane %v1089_v32, 0  ;;  %v1210_v49 = vperm.slane %v1090_v51, 0 }
 0x1b4   : > { %964 = vxpose.xlu1.b32.cont [10/16] (narrow) %v3935_v30, 16  ;;  %v4020_v30 = vld.sshfl [vmem:[#allocation1 + $0x30] sm:$0xff pattern:$0x75316420] }
 0x1b5   : > { %1360 = vst [vmem:[#allocation1 + $0x30] ss:$2 sm:$0xff] %v1201_v22  ;;  %v4024_v58 = vld.sshfl [vmem:[#allocation1] sm:$0xff pattern:$0x75316420] }
 0x1b6   : > { %1361 = vst [vmem:[#allocation1 + $0x31] ss:$2 sm:$0xff] %v1202_v38 }
 0x1b7   : > { %1543 = vxpose.xlu2.b32.cont [6/16] (narrow) %v3970_v56, 16  ;;  %v1084_v56 = vrot.slane %v1010_v3, 1  ;;  %1366 = vst [vmem:[#allocation1] ss:$2 sm:$0xff] %v1203_v24  ;;  %v1011_v13 = vpop.trf.xlu2 }
 0x1b8   : > { %v4026_v29 = vld.sshfl [vmem:[#allocation1 + $0x10] sm:$0xff pattern:$0x75316420]  ;;  %v1091_v2 = vrot.slane %v1011_v13, 1  ;;  %v1092_v8 = vrot.slane %v1011_v13, 2  ;;  %v1093_v35 = vrot.slane %v1011_v13, 3 }
 0x1b9   : > { %v1204_v52 = vperm.slane %v1084_v56, 0  ;;  %1368 = vst [vmem:[#allocation1 + $0x10] ss:$2 sm:$0xff] %v1205_v57  ;;  %v1094_v37 = vrot.slane %v1011_v13, 4  ;;  %v1095_v9 = vrot.slane %v1011_v13, 5  ;;  %v1096_v11 = vrot.slane %v1011_v13, 6 }
 0x1ba   : > { %1369 = vst [vmem:[#allocation1 + $0x11] ss:$2 sm:$0xff] %v1206_v31  ;;  %v1097_v28 = vrot.slane %v1011_v13, 7  ;;  %v1212_v12 = vperm.slane %v1091_v2, 0  ;;  %v1213_v7 = vperm.slane %v1092_v8, 0 }
 0x1bb   : > { %1571 = vxpose.xlu0.b32.cont [2/16] (narrow) %v1339_v10, 16  ;;  %1367 = vst [vmem:[#allocation1 + $0x1] ss:$2 sm:$0xff] %v1204_v52  ;;  %v1215_v36 = vperm.slane %v1094_v37, 0  ;;  %v1216_v23 = vperm.slane %v1095_v9, 0  ;;  %v1217_v41 = vperm.slane %v1096_v11, 0 }
 0x1bc   : > { %965 = vxpose.xlu1.b32.cont [11/16] (narrow) %v3938_v45, 16  ;;  %v1208_v45 = vperm.slane %v1088_v46, 0 }
 0x1bd   : > { %v4032_v10 = vld.sshfl [vmem:[#allocation1 + $0x30] sm:$0xff pattern:$0x75316420] }
 0x1be   : > { %1372 = vst [vmem:[#allocation1 + $0x30] ss:$2 sm:$0xff] %v1209_v62 }
 0x1bf   : > { %1544 = vxpose.xlu2.b32.cont [7/16] (narrow) %v3973_v1, 16  ;;  %v4029_v1 = vld.sshfl [vmem:[#allocation1 + $0x20] sm:$0xff pattern:$0x75316420]  ;;  %1373 = vst [vmem:[#allocation1 + $0x31] ss:$2 sm:$0xff] %v1210_v49 }
 0x1c0   : > { %1370 = vst [vmem:[#allocation1 + $0x20] ss:$2 sm:$0xff] %v1207_v61 }
 0x1c1   : > { %1371 = vst [vmem:[#allocation1 + $0x21] ss:$2 sm:$0xff] %v1208_v45  ;;  %v4038_v21 = vld.sshfl [vmem:[#allocation1 + $0x10] sm:$0xff pattern:$0x75316420] }
 0x1c2   : > { %v4035_v18 = vld.sshfl [vmem:[#allocation1] sm:$0xff pattern:$0x75316420]  ;;  %1380 = vst [vmem:[#allocation1 + $0x10] ss:$2 sm:$0xff] %v1213_v7 }
 0x1c3   : > { %1572 = vxpose.xlu0.b32.cont [3/16] (narrow) %v4005_v53, 16  ;;  %v1211_v53 = vperm.slane %v1011_v13, 0  ;;  %1379 = vst [vmem:[#allocation1 + $0x1] ss:$2 sm:$0xff] %v1212_v12 }
 0x1c4   : > { %966 = vxpose.xlu1.b32.cont [12/16] (narrow) %v3941_v16, 16  ;;  %v1214_v16 = vperm.slane %v1093_v35, 0 }
 0x1c5   : > { %1378 = vst [vmem:[#allocation1] ss:$2 sm:$0xff] %v1211_v53 }
 0x1c6   : > { %1381 = vst [vmem:[#allocation1 + $0x11] ss:$2 sm:$0xff] %v1214_v16  ;;  %v4044_v59 = vld.sshfl [vmem:[#allocation1 + $0x30] sm:$0xff pattern:$0x75316420] }
 0x1c7   : > { %1545 = vxpose.xlu2.b32.cont [8/16] (narrow) %v3975_v6, 16  ;;  %v1218_v6 = vperm.slane %v1097_v28, 0  ;;  %1384 = vst [vmem:[#allocation1 + $0x30] ss:$2 sm:$0xff] %v1217_v41 }
 0x1c8   : > { %v4041_v17 = vld.sshfl [vmem:[#allocation1 + $0x20] sm:$0xff pattern:$0x75316420] }
 0x1c9   : > { %1382 = vst [vmem:[#allocation1 + $0x20] ss:$2 sm:$0xff] %v1215_v36 }
 0x1ca   : > { %1383 = vst [vmem:[#allocation1 + $0x21] ss:$2 sm:$0xff] %v1216_v23 }
 0x1cb   : > { %1573 = vxpose.xlu0.b32.cont [4/16] (narrow) %v4008_v15, 16  ;;  %1385 = vst [vmem:[#allocation1 + $0x31] ss:$2 sm:$0xff] %v1218_v6 }
 0x1cc   : > { %967 = vxpose.xlu1.b32.cont [13/16] (narrow) %v3944_v0, 16  ;;  %v1012_v0 = vpop.trf.xlu2 }
 0x1cd   : > { %v1098_v15 = vrot.slane %v1012_v0, 1  ;;  %v1099_v27 = vrot.slane %v1012_v0, 2  ;;  %v1100_v55 = vrot.slane %v1012_v0, 3  ;;  %v1101_v63 = vrot.slane %v1012_v0, 4 }
 0x1ce   : > { %v1219_v33 = vperm.slane %v1012_v0, 0 }
 0x1cf   : > { %1546 = vxpose.xlu2.b32.cont [9/16] (narrow) %v3978_v4, 16  ;;  %v1386_v4 = vld.sshfl [vmem:[#allocation1] sm:$0xff pattern:$0x75316420]  ;;  %v1220_v34 = vperm.slane %v1098_v15, 0  ;;  %v1222_v22 = vperm.slane %v1100_v55, 0 }
 0x1d0   : > { %1390 = vst [vmem:[#allocation1] ss:$2 sm:$0xff] %v1219_v33 }
 0x1d1   : > { %1391 = vst [vmem:[#allocation1 + $0x1] ss:$2 sm:$0xff] %v1220_v34  ;;  %v1388_v3 = vld.sshfl [vmem:[#allocation1 + $0x20] sm:$0xff pattern:$0x75316420] }
 0x1d3   : > { %1574 = vxpose.xlu0.b32.cont [5/16] (narrow) %v4013_v42, 16  ;;  %v1102_v42 = vrot.slane %v1012_v0, 5 }
 0x1d4   : > { %968 = vxpose.xlu1.b32.cont [14/16] (narrow) %v3947_v5, 16  ;;  %v1103_v5 = vrot.slane %v1012_v0, 6 }
 0x1d6   : > { %v1225_v38 = vperm.slane %v1103_v5, 0 }
 0x1d7   : > { %1547 = vxpose.xlu2.b32.cont [10/16] (narrow) %v3981_v19, 16  ;;  %v1104_v19 = vrot.slane %v1012_v0, 7 }
 0x1d8   : > { %v1398_v40 = vld.sshfl [vmem:[#allocation1] sm:$0xff pattern:$0x75316420] }
 0x1d9   : > { %v1226_v56 = vperm.slane %v1104_v19, 0 }
 0x1db   : > { %1575 = vxpose.xlu0.b32.cont [6/16] (narrow) %v4016_v26, 16  ;;  %v1221_v26 = vperm.slane %v1099_v27, 0 }
 0x1dc   : > { %969 = vxpose.xlu1.b32.cont [15/16] (narrow) %v3950_v44, 16  ;;  %v1223_v44 = vperm.slane %v1101_v63, 0 }
 0x1de   : > { %1394 = vst [vmem:[#allocation1 + $0x20] ss:$2 sm:$0xff] %v1223_v44 }
 0x1df   : > { %1548 = vxpose.xlu2.b32.cont [11/16] (narrow) %v3984_v25, 16  ;;  %v1387_v25 = vld.sshfl [vmem:[#allocation1 + $0x10] sm:$0xff pattern:$0x75316420] }
 0x1e0   : > { %1392 = vst [vmem:[#allocation1 + $0x10] ss:$2 sm:$0xff] %v1221_v26 }
 0x1e1   : > { %1393 = vst [vmem:[#allocation1 + $0x11] ss:$2 sm:$0xff] %v1222_v22 }
 0x1e3   : > { %1576 = vxpose.xlu0.b32.cont [7/16] (narrow) %v4018_v14, 16  ;;  %v1224_v14 = vperm.slane %v1102_v42, 0 }
 0x1e4   : > { %970 = vxpose.xlu1.b32.end [16/16] (narrow) %v3953_v54, 16  ;;  %v1389_v54 = vld.sshfl [vmem:[#allocation1 + $0x30] sm:$0xff pattern:$0x75316420] }
 0x1e5   : > { %1395 = vst [vmem:[#allocation1 + $0x21] ss:$2 sm:$0xff] %v1224_v14 }
 0x1e6   : > { %1396 = vst [vmem:[#allocation1 + $0x30] ss:$2 sm:$0xff] %v1225_v38 }
 0x1e7   : > { %1549 = vxpose.xlu2.b32.cont [12/16] (narrow) %v3986_v50, 16  ;;  %1397 = vst [vmem:[#allocation1 + $0x31] ss:$2 sm:$0xff] %v1226_v56  ;;  %v1013_v50 = vpop.trf.xlu2 }
 0x1e8   : > { %v1105_v43 = vrot.slane %v1013_v50, 1  ;;  %v1106_v60 = vrot.slane %v1013_v50, 2  ;;  %v1108_v46 = vrot.slane %v1013_v50, 4  ;;  %v1109_v24 = vrot.slane %v1013_v50, 5 }
 0x1e9   : > { %v1110_v52 = vrot.slane %v1013_v50, 6  ;;  %v1227_v32 = vperm.slane %v1013_v50, 0  ;;  %v1111_v51 = vrot.slane %v1013_v50, 7 }
 0x1ea   : > { %v1228_v57 = vperm.slane %v1105_v43, 0  ;;  %v1232_v61 = vperm.slane %v1109_v24, 0 }
 0x1eb   : > { %1577 = vxpose.xlu0.b32.cont [8/16] (narrow) %v4020_v30, 16  ;;  %v1107_v30 = vrot.slane %v1013_v50, 3  ;;  %1402 = vst [vmem:[#allocation1] ss:$2 sm:$0xff] %v1227_v32  ;;  %v1234_v62 = vperm.slane %v1111_v51, 0 }
 0x1ec   : > { %1602 = vxpose.xlu1.b32.start [1/16] (narrow) %v1386_v4, 16  ;;  %1403 = vst [vmem:[#allocation1 + $0x1] ss:$2 sm:$0xff] %v1228_v57  ;;  %v4063_v45 = vld.sshfl [vmem:[#allocation1 + $0x20] sm:$0xff pattern:$0x75316420] }
 0x1ed   : > { %v1230_v31 = vperm.slane %v1107_v30, 0  ;;  %1407 = vst [vmem:[#allocation1 + $0x21] ss:$2 sm:$0xff] %v1232_v61 }
 0x1ee   : > { %v4066_v49 = vld.sshfl [vmem:[#allocation1 + $0x30] sm:$0xff pattern:$0x75316420] }
 0x1ef   : > { %1550 = vxpose.xlu2.b32.cont [13/16] (narrow) %v3990_v39, 16  ;;  %v1229_v39 = vperm.slane %v1106_v60, 0  ;;  %v1014_v13 = vpop.trf.xlu2  ;;  %1409 = vst [vmem:[#allocation1 + $0x31] ss:$2 sm:$0xff] %v1234_v62 }
 0x1f0   : > { %v1113_v2 = vrot.slane %v1014_v13, 2  ;;  %v1114_v8 = vrot.slane %v1014_v13, 3  ;;  %v1115_v35 = vrot.slane %v1014_v13, 4  ;;  %v1116_v37 = vrot.slane %v1014_v13, 5 }
 0x1f1   : > { %v1117_v9 = vrot.slane %v1014_v13, 6  ;;  %v1235_v53 = vperm.slane %v1014_v13, 0 }
 0x1f2   : > { %v1237_v28 = vperm.slane %v1113_v2, 0  ;;  %v1238_v12 = vperm.slane %v1114_v8, 0  ;;  %v1239_v16 = vperm.slane %v1115_v35, 0  ;;  %v1240_v36 = vperm.slane %v1116_v37, 0 }
 0x1f3   : > { %1578 = vxpose.xlu0.b32.cont [9/16] (narrow) %v4024_v58, 16  ;;  %v1231_v58 = vperm.slane %v1108_v46, 0  ;;  %v4069_v7 = vld.sshfl [vmem:[#allocation1] sm:$0xff pattern:$0x75316420]  ;;  %v1241_v23 = vperm.slane %v1117_v9, 0 }
 0x1f4   : > { %1603 = vxpose.xlu1.b32.cont [2/16] (narrow) %v1387_v25, 16  ;;  %1414 = vst [vmem:[#allocation1] ss:$2 sm:$0xff] %v1235_v53 }
 0x1f5   : > { %1406 = vst [vmem:[#allocation1 + $0x20] ss:$2 sm:$0xff] %v1231_v58 }
 0x1f7   : > { %1551 = vxpose.xlu2.b32.cont [14/16] (narrow) %v3993_v47, 16  ;;  %v4061_v47 = vld.sshfl [vmem:[#allocation1 + $0x10] sm:$0xff pattern:$0x75316420]  ;;  %v1015_v0 = vpop.trf.xlu2 }
 0x1f8   : > { %1404 = vst [vmem:[#allocation1 + $0x10] ss:$2 sm:$0xff] %v1229_v39  ;;  %v1120_v15 = vrot.slane %v1015_v0, 2  ;;  %v1121_v27 = vrot.slane %v1015_v0, 3  ;;  %v1122_v63 = vrot.slane %v1015_v0, 4  ;;  %v1123_v42 = vrot.slane %v1015_v0, 5 }
 0x1f9   : > { %1405 = vst [vmem:[#allocation1 + $0x11] ss:$2 sm:$0xff] %v1230_v31  ;;  %v1243_v5 = vperm.slane %v1015_v0, 0  ;;  %v1125_v19 = vrot.slane %v1015_v0, 7 }
 0x1fa   : > { %v1245_v34 = vperm.slane %v1120_v15, 0  ;;  %v1246_v22 = vperm.slane %v1121_v27, 0  ;;  %v1247_v44 = vperm.slane %v1122_v63, 0  ;;  %v1248_v25 = vperm.slane %v1123_v42, 0 }
 0x1fb   : > { %1579 = vxpose.xlu0.b32.cont [10/16] (narrow) %v4026_v29, 16  ;;  %v1233_v29 = vperm.slane %v1110_v52, 0 }
 0x1fc   : > { %1604 = vxpose.xlu1.b32.cont [3/16] (narrow) %v1388_v3, 16  ;;  %v4074_v6 = vld.sshfl [vmem:[#allocation1 + $0x20] sm:$0xff pattern:$0x75316420]  ;;  %v1250_v3 = vperm.slane %v1125_v19, 0 }
 0x1fd   : > { %1408 = vst [vmem:[#allocation1 + $0x30] ss:$2 sm:$0xff] %v1233_v29 }
 0x1fe   : > { %1418 = vst [vmem:[#allocation1 + $0x20] ss:$2 sm:$0xff] %v1239_v16 }
 0x1ff   : > { %1552 = vxpose.xlu2.b32.cont [15/16] (narrow) %v3995_v48, 16  ;;  %v1112_v48 = vrot.slane %v1014_v13, 1  ;;  %1419 = vst [vmem:[#allocation1 + $0x21] ss:$2 sm:$0xff] %v1240_v36 }
 0x200   : > { %v4071_v41 = vld.sshfl [vmem:[#allocation1 + $0x10] sm:$0xff pattern:$0x75316420] }
 0x201   : > { %v1236_v11 = vperm.slane %v1112_v48, 0  ;;  %1416 = vst [vmem:[#allocation1 + $0x10] ss:$2 sm:$0xff] %v1237_v28 }
 0x202   : > { %1417 = vst [vmem:[#allocation1 + $0x11] ss:$2 sm:$0xff] %v1238_v12 }
 0x203   : > { %1580 = vxpose.xlu0.b32.cont [11/16] (narrow) %v4029_v1, 16  ;;  %v1118_v1 = vrot.slane %v1014_v13, 7  ;;  %1415 = vst [vmem:[#allocation1 + $0x1] ss:$2 sm:$0xff] %v1236_v11 }
 0x204   : > { %1605 = vxpose.xlu1.b32.cont [4/16] (narrow) %v1389_v54, 16  ;;  %v4076_v55 = vld.sshfl [vmem:[#allocation1 + $0x30] sm:$0xff pattern:$0x75316420] }
 0x205   : > { %v1242_v4 = vperm.slane %v1118_v1, 0  ;;  %1420 = vst [vmem:[#allocation1 + $0x30] ss:$2 sm:$0xff] %v1241_v23 }
 0x206   : > { %v4084_v56 = vld.sshfl [vmem:[#allocation1 + $0x20] sm:$0xff pattern:$0x75316420] }
 0x207   : > { %1553 = vxpose.xlu2.b32.end [16/16] (narrow) %v3998_v20, 16  ;;  %v1119_v20 = vrot.slane %v1015_v0, 1  ;;  %1421 = vst [vmem:[#allocation1 + $0x31] ss:$2 sm:$0xff] %v1242_v4 }
 0x208   : > { %1430 = vst [vmem:[#allocation1 + $0x20] ss:$2 sm:$0xff] %v1247_v44 }
 0x209   : > { %v1244_v33 = vperm.slane %v1119_v20, 0  ;;  %v4081_v14 = vld.sshfl [vmem:[#allocation1 + $0x10] sm:$0xff pattern:$0x75316420]  ;;  %1431 = vst [vmem:[#allocation1 + $0x21] ss:$2 sm:$0xff] %v1248_v25 }
 0x20a   : > { %v4078_v26 = vld.sshfl [vmem:[#allocation1] sm:$0xff pattern:$0x75316420]  ;;  %1428 = vst [vmem:[#allocation1 + $0x10] ss:$2 sm:$0xff] %v1245_v34 }
 0x20b   : > { %1581 = vxpose.xlu0.b32.cont [12/16] (narrow) %v4032_v10, 16  ;;  %v1124_v10 = vrot.slane %v1015_v0, 6  ;;  %1426 = vst [vmem:[#allocation1] ss:$2 sm:$0xff] %v1243_v5 }
 0x20c   : > { %1606 = vxpose.xlu1.b32.cont [5/16] (narrow) %v1398_v40, 16  ;;  %1427 = vst [vmem:[#allocation1 + $0x1] ss:$2 sm:$0xff] %v1244_v33 }
 0x20d   : > { %v1249_v38 = vperm.slane %v1124_v10, 0  ;;  %1429 = vst [vmem:[#allocation1 + $0x11] ss:$2 sm:$0xff] %v1246_v22  ;;  %v306_v22 = vld [vmem:[%s264_s18] sm:$0xff] }
 0x20e   : > { %v4086_v54 = vld.sshfl [vmem:[#allocation1 + $0x30] sm:$0xff pattern:$0x75316420] }
 0x20f   : > { %1432 = vst [vmem:[#allocation1 + $0x30] ss:$2 sm:$0xff] %v1249_v38 }
 0x210   : > { %1433 = vst [vmem:[#allocation1 + $0x31] ss:$2 sm:$0xff] %v1250_v3  ;;  %v307_v3 = vld [vmem:[%s264_s18 + $0x8] sm:$0xff] }
 0x213   : > { %1582 = vxpose.xlu0.b32.cont [13/16] (narrow) %v4035_v18, 16  ;;  %v1016_v18 = vpop.trf.xlu2  ;;  %v1434_v30 = vld.sshfl [vmem:[#allocation1] sm:$0xff pattern:$0x75316420] }
 0x214   : > { %1607 = vxpose.xlu1.b32.cont [6/16] (narrow) %v4061_v47, 16  ;;  %v1126_v50 = vrot.slane %v1016_v18, 1  ;;  %v1127_v40 = vrot.slane %v1016_v18, 2  ;;  %v1128_v43 = vrot.slane %v1016_v18, 3  ;;  %v1129_v60 = vrot.slane %v1016_v18, 4 }
 0x215   : > { %v1130_v46 = vrot.slane %v1016_v18, 5  ;;  %v1131_v24 = vrot.slane %v1016_v18, 6  ;;  %v1251_v52 = vperm.slane %v1016_v18, 0  ;;  %v1132_v32 = vrot.slane %v1016_v18, 7 }
 0x216   : > { %v1252_v51 = vperm.slane %v1126_v50, 0  ;;  %v1253_v57 = vperm.slane %v1127_v40, 0  ;;  %v1254_v39 = vperm.slane %v1128_v43, 0  ;;  %v1435_v31 = vld.sshfl [vmem:[#allocation1 + $0x10] sm:$0xff pattern:$0x75316420]  ;;  %v875_v50 = vpop.trf.xlu1  ;;  %v939_v40 = vpop.trf.xlu0 }
 0x217   : > { %1438 = vst [vmem:[#allocation1] ss:$2 sm:$0xff] %v1251_v52  ;;  %v1256_v58 = vperm.slane %v1130_v46, 0  ;;  %v1436_v47 = vld.sshfl [vmem:[#allocation1 + $0x20] sm:$0xff pattern:$0x75316420]  ;;  %v2345_v46 = vlaneseq }
 0x218   : > { %1439 = vst [vmem:[#allocation1 + $0x1] ss:$2 sm:$0xff] %v1252_v51  ;;  %v1258_v61 = vperm.slane %v1132_v32, 0  ;;  %v1437_v29 = vld.sshfl [vmem:[#allocation1 + $0x30] sm:$0xff pattern:$0x75316420] }
 0x219   : > { %1440 = vst [vmem:[#allocation1 + $0x10] ss:$2 sm:$0xff] %v1253_v57  ;;  %v2346_v52 = vand.u32 127, %v2345_v46 }
 0x21a   : > { %1441 = vst [vmem:[#allocation1 + $0x11] ss:$2 sm:$0xff] %v1254_v39 }
 0x21b   : > { %1583 = vxpose.xlu0.b32.cont [14/16] (narrow) %v4038_v21, 16  ;;  %v1255_v21 = vperm.slane %v1129_v60, 0  ;;  %1443 = vst [vmem:[#allocation1 + $0x21] ss:$2 sm:$0xff] %v1256_v58  ;;  %v2347_v32 = vadd.s32 128, %v2346_v52  ;;  %v2348_v58 = vadd.s32 256, %v2346_v52 }
 0x21c   : > { %1608 = vxpose.xlu1.b32.cont [7/16] (narrow) %v4063_v45, 16  ;;  %1445 = vst [vmem:[#allocation1 + $0x31] ss:$2 sm:$0xff] %v1258_v61 }
 0x21d   : > { %1442 = vst [vmem:[#allocation1 + $0x20] ss:$2 sm:$0xff] %v1255_v21  ;;  %v2361_v21 = vand.u32 3, %v2347_v32 }
 0x21f   : > { %v1446_v48 = vld.sshfl [vmem:[#allocation1] sm:$0xff pattern:$0x75316420] }
 0x221   : > { %v1447_v1 = vld.sshfl [vmem:[#allocation1 + $0x10] sm:$0xff pattern:$0x75316420] }
 0x223   : > { %1584 = vxpose.xlu0.b32.cont [15/16] (narrow) %v4041_v17, 16  ;;  %v1257_v17 = vperm.slane %v1131_v24, 0  ;;  %v4102_v24 = vpop.trf.xlu0 }
 0x224   : > { %1609 = vxpose.xlu1.b32.cont [8/16] (narrow) %v4066_v49, 16  ;;  %v1448_v16 = vld.sshfl [vmem:[#allocation1 + $0x20] sm:$0xff pattern:$0x75316420] }
 0x225   : > { %1444 = vst [vmem:[#allocation1 + $0x30] ss:$2 sm:$0xff] %v1257_v17 }
 0x22b   : > { %1585 = vxpose.xlu0.b32.end [16/16] (narrow) %v4044_v59, 16  ;;  %v1017_v59 = vpop.trf.xlu2 }
 0x22c   : > { %1610 = vxpose.xlu1.b32.cont [9/16] (narrow) %v4069_v7, 16  ;;  %v1133_v45 = vrot.slane %v1017_v59, 1  ;;  %v1134_v62 = vrot.slane %v1017_v59, 2  ;;  %v1135_v49 = vrot.slane %v1017_v59, 3  ;;  %v1136_v13 = vrot.slane %v1017_v59, 4 }
 0x22d   : > { %v1137_v2 = vrot.slane %v1017_v59, 5  ;;  %v1138_v8 = vrot.slane %v1017_v59, 6  ;;  %v1259_v35 = vperm.slane %v1017_v59, 0  ;;  %v1139_v37 = vrot.slane %v1017_v59, 7 }
 0x22e   : > { %v1260_v9 = vperm.slane %v1133_v45, 0  ;;  %v1261_v53 = vperm.slane %v1134_v62, 0  ;;  %v1262_v11 = vperm.slane %v1135_v49, 0  ;;  %v1263_v28 = vperm.slane %v1136_v13, 0 }
 0x22f   : > { %1450 = vst [vmem:[#allocation1] ss:$2 sm:$0xff] %v1259_v35  ;;  %v1264_v12 = vperm.slane %v1137_v2, 0  ;;  %v1265_v7 = vperm.slane %v1138_v8, 0  ;;  %v1266_v36 = vperm.slane %v1139_v37, 0  ;;  %v2368_v45 = vand.u32 3, %v2348_v58 }
 0x230   : > { %1451 = vst [vmem:[#allocation1 + $0x1] ss:$2 sm:$0xff] %v1260_v9  ;;  %v1449_v23 = vld.sshfl [vmem:[#allocation1 + $0x30] sm:$0xff pattern:$0x75316420]  ;;  %v2349_v49 = vadd.s32 384, %v2346_v52 }
 0x231   : > { %1452 = vst [vmem:[#allocation1 + $0x10] ss:$2 sm:$0xff] %v1261_v53 }
 0x232   : > { %1453 = vst [vmem:[#allocation1 + $0x11] ss:$2 sm:$0xff] %v1262_v11  ;;  %v2375_v8 = vand.u32 3, %v2349_v49 }
 0x233   : > { %1634 = vxpose.xlu0.b32.start [1/16] (narrow) %v1434_v30, 16  ;;  %1454 = vst [vmem:[#allocation1 + $0x20] ss:$2 sm:$0xff] %v1263_v28  ;;  %v876_v30 = vpop.trf.xlu1 }
 0x234   : > { %1611 = vxpose.xlu1.b32.cont [10/16] (narrow) %v4071_v41, 16  ;;  %1455 = vst [vmem:[#allocation1 + $0x21] ss:$2 sm:$0xff] %v1264_v12  ;;  %v1018_v41 = vpop.trf.xlu2  ;;  %v2401_v12 = vcvt.s32.f32 %v2375_v8 }
 0x235   : > { %1456 = vst [vmem:[#allocation1 + $0x30] ss:$2 sm:$0xff] %v1265_v7  ;;  %v1140_v0 = vrot.slane %v1018_v41, 1  ;;  %v1141_v4 = vrot.slane %v1018_v41, 2  ;;  %v1142_v20 = vrot.slane %v1018_v41, 3  ;;  %v1143_v15 = vrot.slane %v1018_v41, 4 }
 0x236   : > { %1457 = vst [vmem:[#allocation1 + $0x31] ss:$2 sm:$0xff] %v1266_v36  ;;  %v1144_v27 = vrot.slane %v1018_v41, 5  ;;  %v1267_v63 = vperm.slane %v1018_v41, 0  ;;  %v1146_v42 = vrot.slane %v1018_v41, 7 }
 0x237   : > { %v1268_v5 = vperm.slane %v1140_v0, 0  ;;  %v1269_v33 = vperm.slane %v1141_v4, 0  ;;  %v1270_v10 = vperm.slane %v1142_v20, 0  ;;  %v1271_v19 = vperm.slane %v1143_v15, 0 }
 0x239   : > { %v1459_v34 = vld.sshfl [vmem:[#allocation1 + $0x10] sm:$0xff pattern:$0x75316420] }
 0x23a   : > { %1464 = vst [vmem:[#allocation1 + $0x10] ss:$2 sm:$0xff] %v1269_v33 }
 0x23b   : > { %1635 = vxpose.xlu0.b32.cont [2/16] (narrow) %v1435_v31, 16  ;;  %v1460_v25 = vld.sshfl [vmem:[#allocation1 + $0x20] sm:$0xff pattern:$0x75316420]  ;;  %1465 = vst [vmem:[#allocation1 + $0x11] ss:$2 sm:$0xff] %v1270_v10  ;;  %v971_v57 = vpop.trf.xlu1  ;;  %v2399_v31 = vcvt.s32.f32 %v2361_v21 }
 0x23c   : > { %1612 = vxpose.xlu1.b32.cont [11/16] (narrow) %v4074_v6, 16  ;;  %v1458_v6 = vld.sshfl [vmem:[#allocation1] sm:$0xff pattern:$0x75316420]  ;;  %1466 = vst [vmem:[#allocation1 + $0x20] ss:$2 sm:$0xff] %v1271_v19  ;;  %v907_v60 = vpop.trf.xlu2 }
 0x23d   : > { %1462 = vst [vmem:[#allocation1] ss:$2 sm:$0xff] %v1267_v63  ;;  %v1461_v38 = vld.sshfl [vmem:[#allocation1 + $0x30] sm:$0xff pattern:$0x75316420] }
 0x23e   : > { %1463 = vst [vmem:[#allocation1 + $0x1] ss:$2 sm:$0xff] %v1268_v5 }
 0x243   : > { %1636 = vxpose.xlu0.b32.cont [3/16] (narrow) %v1436_v47, 16  ;;  %v3351_v47 = vadd.f32 -1.5, %v2399_v31  ;;  %v4105_v61 = vpop.trf.xlu1 }
 0x244   : > { %1613 = vxpose.xlu1.b32.cont [12/16] (narrow) %v4076_v55, 16  ;;  %v1145_v55 = vrot.slane %v1018_v41, 6  ;;  %v908_v51 = vpop.trf.xlu2 }
 0x246   : > { %v1273_v44 = vperm.slane %v1145_v55, 0 }
 0x248   : > { %1468 = vst [vmem:[#allocation1 + $0x30] ss:$2 sm:$0xff] %v1273_v44 }
 0x24b   : > { %1637 = vxpose.xlu0.b32.cont [4/16] (narrow) %v1437_v29, 16  ;;  %v2354_v29 = vand.u32 3, %v2346_v52 }
 0x24c   : > { %1614 = vxpose.xlu1.b32.cont [13/16] (narrow) %v4078_v26, 16  ;;  %v1272_v26 = vperm.slane %v1144_v27, 0  ;;  %v1554_v17 = vpop.trf.xlu2  ;;  %v3353_v27 = vadd.f32 -1.5, %v2401_v12 }
 0x24d   : > { %v2398_v13 = vcvt.s32.f32 %v2354_v29 }
 0x24e   : > { %1467 = vst [vmem:[#allocation1 + $0x21] ss:$2 sm:$0xff] %v1272_v26 }
 0x24f   : > { %v3350_v35 = vadd.f32 -1.5, %v2398_v13 }
 0x251   : > { %v2410_v4 = vmul.f32 %v3350_v35, %v1554_v17 }
 0x253   : > { %1638 = vxpose.xlu0.b32.cont [5/16] (narrow) %v1446_v48, 16  ;;  %v2400_v48 = vcvt.s32.f32 %v2368_v45  ;;  %v2418_v10 = vadd.f32 %v2410_v4, %v875_v50 }
 0x254   : > { %1615 = vxpose.xlu1.b32.cont [14/16] (narrow) %v4081_v14, 16  ;;  %v1274_v14 = vperm.slane %v1146_v42, 0  ;;  %v1555_v9 = vpop.trf.xlu2 }
 0x255   : > { %v1472_v18 = vld.sshfl [vmem:[#allocation1 + $0x20] sm:$0xff pattern:$0x75316420]  ;;  %v4107_v37 = vadd.f32 -1.5, %v2400_v48  ;;  %v2414_v28 = vmul.f32 %v3350_v35, %v1555_v9 }
 0x256   : > { %1469 = vst [vmem:[#allocation1 + $0x31] ss:$2 sm:$0xff] %v1274_v14 }
 0x257   : > { %v1586_v39 = vpop.trf.xlu0  ;;  %v2422_v7 = vadd.f32 %v2414_v28, %v876_v30 }
 0x25b   : > { %1639 = vxpose.xlu0.b32.cont [6/16] (narrow) %v1447_v1, 16  ;;  %v2411_v1 = vmul.f32 %v3351_v47, %v1586_v39 }
 0x25c   : > { %1616 = vxpose.xlu1.b32.cont [15/16] (narrow) %v4084_v56, 16  ;;  %v1470_v56 = vld.sshfl [vmem:[#allocation1] sm:$0xff pattern:$0x75316420] }
 0x25d   : > { %v1473_v43 = vld.sshfl [vmem:[#allocation1 + $0x30] sm:$0xff pattern:$0x75316420]  ;;  %v2419_v0 = vadd.f32 %v2411_v1, %v907_v60 }
 0x25f   : > { %v1587_v59 = vpop.trf.xlu0  ;;  %v2434_v5 = vrot.slane %v2419_v0, 7 }
 0x260   : > { %v2415_v62 = vmul.f32 %v3351_v47, %v1587_v59 }
 0x261   : > { %v2453_v14 = vsel %vm2442_vm1, %v2418_v10, %v2434_v5 }
 0x262   : > { %v2423_v2 = vadd.f32 %v2415_v62, %v908_v51 }
 0x263   : > { %1640 = vxpose.xlu0.b32.cont [7/16] (narrow) %v1448_v16, 16 }
 0x264   : > { %1617 = vxpose.xlu1.b32.end [16/16] (narrow) %v4086_v54, 16  ;;  %v1471_v54 = vld.sshfl [vmem:[#allocation1 + $0x10] sm:$0xff pattern:$0x75316420]  ;;  %v2437_v53 = vrot.slane %v2423_v2, 7 }
 0x266   : > { %v4111_v36 = vsel %vm2440_vm0, %v2422_v7, %v2437_v53  ;;  %v4117_v41 = vsel %vm2442_vm1, %v2422_v7, %v2437_v53  ;;  %v4123_v20 = vsel %vm2454_vm4, %v2422_v7, %v2437_v53  ;;  %v4126_v15 = vsel %vm2460_vm5, %v2422_v7, %v2437_v53 }
 0x267   : > { %v4129_v55 = vsel %vm2466_vm6, %v2422_v7, %v2437_v53  ;;  %v4132_v63 = vsel %vm2472_vm7, %v2437_v53, %v2422_v7 }
 0x26b   : > { %1641 = vxpose.xlu0.b32.cont [8/16] (narrow) %v1449_v23, 16  ;;  %v4114_v23 = vsel %vm2446_vm2, %v2422_v7, %v2437_v53 }
 0x26c   : > { %1666 = vxpose.xlu1.b32.start [1/2] (short) %v306_v22, 128  ;;  %v2441_v22 = vsel %vm2440_vm0, %v2418_v10, %v2434_v5 }
 0x273   : > { %1642 = vxpose.xlu0.b32.cont [9/16] (narrow) %v1458_v6, 16  ;;  %v4120_v6 = vsel %vm2448_vm3, %v2422_v7, %v2437_v53 }
 0x274   : > { %1667 = vxpose.xlu1.b32.end [2/2] (short) %v307_v3, 128  ;;  %v2465_v3 = vsel %vm2454_vm4, %v2418_v10, %v2434_v5 }
 0x27b   : > { %1643 = vxpose.xlu0.b32.cont [10/16] (narrow) %v1459_v34, 16 }
 0x283   : > { %1644 = vxpose.xlu0.b32.cont [11/16] (narrow) %v1460_v25, 16  ;;  %v2447_v25 = vsel %vm2446_vm2, %v2418_v10, %v2434_v5 }
 0x28b   : > { %1645 = vxpose.xlu0.b32.cont [12/16] (narrow) %v1461_v38, 16  ;;  %v2459_v38 = vsel %vm2448_vm3, %v2418_v10, %v2434_v5 }
 0x290   : > { %v1618_v11 = vpop.trf.xlu1 }
 0x291   : > { %v2412_v16 = vmul.f32 %v4107_v37, %v1618_v11 }
 0x293   : > { %1646 = vxpose.xlu0.b32.cont [13/16] (narrow) %v1470_v56, 16  ;;  %v2420_v42 = vadd.f32 %v2412_v16, %v939_v40  ;;  %v2471_v56 = vsel %vm2460_vm5, %v2418_v10, %v2434_v5 }
 0x295   : > { %v2435_v34 = vrot.slane %v2420_v42, 6 }
 0x298   : > { %v1619_v59 = vpop.trf.xlu1 }
 0x299   : > { %v2416_v45 = vmul.f32 %v4107_v37, %v1619_v59 }
 0x29b   : > { %1647 = vxpose.xlu0.b32.cont [14/16] (narrow) %v1471_v54, 16  ;;  %v2477_v54 = vsel %vm2466_vm6, %v2418_v10, %v2434_v5  ;;  %v2424_v49 = vadd.f32 %v2416_v45, %v4102_v24 }
 0x29d   : > { %v2438_v48 = vrot.slane %v2424_v49, 6 }
 0x2a3   : > { %1648 = vxpose.xlu0.b32.cont [15/16] (narrow) %v1472_v18, 16  ;;  %v2482_v18 = vsel %vm2472_vm7, %v2434_v5, %v2418_v10 }
 0x2ab   : > { %1649 = vxpose.xlu0.b32.end [16/16] (narrow) %v1473_v43, 16 }
 0x2d7   : > { %v1650_v33 = vpop.trf.xlu0 }
 0x2d8   : > { %v2413_v19 = vmul.f32 %v3353_v27, %v1650_v33 }
 0x2da   : > { %v2421_v26 = vadd.f32 %v2413_v19, %v971_v57 }
 0x2dc   : > { %v2436_v44 = vrot.slane %v2421_v26, 5 }
 0x2de   : > { %v2443_v50 = vsel %vm2442_vm1, %v2435_v34, %v2436_v44  ;;  %v2449_v40 = vsel %vm2448_vm3, %v2435_v34, %v2436_v44  ;;  %v2455_v43 = vsel %vm2454_vm4, %v2435_v34, %v2436_v44  ;;  %v2461_v60 = vsel %vm2460_vm5, %v2435_v34, %v2436_v44 }
 0x2df   : > { %v2467_v30 = vsel %vm2466_vm6, %v2435_v34, %v2436_v44  ;;  %v2473_v52 = vsel %vm2472_vm7, %v2436_v44, %v2435_v34  ;;  %v2478_v32 = vsel %vm2440_vm0, %v2435_v34, %v2436_v44  ;;  %v2483_v51 = vsel %vm2446_vm2, %v2435_v34, %v2436_v44  ;;  %v1651_v62 = vpop.trf.xlu0 }
 0x2e0   : > { %v4151_v57 = vsel %vm4984_vm8, %v2441_v22, %v2443_v50  ;;  %v4154_v39 = vsel %vm2450_vm9, %v2447_v25, %v2449_v40  ;;  %v4157_v21 = vsel %vm2456_vm10, %v2453_v14, %v2455_v43  ;;  %v4160_v31 = vsel %vm2462_vm11, %v2459_v38, %v2461_v60 }
 0x2e1   : > { %v4163_v58 = vsel %vm2468_vm12, %v2465_v3, %v2467_v30  ;;  %v4166_v17 = vsel %vm2474_vm13, %v2471_v56, %v2473_v52  ;;  %v4169_v47 = vsel %vm2479_vm14, %v2478_v32, %v2477_v54  ;;  %v4172_v29 = vsel %vm2484_vm15, %v2483_v51, %v2482_v18 }
 0x2e2   : > { %v2417_v13 = vmul.f32 %v3353_v27, %v1651_v62 }
 0x2e4   : > { %v2425_v2 = vadd.f32 %v2417_v13, %v4105_v61 }
 0x2e6   : > { %v2439_v8 = vrot.slane %v2425_v2, 5 }
 0x2e8   : > { %v2488_v35 = vsel %vm2442_vm1, %v2438_v48, %v2439_v8  ;;  %v2491_v9 = vsel %vm2448_vm3, %v2438_v48, %v2439_v8  ;;  %v2495_v53 = vsel %vm2454_vm4, %v2438_v48, %v2439_v8  ;;  %v2499_v11 = vsel %vm2460_vm5, %v2438_v48, %v2439_v8 }
 0x2e9   : > { %v2503_v28 = vsel %vm2466_vm6, %v2438_v48, %v2439_v8  ;;  %v2507_v37 = vsel %vm2472_vm7, %v2439_v8, %v2438_v48  ;;  %v2511_v1 = vsel %vm2440_vm0, %v2438_v48, %v2439_v8  ;;  %v2515_v24 = vsel %vm2446_vm2, %v2438_v48, %v2439_v8 }
 0x2ea   : > { %v4187_v61 = vsel %vm4984_vm8, %v4111_v36, %v2488_v35  ;;  %v4191_v12 = vsel %vm2450_vm9, %v4114_v23, %v2491_v9  ;;  %v4195_v7 = vsel %vm2456_vm10, %v4117_v41, %v2495_v53  ;;  %v4199_v16 = vsel %vm2462_vm11, %v4120_v6, %v2499_v11 }
 0x2eb   : > { %v4203_v0 = vsel %vm2468_vm12, %v4123_v20, %v2503_v28  ;;  %v4207_v36 = vsel %vm2474_vm13, %v4126_v15, %v2507_v37  ;;  %v4211_v23 = vsel %vm2479_vm14, %v2511_v1, %v4129_v55  ;;  %v4215_v41 = vsel %vm2484_vm15, %v2515_v24, %v4132_v63 }
 0x310   : > { %v1682_v4 = vpop.trf.xlu1 }
 0x311   : > { %v1714_v27 = vrot.slane %v1682_v4, 1  ;;  %v1715_v6 = vrot.slane %v1682_v4, 2  ;;  %v1716_v42 = vrot.slane %v1682_v4, 3  ;;  %v1717_v5 = vrot.slane %v1682_v4, 4 }
 0x312   : > { %v1718_v33 = vrot.slane %v1682_v4, 5  ;;  %v1719_v20 = vrot.slane %v1682_v4, 6  ;;  %v1826_v10 = vperm.slane %v1682_v4, 0  ;;  %v1720_v19 = vrot.slane %v1682_v4, 7 }
 0x313   : > { %v1827_v34 = vperm.slane %v1714_v27, 0  ;;  %v1828_v15 = vperm.slane %v1715_v6, 0  ;;  %v1829_v26 = vperm.slane %v1716_v42, 0  ;;  %v1830_v22 = vperm.slane %v1717_v5, 0 }
 0x314   : > { %1954 = vst [vmem:[#allocation1] ss:$2 sm:$0xff] %v1826_v10  ;;  %v1831_v55 = vperm.slane %v1718_v33, 0  ;;  %v1832_v44 = vperm.slane %v1719_v20, 0  ;;  %v1833_v63 = vperm.slane %v1720_v19, 0 }
 0x315   : > { %1956 = vst [vmem:[#allocation1 + $0x1] ss:$2 sm:$0xff] %v1827_v34 }
 0x316   : > { %1958 = vst [vmem:[#allocation1 + $0x10] ss:$2 sm:$0xff] %v1828_v15 }
 0x317   : > { %1960 = vst [vmem:[#allocation1 + $0x11] ss:$2 sm:$0xff] %v1829_v26 }
 0x318   : > { %1962 = vst [vmem:[#allocation1 + $0x20] ss:$2 sm:$0xff] %v1830_v22  ;;  %v1683_v25 = vpop.trf.xlu1 }
 0x319   : > { %1964 = vst [vmem:[#allocation1 + $0x21] ss:$2 sm:$0xff] %v1831_v55  ;;  %v1721_v14 = vrot.slane %v1683_v25, 1  ;;  %v1722_v38 = vrot.slane %v1683_v25, 2  ;;  %v1723_v3 = vrot.slane %v1683_v25, 3  ;;  %v1724_v56 = vrot.slane %v1683_v25, 4 }
 0x31a   : > { %1966 = vst [vmem:[#allocation1 + $0x30] ss:$2 sm:$0xff] %v1832_v44  ;;  %v1725_v54 = vrot.slane %v1683_v25, 5  ;;  %v1834_v18 = vperm.slane %v1683_v25, 0  ;;  %v1726_v30 = vrot.slane %v1683_v25, 6  ;;  %v1727_v52 = vrot.slane %v1683_v25, 7 }
 0x31b   : > { %1968 = vst [vmem:[#allocation1 + $0x31] ss:$2 sm:$0xff] %v1833_v63  ;;  %v1835_v50 = vperm.slane %v1721_v14, 0  ;;  %v1836_v40 = vperm.slane %v1722_v38, 0  ;;  %v1837_v43 = vperm.slane %v1723_v3, 0  ;;  %v1838_v32 = vperm.slane %v1724_v56, 0 }
 0x31c   : > { %v1969_v60 = vld.sshfl [vmem:[#allocation1] sm:$0xff pattern:$0x75316420]  ;;  %v1839_v51 = vperm.slane %v1725_v54, 0  ;;  %v1840_v49 = vperm.slane %v1726_v30, 0  ;;  %v1841_v2 = vperm.slane %v1727_v52, 0 }
 0x31d   : > { %2217 = vxpose.xlu2.b32.start [1/16] (narrow) %v1969_v60, 16  ;;  %1973 = vst [vmem:[#allocation1] ss:$2 sm:$0xff] %v1834_v18 }
 0x31e   : > { %1974 = vst [vmem:[#allocation1 + $0x1] ss:$2 sm:$0xff] %v1835_v50  ;;  %v1970_v59 = vld.sshfl [vmem:[#allocation1 + $0x10] sm:$0xff pattern:$0x75316420] }
 0x31f   : > { %1975 = vst [vmem:[#allocation1 + $0x10] ss:$2 sm:$0xff] %v1836_v40 }
 0x320   : > { %v1684_v45 = vpop.trf.xlu1  ;;  %1976 = vst [vmem:[#allocation1 + $0x11] ss:$2 sm:$0xff] %v1837_v43  ;;  %v1971_v62 = vld.sshfl [vmem:[#allocation1 + $0x20] sm:$0xff pattern:$0x75316420] }
 0x321   : > { %v1728_v13 = vrot.slane %v1684_v45, 1  ;;  %v1729_v48 = vrot.slane %v1684_v45, 2  ;;  %1977 = vst [vmem:[#allocation1 + $0x20] ss:$2 sm:$0xff] %v1838_v32  ;;  %v1730_v8 = vrot.slane %v1684_v45, 3  ;;  %v1842_v35 = vperm.slane %v1684_v45, 0 }
 0x322   : > { %1978 = vst [vmem:[#allocation1 + $0x21] ss:$2 sm:$0xff] %v1839_v51  ;;  %v1731_v9 = vrot.slane %v1684_v45, 4  ;;  %v1972_v28 = vld.sshfl [vmem:[#allocation1 + $0x30] sm:$0xff pattern:$0x75316420] }
 0x323   : > { %v1843_v53 = vperm.slane %v1728_v13, 0  ;;  %v1844_v11 = vperm.slane %v1729_v48, 0  ;;  %1979 = vst [vmem:[#allocation1 + $0x30] ss:$2 sm:$0xff] %v1840_v49  ;;  %v1732_v1 = vrot.slane %v1684_v45, 5  ;;  %v1845_v24 = vperm.slane %v1730_v8, 0 }
 0x324   : > { %1980 = vst [vmem:[#allocation1 + $0x31] ss:$2 sm:$0xff] %v1841_v2  ;;  %v1733_v4 = vrot.slane %v1684_v45, 6  ;;  %v1846_v42 = vperm.slane %v1731_v9, 0  ;;  %v1734_v33 = vrot.slane %v1684_v45, 7 }
 0x325   : > { %2218 = vxpose.xlu2.b32.cont [2/16] (narrow) %v1970_v59, 16  ;;  %v4217_v37 = vld.sshfl [vmem:[#allocation1] sm:$0xff pattern:$0x75316420]  ;;  %v1847_v20 = vperm.slane %v1732_v1, 0 }
 0x326   : > { %1985 = vst [vmem:[#allocation1] ss:$2 sm:$0xff] %v1842_v35  ;;  %v1848_v10 = vperm.slane %v1733_v4, 0  ;;  %v1849_v55 = vperm.slane %v1734_v33, 0 }
 0x327   : > { %v4219_v27 = vld.sshfl [vmem:[#allocation1 + $0x10] sm:$0xff pattern:$0x75316420]  ;;  %1986 = vst [vmem:[#allocation1 + $0x1] ss:$2 sm:$0xff] %v1843_v53 }
 0x328   : > { %v4221_v6 = vpop.trf.xlu1  ;;  %1987 = vst [vmem:[#allocation1 + $0x10] ss:$2 sm:$0xff] %v1844_v11 }
 0x329   : > { %v1735_v5 = vrot.slane %v4221_v6, 1  ;;  %1988 = vst [vmem:[#allocation1 + $0x11] ss:$2 sm:$0xff] %v1845_v24  ;;  %v1736_v19 = vrot.slane %v4221_v6, 2  ;;  %v1850_v34 = vperm.slane %v4221_v6, 0  ;;  %v1737_v44 = vrot.slane %v4221_v6, 3 }
 0x32a   : > { %v4226_v26 = vld.sshfl [vmem:[#allocation1 + $0x20] sm:$0xff pattern:$0x75316420]  ;;  %v1738_v63 = vrot.slane %v4221_v6, 4  ;;  %v1739_v14 = vrot.slane %v4221_v6, 5  ;;  %v1740_v50 = vrot.slane %v4221_v6, 6 }
 0x32b   : > { %v1851_v15 = vperm.slane %v1735_v5, 0  ;;  %1989 = vst [vmem:[#allocation1 + $0x20] ss:$2 sm:$0xff] %v1846_v42  ;;  %v4228_v22 = vld.sshfl [vmem:[#allocation1 + $0x30] sm:$0xff pattern:$0x75316420] }
 0x32c   : > { %1990 = vst [vmem:[#allocation1 + $0x21] ss:$2 sm:$0xff] %v1847_v20  ;;  %v1852_v3 = vperm.slane %v1736_v19, 0  ;;  %v1853_v56 = vperm.slane %v1737_v44, 0  ;;  %v1854_v18 = vperm.slane %v1738_v63, 0  ;;  %v1855_v40 = vperm.slane %v1739_v14, 0 }
 0x32d   : > { %2219 = vxpose.xlu2.b32.cont [3/16] (narrow) %v1971_v62, 16  ;;  %1991 = vst [vmem:[#allocation1 + $0x30] ss:$2 sm:$0xff] %v1848_v10  ;;  %v1856_v49 = vperm.slane %v1740_v50, 0  ;;  %v1741_v8 = vrot.slane %v4221_v6, 7 }
 0x32e   : > { %v4232_v25 = vld.sshfl [vmem:[#allocation1] sm:$0xff pattern:$0x75316420]  ;;  %1992 = vst [vmem:[#allocation1 + $0x31] ss:$2 sm:$0xff] %v1849_v55 }
 0x32f   : > { %1997 = vst [vmem:[#allocation1] ss:$2 sm:$0xff] %v1850_v34  ;;  %v1857_v5 = vperm.slane %v1741_v8, 0 }
 0x330   : > { %v4235_v38 = vpop.trf.xlu1  ;;  %1998 = vst [vmem:[#allocation1 + $0x1] ss:$2 sm:$0xff] %v1851_v15  ;;  %v4240_v60 = vld.sshfl [vmem:[#allocation1 + $0x10] sm:$0xff pattern:$0x75316420] }
 0x331   : > { %v1742_v54 = vrot.slane %v4235_v38, 1  ;;  %v1858_v43 = vperm.slane %v4235_v38, 0  ;;  %1999 = vst [vmem:[#allocation1 + $0x10] ss:$2 sm:$0xff] %v1852_v3  ;;  %v1743_v52 = vrot.slane %v4235_v38, 2  ;;  %v1744_v51 = vrot.slane %v4235_v38, 3 }
 0x332   : > { %2000 = vst [vmem:[#allocation1 + $0x11] ss:$2 sm:$0xff] %v1853_v56  ;;  %v1745_v59 = vrot.slane %v4235_v38, 4  ;;  %v1746_v35 = vrot.slane %v4235_v38, 5  ;;  %v1747_v55 = vrot.slane %v4235_v38, 6  ;;  %v1748_v44 = vrot.slane %v4235_v38, 7 }
 0x333   : > { %v4242_v30 = vld.sshfl [vmem:[#allocation1 + $0x20] sm:$0xff pattern:$0x75316420]  ;;  %v1859_v32 = vperm.slane %v1742_v54, 0  ;;  %v1860_v13 = vperm.slane %v1743_v52, 0  ;;  %v1861_v48 = vperm.slane %v1744_v51, 0 }
 0x334   : > { %2001 = vst [vmem:[#allocation1 + $0x20] ss:$2 sm:$0xff] %v1854_v18  ;;  %v1862_v9 = vperm.slane %v1745_v59, 0  ;;  %v1863_v6 = vperm.slane %v1746_v35, 0  ;;  %v1864_v3 = vperm.slane %v1747_v55, 0  ;;  %v1865_v56 = vperm.slane %v1748_v44, 0 }
 0x335   : > { %2220 = vxpose.xlu2.b32.cont [4/16] (narrow) %v1972_v28, 16  ;;  %2002 = vst [vmem:[#allocation1 + $0x21] ss:$2 sm:$0xff] %v1855_v40  ;;  %v4254_v53 = vld.sshfl [vmem:[#allocation1 + $0x30] sm:$0xff pattern:$0x75316420] }
 0x336   : > { %2003 = vst [vmem:[#allocation1 + $0x30] ss:$2 sm:$0xff] %v1856_v49 }
 0x337   : > { %v4249_v62 = vld.sshfl [vmem:[#allocation1] sm:$0xff pattern:$0x75316420]  ;;  %2004 = vst [vmem:[#allocation1 + $0x31] ss:$2 sm:$0xff] %v1857_v5 }
 0x338   : > { %v4247_v45 = vpop.trf.xlu1  ;;  %2009 = vst [vmem:[#allocation1] ss:$2 sm:$0xff] %v1858_v43 }
 0x339   : > { %2010 = vst [vmem:[#allocation1 + $0x1] ss:$2 sm:$0xff] %v1859_v32  ;;  %v1749_v2 = vrot.slane %v4247_v45, 1  ;;  %v4257_v11 = vld.sshfl [vmem:[#allocation1 + $0x10] sm:$0xff pattern:$0x75316420] }
 0x33a   : > { %v1750_v28 = vrot.slane %v4247_v45, 2  ;;  %v1866_v1 = vperm.slane %v4247_v45, 0  ;;  %2011 = vst [vmem:[#allocation1 + $0x10] ss:$2 sm:$0xff] %v1860_v13  ;;  %v1751_v42 = vrot.slane %v4247_v45, 3  ;;  %v1752_v10 = vrot.slane %v4247_v45, 4 }
 0x33b   : > { %v1867_v24 = vperm.slane %v1749_v2, 0  ;;  %2012 = vst [vmem:[#allocation1 + $0x11] ss:$2 sm:$0xff] %v1861_v48  ;;  %v1753_v19 = vrot.slane %v4247_v45, 5  ;;  %v1754_v59 = vrot.slane %v4247_v45, 6  ;;  %v1755_v49 = vrot.slane %v4247_v45, 7 }
 0x33c   : > { %v4261_v4 = vld.sshfl [vmem:[#allocation1 + $0x20] sm:$0xff pattern:$0x75316420]  ;;  %v1869_v20 = vperm.slane %v1751_v42, 0  ;;  %v1870_v63 = vperm.slane %v1752_v10, 0 }
 0x33d   : > { %2221 = vxpose.xlu2.b32.cont [5/16] (narrow) %v4217_v37, 16  ;;  %2013 = vst [vmem:[#allocation1 + $0x20] ss:$2 sm:$0xff] %v1862_v9  ;;  %v1868_v37 = vperm.slane %v1750_v28, 0  ;;  %v1871_v14 = vperm.slane %v1753_v19, 0  ;;  %v1872_v9 = vperm.slane %v1754_v59, 0 }
 0x33e   : > { %2014 = vst [vmem:[#allocation1 + $0x21] ss:$2 sm:$0xff] %v1863_v6  ;;  %v4276_v38 = vld.sshfl [vmem:[#allocation1 + $0x30] sm:$0xff pattern:$0x75316420]  ;;  %v1873_v28 = vperm.slane %v1755_v49, 0 }
 0x33f   : > { %2015 = vst [vmem:[#allocation1 + $0x30] ss:$2 sm:$0xff] %v1864_v3 }
 0x340   : > { %v2017_v33 = vld.sshfl [vmem:[#allocation1] sm:$0xff pattern:$0x75316420]  ;;  %v4267_v34 = vpop.trf.xlu1  ;;  %2016 = vst [vmem:[#allocation1 + $0x31] ss:$2 sm:$0xff] %v1865_v56 }
 0x341   : > { %2249 = vxpose.xlu1.b32.start [1/16] (narrow) %v2017_v33, 16  ;;  %2021 = vst [vmem:[#allocation1] ss:$2 sm:$0xff] %v1866_v1  ;;  %v1756_v54 = vrot.slane %v4267_v34, 1  ;;  %v1758_v18 = vrot.slane %v4267_v34, 3  ;;  %v1874_v50 = vperm.slane %v4267_v34, 0 }
 0x342   : > { %2022 = vst [vmem:[#allocation1 + $0x1] ss:$2 sm:$0xff] %v1867_v24  ;;  %v2018_v15 = vld.sshfl [vmem:[#allocation1 + $0x10] sm:$0xff pattern:$0x75316420]  ;;  %v1759_v43 = vrot.slane %v4267_v34, 4 }
 0x343   : > { %2023 = vst [vmem:[#allocation1 + $0x10] ss:$2 sm:$0xff] %v1868_v37  ;;  %v1760_v32 = vrot.slane %v4267_v34, 5  ;;  %v1875_v51 = vperm.slane %v1756_v54, 0  ;;  %v1761_v55 = vrot.slane %v4267_v34, 6 }
 0x344   : > { %2024 = vst [vmem:[#allocation1 + $0x11] ss:$2 sm:$0xff] %v1869_v20  ;;  %v1878_v8 = vperm.slane %v1759_v43, 0 }
 0x345   : > { %2222 = vxpose.xlu2.b32.cont [6/16] (narrow) %v4219_v27, 16  ;;  %v1757_v27 = vrot.slane %v4267_v34, 2  ;;  %v2019_v40 = vld.sshfl [vmem:[#allocation1 + $0x20] sm:$0xff pattern:$0x75316420]  ;;  %v1879_v35 = vperm.slane %v1760_v32, 0 }
 0x346   : > { %2025 = vst [vmem:[#allocation1 + $0x20] ss:$2 sm:$0xff] %v1870_v63 }
 0x347   : > { %2026 = vst [vmem:[#allocation1 + $0x21] ss:$2 sm:$0xff] %v1871_v14  ;;  %v1876_v13 = vperm.slane %v1757_v27, 0  ;;  %v2020_v33 = vld.sshfl [vmem:[#allocation1 + $0x30] sm:$0xff pattern:$0x75316420] }
 0x348   : > { %v4282_v48 = vpop.trf.xlu1  ;;  %2027 = vst [vmem:[#allocation1 + $0x30] ss:$2 sm:$0xff] %v1872_v9  ;;  %v1880_v27 = vperm.slane %v1761_v55, 0 }
 0x349   : > { %2250 = vxpose.xlu1.b32.cont [2/16] (narrow) %v2018_v15, 16  ;;  %v2029_v52 = vld.sshfl [vmem:[#allocation1] sm:$0xff pattern:$0x75316420]  ;;  %v1763_v1 = vrot.slane %v4282_v48, 1  ;;  %v1764_v24 = vrot.slane %v4282_v48, 2 }
 0x34a   : > { %2033 = vst [vmem:[#allocation1] ss:$2 sm:$0xff] %v1874_v50  ;;  %v1765_v6 = vrot.slane %v4282_v48, 3  ;;  %v1766_v42 = vrot.slane %v4282_v48, 4  ;;  %v1882_v5 = vperm.slane %v4282_v48, 0  ;;  %v1767_v37 = vrot.slane %v4282_v48, 5 }
 0x34b   : > { %v4284_v2 = vld.sshfl [vmem:[#allocation1 + $0x10] sm:$0xff pattern:$0x75316420]  ;;  %2034 = vst [vmem:[#allocation1 + $0x1] ss:$2 sm:$0xff] %v1875_v51  ;;  %v1883_v20 = vperm.slane %v1763_v1, 0 }
 0x34c   : > { %2035 = vst [vmem:[#allocation1 + $0x10] ss:$2 sm:$0xff] %v1876_v13  ;;  %v1884_v10 = vperm.slane %v1764_v24, 0  ;;  %v1885_v19 = vperm.slane %v1765_v6, 0  ;;  %v1886_v44 = vperm.slane %v1766_v42, 0  ;;  %v1887_v63 = vperm.slane %v1767_v37, 0 }
 0x34d   : > { %2223 = vxpose.xlu2.b32.cont [7/16] (narrow) %v4226_v26, 16  ;;  %v1877_v26 = vperm.slane %v1758_v18, 0  ;;  %2028 = vst [vmem:[#allocation1 + $0x31] ss:$2 sm:$0xff] %v1873_v28  ;;  %v1769_v37 = vrot.slane %v4282_v48, 7 }
 0x34e   : > { %v4289_v45 = vld.sshfl [vmem:[#allocation1 + $0x20] sm:$0xff pattern:$0x75316420] }
 0x34f   : > { %2036 = vst [vmem:[#allocation1 + $0x11] ss:$2 sm:$0xff] %v1877_v26 }
 0x350   : > { %2037 = vst [vmem:[#allocation1 + $0x20] ss:$2 sm:$0xff] %v1878_v8 }
 0x351   : > { %2251 = vxpose.xlu1.b32.cont [3/16] (narrow) %v2019_v40, 16  ;;  %2038 = vst [vmem:[#allocation1 + $0x21] ss:$2 sm:$0xff] %v1879_v35 }
 0x352   : > { %v4297_v15 = vld.sshfl [vmem:[#allocation1] sm:$0xff pattern:$0x75316420] }
 0x353   : > { %2045 = vst [vmem:[#allocation1] ss:$2 sm:$0xff] %v1882_v5 }
 0x354   : > { %2046 = vst [vmem:[#allocation1 + $0x1] ss:$2 sm:$0xff] %v1883_v20  ;;  %v4312_v59 = vld.sshfl [vmem:[#allocation1 + $0x30] sm:$0xff pattern:$0x75316420] }
 0x355   : > { %2224 = vxpose.xlu2.b32.cont [8/16] (narrow) %v4228_v22, 16  ;;  %v4295_v22 = vpop.trf.xlu1  ;;  %2039 = vst [vmem:[#allocation1 + $0x30] ss:$2 sm:$0xff] %v1880_v27 }
 0x356   : > { %v4300_v14 = vld.sshfl [vmem:[#allocation1 + $0x10] sm:$0xff pattern:$0x75316420]  ;;  %v1770_v3 = vrot.slane %v4295_v22, 1  ;;  %v1771_v56 = vrot.slane %v4295_v22, 2  ;;  %v1772_v18 = vrot.slane %v4295_v22, 3 }
 0x357   : > { %2047 = vst [vmem:[#allocation1 + $0x10] ss:$2 sm:$0xff] %v1884_v10  ;;  %v1773_v50 = vrot.slane %v4295_v22, 4  ;;  %v1774_v40 = vrot.slane %v4295_v22, 5  ;;  %v1890_v43 = vperm.slane %v4295_v22, 0 }
 0x358   : > { %2048 = vst [vmem:[#allocation1 + $0x11] ss:$2 sm:$0xff] %v1885_v19  ;;  %v4305_v54 = vld.sshfl [vmem:[#allocation1 + $0x20] sm:$0xff pattern:$0x75316420]  ;;  %v1891_v32 = vperm.slane %v1770_v3, 0 }
 0x359   : > { %2252 = vxpose.xlu1.b32.cont [4/16] (narrow) %v2020_v33, 16  ;;  %2049 = vst [vmem:[#allocation1 + $0x20] ss:$2 sm:$0xff] %v1886_v44  ;;  %v1892_v51 = vperm.slane %v1771_v56, 0  ;;  %v1893_v49 = vperm.slane %v1772_v18, 0  ;;  %v1894_v8 = vperm.slane %v1773_v50, 0 }
 0x35a   : > { %2050 = vst [vmem:[#allocation1 + $0x21] ss:$2 sm:$0xff] %v1887_v63  ;;  %v1895_v35 = vperm.slane %v1774_v40, 0  ;;  %v1768_v33 = vrot.slane %v4282_v48, 6  ;;  %v1889_v56 = vperm.slane %v1769_v37, 0 }
 0x35b   : > { %v4314_v13 = vld.sshfl [vmem:[#allocation1] sm:$0xff pattern:$0x75316420] }
 0x35c   : > { %2057 = vst [vmem:[#allocation1] ss:$2 sm:$0xff] %v1890_v43  ;;  %v1888_v3 = vperm.slane %v1768_v33, 0 }
 0x35d   : > { %2225 = vxpose.xlu2.b32.cont [9/16] (narrow) %v4232_v25, 16  ;;  %v1762_v25 = vrot.slane %v4267_v34, 7  ;;  %v4316_v26 = vpop.trf.xlu1  ;;  %2058 = vst [vmem:[#allocation1 + $0x1] ss:$2 sm:$0xff] %v1891_v32 }
 0x35e   : > { %v1777_v34 = vrot.slane %v4316_v26, 1  ;;  %v1778_v1 = vrot.slane %v4316_v26, 2  ;;  %v1779_v24 = vrot.slane %v4316_v26, 3  ;;  %v1780_v6 = vrot.slane %v4316_v26, 4 }
 0x35f   : > { %v4319_v9 = vld.sshfl [vmem:[#allocation1 + $0x10] sm:$0xff pattern:$0x75316420]  ;;  %v1881_v28 = vperm.slane %v1762_v25, 0  ;;  %v1898_v42 = vperm.slane %v4316_v26, 0  ;;  %v1775_v25 = vrot.slane %v4295_v22, 6 }
 0x360   : > { %2059 = vst [vmem:[#allocation1 + $0x10] ss:$2 sm:$0xff] %v1892_v51  ;;  %v1899_v5 = vperm.slane %v1777_v34, 0  ;;  %v1900_v20 = vperm.slane %v1778_v1, 0  ;;  %v1901_v19 = vperm.slane %v1779_v24, 0  ;;  %v1902_v55 = vperm.slane %v1780_v6, 0 }
 0x361   : > { %2253 = vxpose.xlu1.b32.cont [5/16] (narrow) %v2029_v52, 16  ;;  %2060 = vst [vmem:[#allocation1 + $0x11] ss:$2 sm:$0xff] %v1893_v49  ;;  %v4322_v52 = vld.sshfl [vmem:[#allocation1 + $0x20] sm:$0xff pattern:$0x75316420] }
 0x362   : > { %2061 = vst [vmem:[#allocation1 + $0x20] ss:$2 sm:$0xff] %v1894_v8  ;;  %v1776_v51 = vrot.slane %v4295_v22, 7  ;;  %v1896_v24 = vperm.slane %v1775_v25, 0  ;;  %v1782_v33 = vrot.slane %v4316_v26, 6  ;;  %v1783_v37 = vrot.slane %v4316_v26, 7 }
 0x363   : > { %2062 = vst [vmem:[#allocation1 + $0x21] ss:$2 sm:$0xff] %v1895_v35 }
 0x364   : > { %2040 = vst [vmem:[#allocation1 + $0x31] ss:$2 sm:$0xff] %v1881_v28  ;;  %v2065_v10 = vld.sshfl [vmem:[#allocation1] sm:$0xff pattern:$0x75316420]  ;;  %v1897_v22 = vperm.slane %v1776_v51, 0 }
 0x365   : > { %2226 = vxpose.xlu2.b32.cont [10/16] (narrow) %v4240_v60, 16  ;;  %v1781_v60 = vrot.slane %v4316_v26, 5  ;;  %2281 = vxpose.xlu0.b32.start [1/16] (narrow) %v2065_v10, 16  ;;  %2069 = vst [vmem:[#allocation1] ss:$2 sm:$0xff] %v1898_v42  ;;  %v4333_v44 = vpop.trf.xlu1 }
 0x366   : > { %2070 = vst [vmem:[#allocation1 + $0x1] ss:$2 sm:$0xff] %v1899_v5  ;;  %v1784_v27 = vrot.slane %v4333_v44, 1  ;;  %v1785_v48 = vrot.slane %v4333_v44, 2  ;;  %v1906_v40 = vperm.slane %v4333_v44, 0  ;;  %v1787_v43 = vrot.slane %v4333_v44, 4 }
 0x368   : > { %v2066_v63 = vld.sshfl [vmem:[#allocation1 + $0x10] sm:$0xff pattern:$0x75316420]  ;;  %v1907_v32 = vperm.slane %v1784_v27, 0  ;;  %v1908_v49 = vperm.slane %v1785_v48, 0  ;;  %v1910_v28 = vperm.slane %v1787_v43, 0 }
 0x369   : > { %2254 = vxpose.xlu1.b32.cont [6/16] (narrow) %v4284_v2, 16  ;;  %v1903_v2 = vperm.slane %v1781_v60, 0  ;;  %2071 = vst [vmem:[#allocation1 + $0x10] ss:$2 sm:$0xff] %v1900_v20  ;;  %v1789_v43 = vrot.slane %v4333_v44, 6 }
 0x36a   : > { %v2067_v18 = vld.sshfl [vmem:[#allocation1 + $0x20] sm:$0xff pattern:$0x75316420]  ;;  %2072 = vst [vmem:[#allocation1 + $0x11] ss:$2 sm:$0xff] %v1901_v19 }
 0x36b   : > { %2073 = vst [vmem:[#allocation1 + $0x20] ss:$2 sm:$0xff] %v1902_v55  ;;  %v4337_v50 = vld.sshfl [vmem:[#allocation1 + $0x30] sm:$0xff pattern:$0x75316420] }
 0x36c   : > { %2074 = vst [vmem:[#allocation1 + $0x21] ss:$2 sm:$0xff] %v1903_v2  ;;  %v1905_v2 = vperm.slane %v1783_v37, 0 }
 0x36d   : > { %2227 = vxpose.xlu2.b32.cont [11/16] (narrow) %v4242_v30, 16  ;;  %v1786_v30 = vrot.slane %v4333_v44, 3  ;;  %2051 = vst [vmem:[#allocation1 + $0x30] ss:$2 sm:$0xff] %v1888_v3  ;;  %2282 = vxpose.xlu0.b32.cont [2/16] (narrow) %v2066_v63, 16  ;;  %v4351_v1 = vpop.trf.xlu1  ;;  %v1904_v63 = vperm.slane %v1782_v33, 0 }
 0x36e   : > { %2052 = vst [vmem:[#allocation1 + $0x31] ss:$2 sm:$0xff] %v1889_v56  ;;  %v4346_v8 = vld.sshfl [vmem:[#allocation1] sm:$0xff pattern:$0x75316420]  ;;  %v1791_v60 = vrot.slane %v4351_v1, 1 }
 0x36f   : > { %v1909_v35 = vperm.slane %v1786_v30, 0  ;;  %2081 = vst [vmem:[#allocation1] ss:$2 sm:$0xff] %v1906_v40  ;;  %v1792_v5 = vrot.slane %v4351_v1, 2  ;;  %v1793_v20 = vrot.slane %v4351_v1, 3  ;;  %v1794_v10 = vrot.slane %v4351_v1, 4 }
 0x370   : > { %2082 = vst [vmem:[#allocation1 + $0x1] ss:$2 sm:$0xff] %v1907_v32  ;;  %v1915_v19 = vperm.slane %v1791_v60, 0  ;;  %v1795_v3 = vrot.slane %v4351_v1, 5 }
 0x371   : > { %2255 = vxpose.xlu1.b32.cont [7/16] (narrow) %v4289_v45, 16  ;;  %v1788_v45 = vrot.slane %v4333_v44, 5  ;;  %v4349_v34 = vld.sshfl [vmem:[#allocation1 + $0x10] sm:$0xff pattern:$0x75316420]  ;;  %v1916_v55 = vperm.slane %v1792_v5, 0 }
 0x372   : > { %2083 = vst [vmem:[#allocation1 + $0x10] ss:$2 sm:$0xff] %v1908_v49  ;;  %v1917_v26 = vperm.slane %v1793_v20, 0  ;;  %v1919_v40 = vperm.slane %v1795_v3, 0 }
 0x373   : > { %2084 = vst [vmem:[#allocation1 + $0x11] ss:$2 sm:$0xff] %v1909_v35  ;;  %v1911_v6 = vperm.slane %v1788_v45, 0  ;;  %v1912_v45 = vperm.slane %v1789_v43, 0 }
 0x375   : > { %2228 = vxpose.xlu2.b32.cont [12/16] (narrow) %v4254_v53, 16  ;;  %v4354_v53 = vld.sshfl [vmem:[#allocation1 + $0x20] sm:$0xff pattern:$0x75316420]  ;;  %2283 = vxpose.xlu0.b32.cont [3/16] (narrow) %v2067_v18, 16  ;;  %v4367_v56 = vpop.trf.xlu1  ;;  %v1918_v18 = vperm.slane %v1794_v10, 0 }
 0x376   : > { %v4356_v42 = vld.sshfl [vmem:[#allocation1 + $0x30] sm:$0xff pattern:$0x75316420]  ;;  %2085 = vst [vmem:[#allocation1 + $0x20] ss:$2 sm:$0xff] %v1910_v28  ;;  %v1798_v30 = vrot.slane %v4367_v56, 1 }
 0x377   : > { %2063 = vst [vmem:[#allocation1 + $0x30] ss:$2 sm:$0xff] %v1896_v24  ;;  %v4369_v27 = vld.sshfl [vmem:[#allocation1] sm:$0xff pattern:$0x75316420]  ;;  %v1922_v25 = vperm.slane %v4367_v56, 0 }
 0x378   : > { %2064 = vst [vmem:[#allocation1 + $0x31] ss:$2 sm:$0xff] %v1897_v22  ;;  %v1799_v51 = vrot.slane %v4367_v56, 2  ;;  %v1923_v49 = vperm.slane %v1798_v30, 0  ;;  %v1800_v35 = vrot.slane %v4367_v56, 3  ;;  %v1803_v3 = vrot.slane %v4367_v56, 6 }
 0x379   : > { %2256 = vxpose.xlu1.b32.cont [8/16] (narrow) %v4312_v59, 16  ;;  %v1914_v59 = vperm.slane %v4351_v1, 0  ;;  %2086 = vst [vmem:[#allocation1 + $0x21] ss:$2 sm:$0xff] %v1911_v6 }
 0x37a   : > { %2094 = vst [vmem:[#allocation1 + $0x1] ss:$2 sm:$0xff] %v1915_v19  ;;  %v1924_v22 = vperm.slane %v1799_v51, 0  ;;  %v1925_v6 = vperm.slane %v1800_v35, 0  ;;  %v1928_v43 = vperm.slane %v1803_v3, 0 }
 0x37b   : > { %2093 = vst [vmem:[#allocation1] ss:$2 sm:$0xff] %v1914_v59  ;;  %v1797_v59 = vrot.slane %v4351_v1, 7 }
 0x37d   : > { %2229 = vxpose.xlu2.b32.cont [13/16] (narrow) %v4249_v62, 16  ;;  %v4372_v62 = vld.sshfl [vmem:[#allocation1 + $0x10] sm:$0xff pattern:$0x75316420]  ;;  %v1695_v19 = vpop.trf.xlu1 }
 0x37e   : > { %2095 = vst [vmem:[#allocation1 + $0x10] ss:$2 sm:$0xff] %v1916_v55  ;;  %v1806_v55 = vrot.slane %v1695_v19, 2 }
 0x37f   : > { %v2068_v48 = vld.sshfl [vmem:[#allocation1 + $0x30] sm:$0xff pattern:$0x75316420]  ;;  %2096 = vst [vmem:[#allocation1 + $0x11] ss:$2 sm:$0xff] %v1917_v26  ;;  %v1930_v26 = vperm.slane %v1695_v19, 0 }
 0x380   : > { %2284 = vxpose.xlu0.b32.cont [4/16] (narrow) %v2068_v48, 16  ;;  %2075 = vst [vmem:[#allocation1 + $0x30] ss:$2 sm:$0xff] %v1904_v63  ;;  %v4377_v32 = vld.sshfl [vmem:[#allocation1 + $0x20] sm:$0xff pattern:$0x75316420] }
 0x381   : > { %2257 = vxpose.xlu1.b32.cont [9/16] (narrow) %v4297_v15, 16  ;;  %2076 = vst [vmem:[#allocation1 + $0x31] ss:$2 sm:$0xff] %v1905_v2  ;;  %v1790_v15 = vrot.slane %v4333_v44, 7  ;;  %v1802_v44 = vrot.slane %v4367_v56, 5  ;;  %v1807_v63 = vrot.slane %v1695_v19, 3 }
 0x382   : > { %2097 = vst [vmem:[#allocation1 + $0x20] ss:$2 sm:$0xff] %v1918_v18  ;;  %v4385_v28 = vld.sshfl [vmem:[#allocation1] sm:$0xff pattern:$0x75316420]  ;;  %v1808_v2 = vrot.slane %v1695_v19, 4 }
 0x383   : > { %2098 = vst [vmem:[#allocation1 + $0x21] ss:$2 sm:$0xff] %v1919_v40  ;;  %v1913_v24 = vperm.slane %v1790_v15, 0  ;;  %v1927_v37 = vperm.slane %v1802_v44, 0  ;;  %v1932_v48 = vperm.slane %v1806_v55, 0  ;;  %v1933_v30 = vperm.slane %v1807_v63, 0 }
 0x384   : > { %2105 = vst [vmem:[#allocation1] ss:$2 sm:$0xff] %v1922_v25 }
 0x385   : > { %2230 = vxpose.xlu2.b32.cont [14/16] (narrow) %v4257_v11, 16  ;;  %v1801_v11 = vrot.slane %v4367_v56, 4  ;;  %2106 = vst [vmem:[#allocation1 + $0x1] ss:$2 sm:$0xff] %v1923_v49  ;;  %v1811_v49 = vrot.slane %v1695_v19, 7 }
 0x386   : > { %v4390_v33 = vld.sshfl [vmem:[#allocation1 + $0x10] sm:$0xff pattern:$0x75316420] }
 0x387   : > { %v1926_v5 = vperm.slane %v1801_v11, 0  ;;  %2107 = vst [vmem:[#allocation1 + $0x10] ss:$2 sm:$0xff] %v1924_v22  ;;  %v1937_v35 = vperm.slane %v1811_v49, 0 }
 0x388   : > { %2285 = vxpose.xlu0.b32.cont [5/16] (narrow) %v4346_v8, 16  ;;  %v2080_v60 = vld.sshfl [vmem:[#allocation1 + $0x30] sm:$0xff pattern:$0x75316420]  ;;  %2108 = vst [vmem:[#allocation1 + $0x11] ss:$2 sm:$0xff] %v1925_v6 }
 0x389   : > { %2258 = vxpose.xlu1.b32.cont [10/16] (narrow) %v4300_v14, 16  ;;  %2087 = vst [vmem:[#allocation1 + $0x30] ss:$2 sm:$0xff] %v1912_v45  ;;  %v1796_v14 = vrot.slane %v4351_v1, 6  ;;  %v1921_v8 = vperm.slane %v1797_v59, 0 }
 0x38a   : > { %2088 = vst [vmem:[#allocation1 + $0x31] ss:$2 sm:$0xff] %v1913_v24  ;;  %v4394_v20 = vld.sshfl [vmem:[#allocation1 + $0x20] sm:$0xff pattern:$0x75316420] }
 0x38b   : > { %2109 = vst [vmem:[#allocation1 + $0x20] ss:$2 sm:$0xff] %v1926_v5 }
 0x38c   : > { %2110 = vst [vmem:[#allocation1 + $0x21] ss:$2 sm:$0xff] %v1927_v37  ;;  %v2113_v1 = vld.sshfl [vmem:[#allocation1] sm:$0xff pattern:$0x75316420] }
 0x38d   : > { %2231 = vxpose.xlu2.b32.cont [15/16] (narrow) %v4261_v4, 16  ;;  %v1920_v4 = vperm.slane %v1796_v14, 0  ;;  %2117 = vst [vmem:[#allocation1] ss:$2 sm:$0xff] %v1930_v26 }
 0x38f   : > { %v2114_v40 = vld.sshfl [vmem:[#allocation1 + $0x10] sm:$0xff pattern:$0x75316420] }
 0x390   : > { %2286 = vxpose.xlu0.b32.cont [6/16] (narrow) %v4349_v34, 16  ;;  %v1809_v34 = vrot.slane %v1695_v19, 5  ;;  %2119 = vst [vmem:[#allocation1 + $0x10] ss:$2 sm:$0xff] %v1932_v48 }
 0x391   : > { %2259 = vxpose.xlu1.b32.cont [11/16] (narrow) %v4305_v54, 16  ;;  %v4399_v10 = vld.sshfl [vmem:[#allocation1 + $0x30] sm:$0xff pattern:$0x75316420]  ;;  %v1805_v54 = vrot.slane %v1695_v19, 1 }
 0x392   : > { %2099 = vst [vmem:[#allocation1 + $0x30] ss:$2 sm:$0xff] %v1920_v4 }
 0x393   : > { %2100 = vst [vmem:[#allocation1 + $0x31] ss:$2 sm:$0xff] %v1921_v8  ;;  %v1931_v18 = vperm.slane %v1805_v54, 0  ;;  %v2115_v15 = vld.sshfl [vmem:[#allocation1 + $0x20] sm:$0xff pattern:$0x75316420] }
 0x394   : > { %2120 = vst [vmem:[#allocation1 + $0x11] ss:$2 sm:$0xff] %v1933_v30 }
 0x395   : > { %2232 = vxpose.xlu2.b32.end [16/16] (narrow) %v4276_v38, 16  ;;  %v1804_v38 = vrot.slane %v4367_v56, 7  ;;  %2118 = vst [vmem:[#allocation1 + $0x1] ss:$2 sm:$0xff] %v1931_v18  ;;  %v1810_v56 = vrot.slane %v1695_v19, 6 }
 0x397   : > { %v1929_v25 = vperm.slane %v1804_v38, 0 }
 0x398   : > { %2287 = vxpose.xlu0.b32.cont [7/16] (narrow) %v4354_v53, 16  ;;  %v1935_v53 = vperm.slane %v1809_v34, 0 }
 0x399   : > { %2260 = vxpose.xlu1.b32.cont [12/16] (narrow) %v4337_v50, 16  ;;  %v1934_v50 = vperm.slane %v1808_v2, 0 }
 0x39a   : > { %v4406_v51 = vld.sshfl [vmem:[#allocation1 + $0x30] sm:$0xff pattern:$0x75316420]  ;;  %2122 = vst [vmem:[#allocation1 + $0x21] ss:$2 sm:$0xff] %v1935_v53 }
 0x39b   : > { %2121 = vst [vmem:[#allocation1 + $0x20] ss:$2 sm:$0xff] %v1934_v50  ;;  %v2126_v4 = vld.sshfl [vmem:[#allocation1 + $0x10] sm:$0xff pattern:$0x75316420] }
 0x39c   : > { %2111 = vst [vmem:[#allocation1 + $0x30] ss:$2 sm:$0xff] %v1928_v43  ;;  %v2125_v11 = vld.sshfl [vmem:[#allocation1] sm:$0xff pattern:$0x75316420] }
 0x39d   : > { %2313 = vxpose.xlu2.b32.start [1/16] (narrow) %v2113_v1, 16  ;;  %2112 = vst [vmem:[#allocation1 + $0x31] ss:$2 sm:$0xff] %v1929_v25 }
 0x3a0   : > { %2288 = vxpose.xlu0.b32.cont [8/16] (narrow) %v2080_v60, 16 }
 0x3a1   : > { %2261 = vxpose.xlu1.b32.cont [13/16] (narrow) %v4314_v13, 16  ;;  %v1936_v13 = vperm.slane %v1810_v56, 0 }
 0x3a4   : > { %v2116_v45 = vld.sshfl [vmem:[#allocation1 + $0x30] sm:$0xff pattern:$0x75316420] }
 0x3a5   : > { %2314 = vxpose.xlu2.b32.cont [2/16] (narrow) %v2114_v40, 16  ;;  %2123 = vst [vmem:[#allocation1 + $0x30] ss:$2 sm:$0xff] %v1936_v13 }
 0x3a6   : > { %2124 = vst [vmem:[#allocation1 + $0x31] ss:$2 sm:$0xff] %v1937_v35 }
 0x3a8   : > { %2289 = vxpose.xlu0.b32.cont [9/16] (narrow) %v4369_v27, 16 }
 0x3a9   : > { %2262 = vxpose.xlu1.b32.cont [14/16] (narrow) %v4319_v9, 16  ;;  %v1696_v9 = vpop.trf.xlu1 }
 0x3aa   : > { %v1812_v24 = vrot.slane %v1696_v9, 1  ;;  %v1813_v44 = vrot.slane %v1696_v9, 2  ;;  %v1814_v27 = vrot.slane %v1696_v9, 3  ;;  %v1815_v22 = vrot.slane %v1696_v9, 4 }
 0x3ab   : > { %v1816_v6 = vrot.slane %v1696_v9, 5  ;;  %v1817_v60 = vrot.slane %v1696_v9, 6  ;;  %v1938_v5 = vperm.slane %v1696_v9, 0  ;;  %v1818_v14 = vrot.slane %v1696_v9, 7 }
 0x3ac   : > { %v1939_v37 = vperm.slane %v1812_v24, 0  ;;  %v1941_v59 = vperm.slane %v1814_v27, 0  ;;  %v4434_v27 = vrot.slane %v4163_v58, 4 }
 0x3ad   : > { %2315 = vxpose.xlu2.b32.cont [3/16] (narrow) %v2115_v15, 16  ;;  %2129 = vst [vmem:[#allocation1] ss:$2 sm:$0xff] %v1938_v5  ;;  %v1944_v8 = vperm.slane %v1817_v60, 0  ;;  %v1945_v1 = vperm.slane %v1818_v14, 0 }
 0x3ae   : > { %2130 = vst [vmem:[#allocation1 + $0x1] ss:$2 sm:$0xff] %v1939_v37  ;;  %v2128_v19 = vld.sshfl [vmem:[#allocation1 + $0x30] sm:$0xff pattern:$0x75316420] }
 0x3af   : > { %2132 = vst [vmem:[#allocation1 + $0x11] ss:$2 sm:$0xff] %v1941_v59 }
 0x3b0   : > { %2290 = vxpose.xlu0.b32.cont [10/16] (narrow) %v4372_v62, 16  ;;  %v1942_v62 = vperm.slane %v1815_v22, 0  ;;  %2135 = vst [vmem:[#allocation1 + $0x30] ss:$2 sm:$0xff] %v1944_v8  ;;  %v4437_v22 = vrot.slane %v4166_v17, 5 }
 0x3b1   : > { %2263 = vxpose.xlu1.b32.cont [15/16] (narrow) %v4322_v52, 16  ;;  %v1940_v52 = vperm.slane %v1813_v44, 0  ;;  %2136 = vst [vmem:[#allocation1 + $0x31] ss:$2 sm:$0xff] %v1945_v1  ;;  %v1697_v54 = vpop.trf.xlu1  ;;  %v4431_v44 = vrot.slane %v4160_v31, 3 }
 0x3b2   : > { %v1819_v55 = vrot.slane %v1697_v54, 1  ;;  %v1820_v63 = vrot.slane %v1697_v54, 2  ;;  %v1821_v2 = vrot.slane %v1697_v54, 3  ;;  %v1822_v3 = vrot.slane %v1697_v54, 4 }
 0x3b3   : > { %2131 = vst [vmem:[#allocation1 + $0x10] ss:$2 sm:$0xff] %v1940_v52  ;;  %v1823_v26 = vrot.slane %v1697_v54, 5  ;;  %v1824_v38 = vrot.slane %v1697_v54, 6  ;;  %v1946_v18 = vperm.slane %v1697_v54, 0  ;;  %v1825_v48 = vrot.slane %v1697_v54, 7 }
 0x3b4   : > { %v1948_v30 = vperm.slane %v1820_v63, 0  ;;  %v1949_v40 = vperm.slane %v1821_v2, 0  ;;  %v1950_v50 = vperm.slane %v1822_v3, 0 }
 0x3b5   : > { %2316 = vxpose.xlu2.b32.cont [4/16] (narrow) %v2116_v45, 16  ;;  %v2137_v34 = vld.sshfl [vmem:[#allocation1] sm:$0xff pattern:$0x75316420]  ;;  %v1951_v43 = vperm.slane %v1823_v26, 0  ;;  %v1953_v25 = vperm.slane %v1825_v48, 0 }
 0x3b6   : > { %2141 = vst [vmem:[#allocation1] ss:$2 sm:$0xff] %v1946_v18  ;;  %v2407_v45 = vshrl.u32 %v2345_v46, 7  ;;  %v4440_v46 = vrot.slane %v4169_v47, 6  ;;  %v4476_v48 = vrot.slane %v4191_v12, 1  ;;  %v4492_v12 = vrot.slane %v4207_v36, 5 }
 0x3b8   : > { %2291 = vxpose.xlu0.b32.cont [11/16] (narrow) %v4377_v32, 16  ;;  %v2127_v32 = vld.sshfl [vmem:[#allocation1 + $0x20] sm:$0xff pattern:$0x75316420]  ;;  %v2408_v9 = vcvt.s32.f32 %v2407_v45  ;;  %5011 = vst [vmem:[#allocation20_spill] sm:$0xff] %v4476_v48 }
 0x3b9   : > { %2264 = vxpose.xlu1.b32.end [16/16] (narrow) %v4356_v42, 16  ;;  %v1943_v42 = vperm.slane %v1816_v6, 0  ;;  %2133 = vst [vmem:[#allocation1 + $0x20] ss:$2 sm:$0xff] %v1942_v62  ;;  %v2787_v6 = vperm.slane %v4151_v57, 1 }
 0x3ba   : > { %v2138_v53 = vld.sshfl [vmem:[#allocation1 + $0x10] sm:$0xff pattern:$0x75316420]  ;;  %v4428_v24 = vadd.f32 -1.5, %v2408_v9  ;;  %5015 = vst [vmem:[#allocation24_spill] sm:$0xff] %v4492_v12 }
 0x3bb   : > { %2134 = vst [vmem:[#allocation1 + $0x21] ss:$2 sm:$0xff] %v1943_v42  ;;  %v2140_v56 = vld.sshfl [vmem:[#allocation1 + $0x30] sm:$0xff pattern:$0x75316420] }
 0x3bc   : > { %2143 = vst [vmem:[#allocation1 + $0x10] ss:$2 sm:$0xff] %v1948_v30 }
 0x3bd   : > { %2317 = vxpose.xlu2.b32.cont [5/16] (narrow) %v2125_v11, 16  ;;  %2144 = vst [vmem:[#allocation1 + $0x11] ss:$2 sm:$0xff] %v1949_v40  ;;  %v4420_v11 = vpop.trf.xlu2 }
 0x3be   : > { %2148 = vst [vmem:[#allocation1 + $0x31] ss:$2 sm:$0xff] %v1953_v25  ;;  %v4495_v25 = vrot.slane %v4211_v23, 6 }
 0x3c0   : > { %2292 = vxpose.xlu0.b32.cont [12/16] (narrow) %v4399_v10, 16  ;;  %v1947_v10 = vperm.slane %v1819_v55, 0 }
 0x3c2   : > { %2142 = vst [vmem:[#allocation1 + $0x1] ss:$2 sm:$0xff] %v1947_v10  ;;  %v2139_v15 = vld.sshfl [vmem:[#allocation1 + $0x20] sm:$0xff pattern:$0x75316420] }
 0x3c3   : > { %2145 = vst [vmem:[#allocation1 + $0x20] ss:$2 sm:$0xff] %v1950_v50 }
 0x3c4   : > { %2146 = vst [vmem:[#allocation1 + $0x21] ss:$2 sm:$0xff] %v1951_v43  ;;  %v2150_v13 = vld.sshfl [vmem:[#allocation1 + $0x10] sm:$0xff pattern:$0x75316420] }
 0x3c5   : > { %2318 = vxpose.xlu2.b32.cont [6/16] (narrow) %v2126_v4, 16 }
 0x3c8   : > { %2293 = vxpose.xlu0.b32.cont [13/16] (narrow) %v4385_v28, 16  ;;  %v1952_v28 = vperm.slane %v1824_v38, 0 }
 0x3c9   : > { %v2149_v49 = vld.sshfl [vmem:[#allocation1] sm:$0xff pattern:$0x75316420] }
 0x3ca   : > { %2147 = vst [vmem:[#allocation1 + $0x30] ss:$2 sm:$0xff] %v1952_v28  ;;  %v4486_v28 = vrot.slane %v4199_v16, 3 }
 0x3cb   : > { %v2151_v35 = vld.sshfl [vmem:[#allocation1 + $0x20] sm:$0xff pattern:$0x75316420] }
 0x3cc   : > { %5013 = vst [vmem:[#allocation22_spill] sm:$0xff] %v4486_v28 }
 0x3cd   : > { %2319 = vxpose.xlu2.b32.cont [7/16] (narrow) %v2127_v32, 16 }
 0x3d0   : > { %2294 = vxpose.xlu0.b32.cont [14/16] (narrow) %v4390_v33, 16 }
 0x3d1   : > { %v2152_v33 = vld.sshfl [vmem:[#allocation1 + $0x30] sm:$0xff pattern:$0x75316420] }
 0x3d5   : > { %2320 = vxpose.xlu2.b32.cont [8/16] (narrow) %v2128_v19, 16 }
 0x3d8   : > { %2295 = vxpose.xlu0.b32.cont [15/16] (narrow) %v4394_v20, 16  ;;  %v4423_v20 = vrot.slane %v4154_v39, 1  ;;  %v4443_v39 = vrot.slane %v4172_v29, 7  ;;  %v4454_v29 = vpop.trf.xlu2 }
 0x3dd   : > { %2321 = vxpose.xlu2.b32.cont [9/16] (narrow) %v2137_v34, 16 }
 0x3e0   : > { %2296 = vxpose.xlu0.b32.end [16/16] (narrow) %v4406_v51, 16  ;;  %v4426_v51 = vrot.slane %v4157_v21, 2 }
 0x3e5   : > { %2322 = vxpose.xlu2.b32.cont [10/16] (narrow) %v2138_v53, 16  ;;  %v2265_v10 = vpop.trf.xlu1  ;;  %v4482_v53 = vrot.slane %v4195_v7, 2 }
 0x3e7   : > { %5012 = vst [vmem:[#allocation21_spill] sm:$0xff] %v4482_v53 }
 0x3ed   : > { %2323 = vxpose.xlu2.b32.cont [11/16] (narrow) %v2139_v15, 16  ;;  %v4489_v15 = vrot.slane %v4203_v0, 4  ;;  %v2266_v23 = vpop.trf.xlu1 }
 0x3ee   : > { %v4540_v38 = vrot.slane %v2266_v23, 7 }
 0x3ef   : > { %5014 = vst [vmem:[#allocation23_spill] sm:$0xff] %v4489_v15 }
 0x3f5   : > { %2324 = vxpose.xlu2.b32.cont [12/16] (narrow) %v2140_v56, 16  ;;  %v4498_v56 = vrot.slane %v4215_v41, 7 }
 0x3fd   : > { %2325 = vxpose.xlu2.b32.cont [13/16] (narrow) %v2149_v49, 16  ;;  %v2526_v49 = vrot.slane %v2265_v10, 7 }
 0x3ff   : > { %v2535_v41 = vsel %vm2446_vm2, %v4420_v11, %v2526_v49  ;;  %v2539_v30 = vsel %vm2442_vm1, %v4420_v11, %v2526_v49  ;;  %v2547_v0 = vsel %vm2454_vm4, %v4420_v11, %v2526_v49  ;;  %v2551_v55 = vsel %vm2460_vm5, %v4420_v11, %v2526_v49 }
 0x400   : > { %v2555_v19 = vsel %vm2466_vm6, %v4420_v11, %v2526_v49  ;;  %v2559_v32 = vsel %vm2472_vm7, %v2526_v49, %v4420_v11 }
 0x405   : > { %2326 = vxpose.xlu2.b32.cont [14/16] (narrow) %v2150_v13, 16 }
 0x40c   : > { %v2297_v13 = vpop.trf.xlu0 }
 0x40d   : > { %2327 = vxpose.xlu2.b32.cont [15/16] (narrow) %v2151_v35, 16  ;;  %v2527_v16 = vrot.slane %v2297_v13, 6  ;;  %v2543_v13 = vsel %vm2448_vm3, %v4420_v11, %v2526_v49 }
 0x415   : > { %2328 = vxpose.xlu2.b32.end [16/16] (narrow) %v2152_v33, 16  ;;  %v2532_v33 = vsel %vm2440_vm0, %v4420_v11, %v2526_v49  ;;  %v4563_v11 = vsel %vm2440_vm0, %v4454_v29, %v4540_v38 }
 0x436   : > { %v2329_v9 = vpop.trf.xlu2 }
 0x437   : > { %v2528_v50 = vrot.slane %v2329_v9, 5 }
 0x439   : > { %v2536_v45 = vsel %vm2448_vm3, %v2527_v16, %v2528_v50  ;;  %v2540_v7 = vsel %vm2454_vm4, %v2527_v16, %v2528_v50  ;;  %v2544_v9 = vsel %vm2460_vm5, %v2527_v16, %v2528_v50  ;;  %v2548_v10 = vsel %vm2466_vm6, %v2527_v16, %v2528_v50 }
 0x43a   : > { %v2552_v36 = vsel %vm2472_vm7, %v2528_v50, %v2527_v16  ;;  %v2556_v35 = vsel %vm2440_vm0, %v2527_v16, %v2528_v50  ;;  %v2533_v34 = vsel %vm2442_vm1, %v2527_v16, %v2528_v50  ;;  %v2537_v2 = vsel %vm2450_vm9, %v2535_v41, %v2536_v45 }
 0x43b   : > { %v2560_v43 = vsel %vm2446_vm2, %v2527_v16, %v2528_v50  ;;  %v2541_v40 = vsel %vm2456_vm10, %v2539_v30, %v2540_v7  ;;  %v2545_v23 = vsel %vm2462_vm11, %v2543_v13, %v2544_v9  ;;  %v2549_v18 = vsel %vm2468_vm12, %v2547_v0, %v2548_v10 }
 0x43c   : > { %v2553_v26 = vsel %vm2474_vm13, %v2551_v55, %v2552_v36  ;;  %v2557_v41 = vsel %vm2479_vm14, %v2556_v35, %v2555_v19  ;;  %v2534_v16 = vsel %vm4984_vm8, %v2532_v33, %v2533_v34  ;;  %v2538_v45 = vrot.slane %v2537_v2, 1 }
 0x43d   : > { %v2561_v42 = vsel %vm2484_vm15, %v2560_v43, %v2559_v32  ;;  %v4568_v55 = vsel %vm2446_vm2, %v4454_v29, %v4540_v38  ;;  %v2542_v19 = vrot.slane %v2541_v40, 2  ;;  %v2546_v30 = vrot.slane %v2545_v23, 3 }
 0x43e   : > { %v2550_v7 = vrot.slane %v2549_v18, 4  ;;  %v2554_v49 = vrot.slane %v2553_v26, 5  ;;  %v4570_v34 = vrot.slane %v2557_v41, 6  ;;  %v4572_v2 = vrot.slane %v2561_v42, 7 }
 0x43f   : > { %v2594_v32 = vperm.slane %v2534_v16, 0  ;;  %v2595_v43 = vperm.slane %v2534_v16, 1  ;;  %v2596_v35 = vperm.slane %v2534_v16, 2  ;;  %v2597_v0 = vperm.slane %v2534_v16, 3 }
 0x440   : > { %v2598_v36 = vperm.slane %v2538_v45, 0  ;;  %v2599_v33 = vperm.slane %v2538_v45, 1  ;;  %v2600_v10 = vperm.slane %v2538_v45, 2  ;;  %v2601_v13 = vperm.slane %v2538_v45, 3 }
 0x441   : > { %v2602_v9 = vperm.slane %v2542_v19, 0  ;;  %v2603_v50 = vperm.slane %v2542_v19, 1  ;;  %v2604_v3 = vperm.slane %v2542_v19, 2  ;;  %v2605_v63 = vperm.slane %v2542_v19, 3 }
 0x442   : > { %v2606_v40 = vperm.slane %v2546_v30, 0  ;;  %v2607_v23 = vperm.slane %v2546_v30, 1  ;;  %v2608_v18 = vperm.slane %v2546_v30, 2  ;;  %v2609_v26 = vperm.slane %v2546_v30, 3 }
 0x443   : > { %v2610_v41 = vperm.slane %v2550_v7, 0  ;;  %v2611_v54 = vperm.slane %v2550_v7, 1  ;;  %v2612_v42 = vperm.slane %v2550_v7, 2  ;;  %v2613_v62 = vperm.slane %v2550_v7, 3 }
 0x444   : > { %v2614_v52 = vperm.slane %v2554_v49, 0  ;;  %v2615_v1 = vperm.slane %v2554_v49, 1  ;;  %v2616_v14 = vperm.slane %v2554_v49, 2  ;;  %v2617_v16 = vperm.slane %v2554_v49, 3 }
 0x445   : > { %v2618_v17 = vperm.slane %v4570_v34, 0  ;;  %v2619_v45 = vperm.slane %v4570_v34, 1  ;;  %v2620_v8 = vperm.slane %v4570_v34, 2  ;;  %v2621_v19 = vperm.slane %v4570_v34, 3 }
 0x446   : > { %v2622_v4 = vperm.slane %v4572_v2, 0  ;;  %v2623_v30 = vperm.slane %v4572_v2, 1  ;;  %v2624_v58 = vperm.slane %v4572_v2, 2  ;;  %v2625_v7 = vperm.slane %v4572_v2, 3 }
 0x447   : > { %v2722_v60 = vmul.f32 %v4428_v24, %v2594_v32  ;;  %v2723_v49 = vmul.f32 %v4428_v24, %v2595_v43  ;;  %v2724_v59 = vmul.f32 %v4428_v24, %v2596_v35  ;;  %v2725_v21 = vmul.f32 %v4428_v24, %v2597_v0 }
 0x448   : > { %v2726_v37 = vmul.f32 %v4428_v24, %v2598_v36  ;;  %v2727_v34 = vmul.f32 %v4428_v24, %v2599_v33  ;;  %v2728_v47 = vmul.f32 %v4428_v24, %v2600_v10  ;;  %v2729_v5 = vmul.f32 %v4428_v24, %v2601_v13 }
 0x449   : > { %v2730_v31 = vmul.f32 %v4428_v24, %v2602_v9  ;;  %v2731_v2 = vmul.f32 %v4428_v24, %v2603_v50  ;;  %v2732_v32 = vmul.f32 %v4428_v24, %v2604_v3  ;;  %vm3074_vm8 = vcmask 1043456  }
 0x44a   : > { %v2733_v43 = vmul.f32 %v4428_v24, %v2605_v63  ;;  %v2734_v35 = vmul.f32 %v4428_v24, %v2606_v40  ;;  %v2735_v0 = vmul.f32 %v4428_v24, %v2607_v23  ;;  %v2736_v36 = vmul.f32 %v4428_v24, %v2608_v18 }
 0x44b   : > { %v2737_v33 = vmul.f32 %v4428_v24, %v2609_v26  ;;  %v2738_v10 = vmul.f32 %v4428_v24, %v2610_v41  ;;  %v2739_v13 = vmul.f32 %v4428_v24, %v2611_v54  ;;  %v2740_v9 = vmul.f32 %v4428_v24, %v2612_v42 }
 0x44c   : > { %v2741_v50 = vmul.f32 %v4428_v24, %v2613_v62  ;;  %v4603_v3 = vmul.f32 %v4428_v24, %v2614_v52  ;;  %v2743_v63 = vmul.f32 %v4428_v24, %v2615_v1  ;;  %v4607_v40 = vmul.f32 %v4428_v24, %v2616_v14 }
 0x44d   : > { %v2745_v23 = vmul.f32 %v4428_v24, %v2617_v16  ;;  %v4611_v18 = vmul.f32 %v4428_v24, %v2618_v17  ;;  %v2747_v54 = vmul.f32 %v4428_v24, %v2619_v45  ;;  %v2915_v26 = vadd.f32 %v2787_v6, %v2723_v49 }
 0x44e   : > { %v4617_v62 = vmul.f32 %v4428_v24, %v2620_v8  ;;  %v5016_v52 = vperm.slane %v4151_v57, 3  ;;  %v5017_v1 = vperm.slane %v4423_v20, 1  ;;  %v5018_v42 = vperm.slane %v4423_v20, 3 }
 0x44f   : > { %v2749_v17 = vmul.f32 %v4428_v24, %v2621_v19  ;;  %v4627_v12 = vmul.f32 %v4428_v24, %v2622_v4  ;;  %v2751_v45 = vmul.f32 %v4428_v24, %v2623_v30  ;;  %v5019_v6 = vperm.slane %v4426_v51, 1 }
 0x450   : > { %v2917_v41 = vadd.f32 %v5016_v52, %v2725_v21  ;;  %v2919_v14 = vadd.f32 %v5017_v1, %v2727_v34  ;;  %v2921_v16 = vadd.f32 %v5018_v42, %v2729_v5  ;;  %v4634_v49 = vmul.f32 %v4428_v24, %v2624_v58 }
 0x451   : > { %v2923_v8 = vadd.f32 %v5019_v6, %v2731_v2  ;;  %v2753_v21 = vmul.f32 %v4428_v24, %v2625_v7  ;;  %v5020_v34 = vperm.slane %v4151_v57, 0  ;;  %v5021_v5 = vperm.slane %v4426_v51, 3 }
 0x452   : > { %v5022_v4 = vperm.slane %v4151_v57, 2  ;;  %v5023_v30 = vperm.slane %v4423_v20, 0  ;;  %v5024_v2 = vperm.slane %v4431_v44, 1  ;;  %v3042_v15 = vrot.slane %v2915_v26, 4 }
 0x453   : > { %v2914_v52 = vadd.f32 %v5020_v34, %v2722_v60  ;;  %v2925_v19 = vadd.f32 %v5021_v5, %v2733_v43  ;;  %v5025_v58 = vperm.slane %v4431_v44, 3  ;;  %v3043_v7 = vrot.slane %v2917_v41, 4 }
 0x454   : > { %v2916_v1 = vadd.f32 %v5022_v4, %v2724_v59  ;;  %v2918_v42 = vadd.f32 %v5023_v30, %v2726_v37  ;;  %v2927_v6 = vadd.f32 %v5024_v2, %v2735_v0  ;;  %v3044_v53 = vrot.slane %v2919_v14, 4 }
 0x455   : > { %v2929_v28 = vadd.f32 %v5025_v58, %v2737_v33  ;;  %v3045_v48 = vrot.slane %v2921_v16, 4  ;;  %v5026_v60 = vperm.slane %v4423_v20, 2  ;;  %v5027_v43 = vperm.slane %v4426_v51, 0 }
 0x456   : > { %v5028_v59 = vperm.slane %v4434_v27, 1  ;;  %v3046_v37 = vrot.slane %v2923_v8, 4  ;;  %v5029_v4 = vperm.slane %v4426_v51, 2  ;;  %v5030_v26 = vperm.slane %v4431_v44, 0 }
 0x457   : > { %v2920_v34 = vadd.f32 %v5026_v60, %v2728_v47  ;;  %v2922_v57 = vadd.f32 %v5027_v43, %v2730_v31  ;;  %v5031_v33 = vperm.slane %v4434_v27, 3  ;;  %v3047_v14 = vrot.slane %v2925_v19, 4 }
 0x458   : > { %v2931_v5 = vadd.f32 %v5028_v59, %v2739_v13  ;;  %v2924_v0 = vadd.f32 %v5029_v4, %v2732_v32  ;;  %v2926_v30 = vadd.f32 %v5030_v26, %v2734_v35  ;;  %v5032_v20 = vperm.slane %v4437_v22, 1 }
 0x459   : > { %v2933_v41 = vadd.f32 %v5031_v33, %v2741_v50  ;;  %v5033_v16 = vperm.slane %v4437_v22, 3  ;;  %v3048_v2 = vrot.slane %v2927_v6, 4  ;;  %v3075_v13 = vsel %vm3074_vm8, %v2914_v52, %v3042_v15 }
 0x45a   : > { %v2935_v47 = vadd.f32 %v5032_v20, %v2743_v63  ;;  %v3049_v8 = vrot.slane %v2929_v28, 4  ;;  %v3076_v51 = vsel %vm3074_vm8, %v2916_v1, %v3043_v7  ;;  %v3077_v32 = vsel %vm3074_vm8, %v2918_v42, %v3044_v53  ;;  %3139 = vst [vmem:[%s4669_s27] sm:$0xff] %v3075_v13 }
 0x45b   : > { %v2937_v31 = vadd.f32 %v5033_v16, %v2745_v23  ;;  %v3078_v35 = vsel %vm3074_vm8, %v2920_v34, %v3045_v48  ;;  %v5034_v50 = vperm.slane %v4431_v44, 2  ;;  %v5035_v23 = vperm.slane %v4440_v46, 1  ;;  %3140 = vst [vmem:[%s4669_s27 + $0x8] sm:$0xff] %v3076_v51  ;;  %v2330_v44 = vpop.trf.xlu2 }
 0x45c   : > { %v3050_v28 = vrot.slane %v2931_v5, 4  ;;  %v3079_v52 = vsel %vm3074_vm8, %v2922_v57, %v3046_v37  ;;  %v5036_v53 = vperm.slane %v4440_v46, 3  ;;  %v5037_v19 = vperm.slane %v4443_v39, 1  ;;  %3141 = vst [vmem:[%s4669_s27 + $0x10] sm:$0xff] %v3077_v32 }
 0x45d   : > { %v2928_v63 = vadd.f32 %v5034_v50, %v2736_v36  ;;  %v2939_v15 = vadd.f32 %v5035_v23, %v2747_v54  ;;  %v3051_v42 = vrot.slane %v2933_v41, 4  ;;  %v3080_v6 = vsel %vm3074_vm8, %v2924_v0, %v3047_v14  ;;  %v2298_v36 = vpop.trf.xlu0  ;;  %3142 = vst [vmem:[%s4669_s27 + $0x18] sm:$0xff] %v3078_v35 }
 0x45e   : > { %v2941_v48 = vadd.f32 %v5036_v53, %v2749_v17  ;;  %v2943_v1 = vadd.f32 %v5037_v19, %v2751_v45  ;;  %v5038_v54 = vperm.slane %v4434_v27, 0  ;;  %v5039_v7 = vperm.slane %v4434_v27, 2  ;;  %3143 = vst [vmem:[%s4669_s27 + $0x20] sm:$0xff] %v3079_v52 }
 0x45f   : > { %v3052_v34 = vrot.slane %v2935_v47, 4  ;;  %v3081_v17 = vsel %vm3074_vm8, %v2926_v30, %v3048_v2  ;;  %v5040_v45 = vperm.slane %v4437_v22, 0  ;;  %v5041_v57 = vperm.slane %v4443_v39, 3  ;;  %3144 = vst [vmem:[%s4669_s27 + $0x28] sm:$0xff] %v3080_v6 }
 0x460   : > { %v2930_v58 = vadd.f32 %v5038_v54, %v2738_v10  ;;  %v2932_v60 = vadd.f32 %v5039_v7, %v2740_v9  ;;  %v3053_v5 = vrot.slane %v2937_v31, 4  ;;  %v3082_v37 = vsel %vm3074_vm8, %v2928_v63, %v3049_v8  ;;  %3145 = vst [vmem:[%s4669_s27 + $0x30] sm:$0xff] %v3081_v17 }
 0x461   : > { %v2934_v43 = vadd.f32 %v5040_v45, %v4603_v3  ;;  %v2945_v59 = vadd.f32 %v5041_v57, %v2753_v21  ;;  %v3054_v10 = vrot.slane %v2939_v15, 4  ;;  %v2531_v9 = vrot.slane %v2330_v44, 5  ;;  %3146 = vst [vmem:[%s4669_s27 + $0x38] sm:$0xff] %v3082_v37 }
 0x462   : > { %v3083_v27 = vsel %vm3074_vm8, %v2930_v58, %v3050_v28  ;;  %v2530_v4 = vrot.slane %v2298_v36, 6  ;;  %v5042_v0 = vperm.slane %v4437_v22, 2  ;;  %v3055_v3 = vrot.slane %v2941_v48, 4 }
 0x463   : > { %v3056_v30 = vrot.slane %v2943_v1, 4  ;;  %v3084_v21 = vsel %vm3074_vm8, %v2932_v60, %v3051_v42  ;;  %v2570_v33 = vsel %vm2442_vm1, %v4454_v29, %v4540_v38  ;;  %v2574_v41 = vsel %vm2448_vm3, %v4454_v29, %v4540_v38  ;;  %3147 = vst [vmem:[%s4669_s27 + $0x40] sm:$0xff] %v3083_v27 }
 0x464   : > { %v2936_v26 = vadd.f32 %v5042_v0, %v4607_v40  ;;  %v5043_v14 = vperm.slane %v4440_v46, 0  ;;  %v3085_v40 = vsel %vm3074_vm8, %v2934_v43, %v3052_v34  ;;  %v5044_v20 = vperm.slane %v4440_v46, 2  ;;  %3148 = vst [vmem:[%s4669_s27 + $0x48] sm:$0xff] %v3084_v21 }
 0x465   : > { %v5045_v16 = vperm.slane %v4443_v39, 0  ;;  %v3057_v2 = vrot.slane %v2945_v59, 4  ;;  %v5046_v8 = vperm.slane %v4443_v39, 2  ;;  %3149 = vst [vmem:[%s4669_s27 + $0x50] sm:$0xff] %v3085_v40  ;;  %v2571_v35 = vsel %vm2454_vm4, %v2530_v4, %v2531_v9 }
 0x466   : > { %v2938_v22 = vadd.f32 %v5043_v14, %v4611_v18  ;;  %v2940_v47 = vadd.f32 %v5044_v20, %v4617_v62  ;;  %v3086_v13 = vsel %vm3074_vm8, %v2936_v26, %v3053_v5  ;;  %v2578_v18 = vsel %vm2454_vm4, %v4454_v29, %v4540_v38 }
 0x467   : > { %v2942_v31 = vadd.f32 %v5045_v16, %v4627_v12  ;;  %v2944_v51 = vadd.f32 %v5046_v8, %v4634_v49  ;;  %v2567_v62 = vsel %vm2448_vm3, %v2530_v4, %v2531_v9  ;;  %v2575_v50 = vsel %vm2460_vm5, %v2530_v4, %v2531_v9  ;;  %3150 = vst [vmem:[%s4669_s27 + $0x58] sm:$0xff] %v3086_v13 }
 0x468   : > { %v3087_v46 = vsel %vm3074_vm8, %v2938_v22, %v3054_v10  ;;  %v3088_v12 = vsel %vm3074_vm8, %v2940_v47, %v3055_v3  ;;  %v2579_v39 = vsel %vm2466_vm6, %v2530_v4, %v2531_v9  ;;  %v2583_v49 = vsel %vm2472_vm7, %v2531_v9, %v2530_v4 }
 0x469   : > { %v3089_v32 = vsel %vm3074_vm8, %v2942_v31, %v3056_v30  ;;  %v2587_v63 = vsel %vm2440_vm0, %v2530_v4, %v2531_v9  ;;  %v2591_v23 = vsel %vm2446_vm2, %v2530_v4, %v2531_v9  ;;  %v2582_v15 = vsel %vm2460_vm5, %v4454_v29, %v4540_v38  ;;  %3151 = vst [vmem:[%s4669_s27 + $0x60] sm:$0xff] %v3087_v46 }
 0x46a   : > { %v3090_v28 = vsel %vm3074_vm8, %v2944_v51, %v3057_v2  ;;  %v2564_v52 = vsel %vm2442_vm1, %v2530_v4, %v2531_v9  ;;  %v2568_v53 = vsel %vm2450_vm9, %v4568_v55, %v2567_v62  ;;  %v2586_v48 = vsel %vm2466_vm6, %v4454_v29, %v4540_v38  ;;  %3152 = vst [vmem:[%s4669_s27 + $0x68] sm:$0xff] %v3088_v12 }
 0x46b   : > { %v2590_v19 = vsel %vm2472_vm7, %v4540_v38, %v4454_v29  ;;  %v2572_v1 = vsel %vm2456_vm10, %v2570_v33, %v2571_v35  ;;  %v2576_v42 = vsel %vm2462_vm11, %v2574_v41, %v2575_v50  ;;  %3153 = vst [vmem:[%s4669_s27 + $0x70] sm:$0xff] %v3089_v32  ;;  %v2580_v6 = vsel %vm2468_vm12, %v2578_v18, %v2579_v39 }
 0x46c   : > { %v2584_v44 = vsel %vm2474_vm13, %v2582_v15, %v2583_v49  ;;  %v2588_v55 = vsel %vm2479_vm14, %v2587_v63, %v2586_v48  ;;  %v2592_v36 = vsel %vm2484_vm15, %v2591_v23, %v2590_v19  ;;  %v2844_v54 = vperm.slane %v4495_v25, 2  ;;  %3154 = vst [vmem:[%s4669_s27 + $0x78] sm:$0xff] %v3090_v28 }
 0x46d   : > { %v2845_v58 = vperm.slane %v4495_v25, 3  ;;  %vm5047_vm0 = vcmask 1041408   ;;  %v2569_v38 = vrot.slane %v2568_v53, 1  ;;  %v2847_v7 = vperm.slane %v4498_v56, 1 }
 0x46e   : > { %v2565_v29 = vsel %vm5047_vm0, %v4563_v11, %v2564_v52  ;;  %v2849_v60 = vperm.slane %v4498_v56, 3  ;;  %v2573_v34 = vrot.slane %v2572_v1, 2  ;;  %v2577_v17 = vrot.slane %v2576_v42, 3 }
 0x46f   : > { %v2581_v45 = vrot.slane %v2580_v6, 4  ;;  %v2585_v43 = vrot.slane %v2584_v44, 5  ;;  %v4771_v57 = vrot.slane %v2588_v55, 6  ;;  %v4773_v59 = vrot.slane %v2592_v36, 7 }
 0x470   : > { %v2626_v5 = vperm.slane %v2565_v29, 0  ;;  %v2627_v37 = vperm.slane %v2565_v29, 1  ;;  %v2628_v10 = vperm.slane %v2565_v29, 2  ;;  %v2629_v27 = vperm.slane %v2565_v29, 3 }
 0x471   : > { %v2630_v9 = vperm.slane %v2569_v38, 0  ;;  %v2631_v4 = vperm.slane %v2569_v38, 1  ;;  %v2632_v11 = vperm.slane %v2569_v38, 2  ;;  %v2633_v0 = vperm.slane %v2569_v38, 3 }
 0x472   : > { %v2634_v26 = vperm.slane %v2573_v34, 0  ;;  %v2635_v3 = vperm.slane %v2573_v34, 1  ;;  %v2636_v30 = vperm.slane %v2573_v34, 2  ;;  %v2637_v21 = vperm.slane %v2573_v34, 3 }
 0x473   : > { %v2638_v33 = vperm.slane %v2577_v17, 0  ;;  %v2639_v41 = vperm.slane %v2577_v17, 1  ;;  %v2640_v14 = vperm.slane %v2577_v17, 2  ;;  %v2641_v22 = vperm.slane %v2577_v17, 3 }
 0x474   : > { %v2642_v40 = vperm.slane %v2581_v45, 0  ;;  %v2643_v20 = vperm.slane %v2581_v45, 1  ;;  %v2644_v47 = vperm.slane %v2581_v45, 2  ;;  %v2645_v16 = vperm.slane %v2581_v45, 3 }
 0x475   : > { %v2646_v31 = vperm.slane %v2585_v43, 0  ;;  %v2647_v2 = vperm.slane %v2585_v43, 1  ;;  %v2648_v13 = vperm.slane %v2585_v43, 2  ;;  %v2649_v18 = vperm.slane %v2585_v43, 3 }
 0x476   : > { %v2650_v8 = vperm.slane %v4771_v57, 0  ;;  %v2651_v51 = vperm.slane %v4771_v57, 1  ;;  %v2652_v46 = vperm.slane %v4771_v57, 2  ;;  %v2653_v62 = vperm.slane %v4771_v57, 3 }
 0x477   : > { %v2654_v12 = vperm.slane %v4773_v59, 0  ;;  %v2655_v32 = vperm.slane %v4773_v59, 1  ;;  %v2656_v35 = vperm.slane %v4773_v59, 2  ;;  %v2657_v50 = vperm.slane %v4773_v59, 3 }
 0x478   : > { %v2754_v39 = vmul.f32 %v4428_v24, %v2626_v5  ;;  %v2755_v49 = vmul.f32 %v4428_v24, %v2627_v37  ;;  %v2756_v63 = vmul.f32 %v4428_v24, %v2628_v10  ;;  %v2757_v23 = vmul.f32 %v4428_v24, %v2629_v27 }
 0x479   : > { %v2758_v15 = vmul.f32 %v4428_v24, %v2630_v9  ;;  %v2759_v28 = vmul.f32 %v4428_v24, %v2631_v4  ;;  %v2760_v52 = vmul.f32 %v4428_v24, %v2632_v11  ;;  %v2761_v53 = vmul.f32 %v4428_v24, %v2633_v0  ;;  %v5050_v4 = vld [vmem:[#allocation20_spill] sm:$0xff] }
 0x47a   : > { %v2762_v48 = vmul.f32 %v4428_v24, %v2634_v26  ;;  %v2763_v19 = vmul.f32 %v4428_v24, %v2635_v3  ;;  %v2764_v1 = vmul.f32 %v4428_v24, %v2636_v30  ;;  %v2765_v42 = vmul.f32 %v4428_v24, %v2637_v21 }
 0x47b   : > { %v2766_v6 = vmul.f32 %v4428_v24, %v2638_v33  ;;  %v2767_v44 = vmul.f32 %v4428_v24, %v2639_v41  ;;  %v2768_v55 = vmul.f32 %v4428_v24, %v2640_v14  ;;  %v2769_v36 = vmul.f32 %v4428_v24, %v2641_v22  ;;  %v5053_v41 = vld [vmem:[#allocation21_spill] sm:$0xff] }
 0x47c   : > { %v2770_v29 = vmul.f32 %v4428_v24, %v2642_v40  ;;  %v2771_v38 = vmul.f32 %v4428_v24, %v2643_v20  ;;  %v2772_v34 = vmul.f32 %v4428_v24, %v2644_v47  ;;  %v2773_v17 = vmul.f32 %v4428_v24, %v2645_v16 }
 0x47d   : > { %v4804_v45 = vmul.f32 %v4428_v24, %v2646_v31  ;;  %v2775_v43 = vmul.f32 %v4428_v24, %v2647_v2  ;;  %v4808_v57 = vmul.f32 %v4428_v24, %v2648_v13  ;;  %v5048_v5 = vperm.slane %v4187_v61, 1 }
 0x47e   : > { %v2777_v10 = vmul.f32 %v4428_v24, %v2649_v18  ;;  %v5049_v27 = vperm.slane %v4187_v61, 3  ;;  %v5051_v11 = vperm.slane %v5050_v4, 1  ;;  %v5052_v26 = vperm.slane %v5050_v4, 3 }
 0x47f   : > { %v2947_v37 = vadd.f32 %v5048_v5, %v2755_v49  ;;  %v4820_v30 = vmul.f32 %v4428_v24, %v2650_v8  ;;  %v2779_v21 = vmul.f32 %v4428_v24, %v2651_v51  ;;  %v4824_v33 = vmul.f32 %v4428_v24, %v2652_v46  ;;  %v5058_v51 = vld [vmem:[#allocation22_spill] sm:$0xff] }
 0x480   : > { %v2949_v9 = vadd.f32 %v5049_v27, %v2757_v23  ;;  %v2951_v0 = vadd.f32 %v5051_v11, %v2759_v28  ;;  %v2953_v3 = vadd.f32 %v5052_v26, %v2761_v53  ;;  %v5054_v14 = vperm.slane %v5053_v41, 1 }
 0x481   : > { %v2781_v40 = vmul.f32 %v4428_v24, %v2653_v62  ;;  %v2783_v20 = vmul.f32 %v4428_v24, %v2655_v32  ;;  %v2785_v47 = vmul.f32 %v4428_v24, %v2657_v50  ;;  %v5055_v16 = vperm.slane %v5053_v41, 3 }
 0x482   : > { %v2955_v22 = vadd.f32 %v5054_v14, %v2763_v19  ;;  %v5056_v2 = vperm.slane %v4187_v61, 0  ;;  %v5057_v18 = vperm.slane %v4187_v61, 2  ;;  %v5059_v46 = vperm.slane %v5058_v51, 1 }
 0x483   : > { %v2957_v31 = vadd.f32 %v5055_v16, %v2765_v42  ;;  %v3058_v23 = vrot.slane %v2947_v37, 4  ;;  %v5060_v62 = vperm.slane %v5058_v51, 3  ;;  %v3059_v32 = vrot.slane %v2949_v9, 4 }
 0x484   : > { %v2946_v13 = vadd.f32 %v5056_v2, %v2754_v39  ;;  %v2948_v8 = vadd.f32 %v5057_v18, %v2756_v63  ;;  %v2959_v49 = vadd.f32 %v5059_v46, %v2767_v44  ;;  %v3060_v53 = vrot.slane %v2951_v0, 4  ;;  %v5063_v39 = vld [vmem:[#allocation23_spill] sm:$0xff] }
 0x485   : > { %v2961_v28 = vadd.f32 %v5060_v62, %v2769_v36  ;;  %v3061_v19 = vrot.slane %v2953_v3, 4  ;;  %v5061_v50 = vperm.slane %v5050_v4, 0  ;;  %v5062_v42 = vperm.slane %v5050_v4, 2  ;;  %v5068_v4 = vld [vmem:[#allocation24_spill] sm:$0xff] }
 0x486   : > { %v5064_v11 = vperm.slane %v5063_v39, 1  ;;  %v3062_v63 = vrot.slane %v2955_v22, 4  ;;  %v5065_v44 = vperm.slane %v5053_v41, 0  ;;  %v5066_v36 = vperm.slane %v5053_v41, 2 }
 0x487   : > { %v2950_v5 = vadd.f32 %v5061_v50, %v2758_v15  ;;  %v2952_v27 = vadd.f32 %v5062_v42, %v2760_v52  ;;  %v5067_v0 = vperm.slane %v5063_v39, 3  ;;  %v3063_v15 = vrot.slane %v2957_v31, 4 }
 0x488   : > { %v2963_v61 = vadd.f32 %v5064_v11, %v2771_v38  ;;  %v2954_v37 = vadd.f32 %v5065_v44, %v2762_v48  ;;  %v2956_v9 = vadd.f32 %v5066_v36, %v2764_v1  ;;  %v5069_v52 = vperm.slane %v5068_v4, 1 }
 0x489   : > { %v2965_v26 = vadd.f32 %v5067_v0, %v2773_v17  ;;  %v5070_v38 = vperm.slane %v5068_v4, 3  ;;  %v3064_v22 = vrot.slane %v2959_v49, 4  ;;  %v3091_v16 = vsel %vm3074_vm8, %v2946_v13, %v3058_v23 }
 0x48a   : > { %v2967_v3 = vadd.f32 %v5069_v52, %v2775_v43  ;;  %v3065_v2 = vrot.slane %v2961_v28, 4  ;;  %v3092_v48 = vsel %vm3074_vm8, %v2948_v8, %v3059_v32  ;;  %v3093_v1 = vsel %vm3074_vm8, %v2950_v5, %v3060_v53  ;;  %3155 = vst [vmem:[%s4669_s27 + $0x80] sm:$0xff] %v3091_v16 }
 0x48b   : > { %v2969_v14 = vadd.f32 %v5070_v38, %v2777_v10  ;;  %v3094_v41 = vsel %vm3074_vm8, %v2952_v27, %v3061_v19  ;;  %v5071_v17 = vperm.slane %v5058_v51, 0  ;;  %v5072_v10 = vperm.slane %v4495_v25, 1  ;;  %3156 = vst [vmem:[%s4669_s27 + $0x88] sm:$0xff] %v3092_v48 }
 0x48c   : > { %v3066_v13 = vrot.slane %v2963_v61, 4  ;;  %v3095_v18 = vsel %vm3074_vm8, %v2954_v37, %v3062_v63  ;;  %v5073_v8 = vperm.slane %v5058_v51, 2  ;;  %v2973_v49 = vadd.f32 %v2845_v58, %v2781_v40  ;;  %3157 = vst [vmem:[%s4669_s27 + $0x90] sm:$0xff] %v3093_v1 }
 0x48d   : > { %v2958_v43 = vadd.f32 %v5071_v17, %v2766_v6  ;;  %v2971_v31 = vadd.f32 %v5072_v10, %v2779_v21  ;;  %v3067_v23 = vrot.slane %v2965_v26, 4  ;;  %v3096_v62 = vsel %vm3074_vm8, %v2956_v9, %v3063_v15  ;;  %3158 = vst [vmem:[%s4669_s27 + $0x98] sm:$0xff] %v3094_v41 }
 0x48e   : > { %v2960_v46 = vadd.f32 %v5073_v8, %v2768_v55  ;;  %v5074_v6 = vperm.slane %v5063_v39, 0  ;;  %v2975_v21 = vadd.f32 %v2847_v7, %v2783_v20  ;;  %v3068_v32 = vrot.slane %v2967_v3, 4  ;;  %3159 = vst [vmem:[%s4669_s27 + $0xa0] sm:$0xff] %v3095_v18 }
 0x48f   : > { %v3097_v53 = vsel %vm3074_vm8, %v2958_v43, %v3064_v22  ;;  %v5075_v55 = vperm.slane %v5063_v39, 2  ;;  %v2977_v40 = vadd.f32 %v2849_v60, %v2785_v47  ;;  %v3069_v51 = vrot.slane %v2969_v14, 4  ;;  %3160 = vst [vmem:[%s4669_s27 + $0xa8] sm:$0xff] %v3096_v62 }
 0x490   : > { %v2962_v28 = vadd.f32 %v5074_v6, %v2770_v29  ;;  %v3098_v19 = vsel %vm3074_vm8, %v2960_v46, %v3065_v2  ;;  %v2782_v7 = vmul.f32 %v4428_v24, %v2654_v12  ;;  %v5076_v29 = vperm.slane %v5068_v4, 0  ;;  %3161 = vst [vmem:[%s4669_s27 + $0xb0] sm:$0xff] %v3097_v53 }
 0x491   : > { %v2964_v58 = vadd.f32 %v5075_v55, %v2772_v34  ;;  %v3070_v50 = vrot.slane %v2971_v31, 4  ;;  %v2784_v60 = vmul.f32 %v4428_v24, %v2656_v35  ;;  %v5077_v34 = vperm.slane %v5068_v4, 2  ;;  %3162 = vst [vmem:[%s4669_s27 + $0xb8] sm:$0xff] %v3098_v19 }
 0x492   : > { %v2966_v20 = vadd.f32 %v5076_v29, %v4804_v45  ;;  %v3099_v5 = vsel %vm3074_vm8, %v2962_v28, %v3066_v13  ;;  %v3071_v42 = vrot.slane %v2973_v49, 4  ;;  %v2846_v45 = vperm.slane %v4498_v56, 0 }
 0x493   : > { %v2968_v47 = vadd.f32 %v5077_v34, %v4808_v57  ;;  %v3100_v12 = vsel %vm3074_vm8, %v2964_v58, %v3067_v23  ;;  %v5078_v59 = vperm.slane %v4495_v25, 0  ;;  %v3072_v35 = vrot.slane %v2975_v21, 4  ;;  %3163 = vst [vmem:[%s4669_s27 + $0xc0] sm:$0xff] %v3099_v5 }
 0x494   : > { %v3101_v57 = vsel %vm3074_vm8, %v2966_v20, %v3068_v32  ;;  %v2848_v27 = vperm.slane %v4498_v56, 2  ;;  %v2972_v39 = vadd.f32 %v2844_v54, %v4824_v33  ;;  %v3073_v11 = vrot.slane %v2977_v40, 4  ;;  %3164 = vst [vmem:[%s4669_s27 + $0xc8] sm:$0xff] %v3100_v12 }
 0x495   : > { %v2970_v24 = vadd.f32 %v5078_v59, %v4820_v30  ;;  %v3102_v61 = vsel %vm3074_vm8, %v2968_v47, %v3069_v51  ;;  %v2974_v30 = vadd.f32 %v2846_v45, %v2782_v7  ;;  %3165 = vst [vmem:[%s4669_s27 + $0xd0] sm:$0xff] %v3101_v57 }
 0x496   : > { %v2976_v56 = vadd.f32 %v2848_v27, %v2784_v60  ;;  %v3104_v44 = vsel %vm3074_vm8, %v2972_v39, %v3071_v42  ;;  %3166 = vst [vmem:[%s4669_s27 + $0xd8] sm:$0xff] %v3102_v61 }
 0x497   : > { %v3103_v63 = vsel %vm3074_vm8, %v2970_v24, %v3070_v50  ;;  %v3105_v25 = vsel %vm3074_vm8, %v2974_v30, %v3072_v35  ;;  %3168 = vst [vmem:[%s4669_s27 + $0xe8] sm:$0xff] %v3104_v44 }
 0x498   : > { %v3106_v54 = vsel %vm3074_vm8, %v2976_v56, %v3073_v11  ;;  %3167 = vst [vmem:[%s4669_s27 + $0xe0] sm:$0xff] %v3103_v63 }
 0x499   : > { %3169 = vst [vmem:[%s4669_s27 + $0xf0] sm:$0xff] %v3105_v25 }
 0x49a   : > { %3170 = vst [vmem:[%s4669_s27 + $0xf8] sm:$0xff] %v3106_v54 }
 0x49b   : > { %3573 = shalt.err (!%p3570_p11)
}
 0x49c   : > { %s3652_s9 = smov 256   ;;  %s3653_s7 = smov 16  }
 0x49d   : > { %3369 = dma.vmem_to_hbm [thread:$0]  (%p3743_p9), %s3188_s11, 4096, %s3190_s23, %s3172_s29, %s3652_s9, %s3652_s9, %s3653_s7  }
 0x49e PF: > { %s5079_s12 = sld [smem:[#allocation12_spill]]  ;;  %p3386_p13 = scmp.ge.s32.totalorder %s3648_s19, 2 }
 0x4a0   : > { %p3382_p0 = pnand %p3386_p13, %p3749_p12 }
 0x4a2   : > { %p3383_p1 = pneg %p3382_p0 }
 0x4a4   : > { %s3204_s17 = sand.u32 1, %s5079_s12  }
 0x4a5   : > { %s3205_s18 = scalar_lea.sflag [#allocation4], %s3204_s17 }
 0x4a6   : > { %3615 = dma.done.wait (%p3383_p1), %s3205_s18, 4096  }
 0x4a7   : > { %3617 = vsyncadd (%p3383_p1), %s3205_s18, 4294963200  ;;  %s22_s19 = sadd.s32 1, %s3648_s19   ;;  %s5081_s20 = sld [smem:[#allocation13_spill]] }
 0x4a8   : > { %p19_p2 = scmp.ge.s32.totalorder %s22_s19, 6   ;;  %s5082_s14 = sld [smem:[#allocation19_spill]] }
 0x4a9   : > { %s5083_s15 = sld [smem:[#allocation14_spill]]  ;;  %s5087_s12 = smov %s3624_s13 }
 0x4aa   : > { %s5084_s16 = sld [smem:[#allocation15_spill]]  ;;  %21 = sbr.rel (!%p19_p2) target bundleno = 11 (0xb), region = 122 }
 0x4ab   : > { %s5085_s17 = sld [smem:[#allocation16_spill]] }
 0x4ac   : > { %s5086_s18 = sld [smem:[#allocation17_spill]] }
 0x4ad   : > { %s5088_s13 = smov %s5081_s20 }
 0x4af   :  { %3211 = vsyncpa [#allocation3], 1 }
 0x4b0   :  { %3213 = vsyncpa [#allocation3 + $0x1], 1 }
 0x4b1   :  { %3214 = vsyncpa [#allocation6], 1 }
 0x4b2   :  { %3216 = vsyncpa [#allocation6 + $0x1], 1 }
 0x4b3   :  { %3217 = vsyncpa [#allocation4], 1 }
 0x4b4   :  { %3219 = vsyncpa [#allocation4 + $0x1], 1 }

</bundles_post_ra>
